<compile_context>
chip_gen: v7x
topology: tpu7x:2x2x1
jax: 0.10.0
libtpu: 0.0.40
codegen_flags: <defaults>
</compile_context>

<pallas_src>
import functools

import jax
import jax.numpy as jnp
from jax.experimental import pallas as pl
from jax.experimental.pallas import tpu as pltpu

EXPANSION = 4
BN_EPS = 1e-5
LANE = 128


def _round_up(x, m):
    return ((x + m - 1) // m) * m


def _pad_channels(c):
    return _round_up(c, LANE)


# ----------------------------------------------------------------------------
# Fused Bottleneck kernel: one grid step == one image.
# ----------------------------------------------------------------------------
def _bottleneck_kernel(x_ref, w1_ref, b1_ref, w2_ref, b2_ref, w3_ref, b3_ref,
                       *rest, H, W, Wp, Hs, stride, has_ds):
    if has_ds:
        wd_ref, bd_ref, o_ref, pad_ref = rest
    else:
        o_ref, pad_ref = rest

    cin = x_ref.shape[-1]
    cmid = w1_ref.shape[1]
    HW = H * W
    Ho = H if stride == 1 else H // 2
    Wo = W if stride == 1 else W // 2

    # ---- conv1 (1x1) + bn1 + relu : a single lane-dense GEMM ---------------
    x_f32 = x_ref[0]                                     # (H*W, Cin)  f32
    x_bf = x_f32.astype(jnp.bfloat16)
    y1 = jnp.dot(x_bf, w1_ref[...], preferred_element_type=jnp.float32)
    y1 = jnp.maximum(y1 + b1_ref[...], 0.0).astype(jnp.bfloat16)  # (H*W, Cmid)

    # ---- conv2 (3x3, pad=1) + bn2 + relu ------------------------------------
    # Zero-padded VMEM scratch (padding done in-kernel):
    #   rows [2, H+2) x cols [0, W) hold the conv1 output, everything else 0.
    pad_ref[...] = jnp.zeros_like(pad_ref)
    pad_ref[pl.ds(2, H), pl.ds(0, W), :] = y1.reshape(H, W, cmid)

    flat = pad_ref[...].reshape(Hs * Wp, cmid)           # layout-preserving view
    acc = jnp.zeros((H * Wp, cmid), jnp.float32)
    for dj in range(3):
        # One (shared) sublane-shifted slice per width tap; the three row taps
        # below index it with Wp-aligned (cheap) offsets.
        base = Wp + dj - 1
        shifted = jax.lax.slice(flat, (base, 0), (base + (H + 2) * Wp, cmid))
        for di in range(3):
            tap = jax.lax.slice(shifted, (di * Wp, 0), ((di + H) * Wp, cmid))
            acc = acc + jnp.dot(tap, w2_ref[di * 3 + dj],
                                preferred_element_type=jnp.float32)
    y2 = jnp.maximum(acc + b2_ref[...], 0.0).astype(jnp.bfloat16)
    y2 = y2.reshape(H, Wp, cmid)                         # dense stride-1 result

    if stride == 1:
        a2 = jax.lax.slice(y2, (0, 0, 0), (H, W, cmid)).reshape(HW, cmid)
    else:
        # Stride 2: subsample the dense result in-kernel.
        # even columns: (H, Wp, C) -> (H, Wp/2, 2C) -> first C lanes (aligned)
        ec = y2.reshape(H, Wp // 2, 2 * cmid)[:, :, :cmid]
        # even rows: leading-dim reshape + static index (no sublane gather)
        er = ec.reshape(H // 2, 2, Wp // 2, cmid)[:, 0, :, :]
        a2 = jax.lax.slice(er, (0, 0, 0), (Ho, Wo, cmid)).reshape(Ho * Wo, cmid)

    # ---- conv3 (1x1) + bn3 + residual + relu : fused GEMM epilogue ----------
    y3 = jnp.dot(a2, w3_ref[...], preferred_element_type=jnp.float32)
    y3 = y3 + b3_ref[...]

    if has_ds:
        if stride == 1:
            xs = x_bf
        else:
            x3 = x_bf.reshape(H, W, cin)
            xec = x3.reshape(H, W // 2, 2 * cin)[:, :, :cin]   # even columns
            xer = xec.reshape(H // 2, 2, W // 2, cin)[:, 0, :, :]  # even rows
            xs = xer.reshape(Ho * Wo, cin)
        sc = jnp.dot(xs, wd_ref[...], preferred_element_type=jnp.float32)
        sc = sc + bd_ref[...]
    else:
        sc = x_f32                                       # identity shortcut (f32)

    o_ref[0] = jnp.maximum(y3 + sc, 0.0).astype(o_ref.dtype)


# ----------------------------------------------------------------------------
# Python wrapper (NHWC); NCHW wrapper only at the module boundary.
# ----------------------------------------------------------------------------
def bottleneck_forward_nhwc(params, x):
    """Fused Bottleneck forward. x: (N, H, W, Cin) float32, NHWC."""
    N, H, W, cin = x.shape
    stride = params["stride"]
    assert stride in (1, 2)
    if stride == 2:
        # TODO(synk): odd spatial sizes with stride 2 are not handled.
        assert H % 2 == 0 and W % 2 == 0

    w1, b1 = params["w1"], params["b1"]
    w2, b2 = params["w2"], params["b2"]
    w3, b3 = params["w3"], params["b3"]
    has_ds = "wd" in params

    cin_p, cmid_p = w1.shape
    cout_p = w3.shape[1]
    if cin != cin_p:                   # lane-pad input channels with zeros
        x = jnp.pad(x, ((0, 0), (0, 0), (0, 0), (0, cin_p - cin)))

    Ho, Wo = (H, W) if stride == 1 else (H // 2, W // 2)
    HW, HoWo = H * W, Ho * Wo
    Wp = _round_up(W + 2, 16)          # scratch width (bf16 sublane-tile aligned)
    Hs = H + 4                         # 2 zero rows above + 2 below

    x2 = x.reshape(N, HW, cin_p).astype(jnp.float32)

    inputs = [x2, w1, b1, w2, b2, w3, b3]
    in_specs = [
        pl.BlockSpec((1, HW, cin_p), lambda n: (n, 0, 0)),
        pl.BlockSpec((cin_p, cmid_p), lambda n: (0, 0)),
        pl.BlockSpec((1, cmid_p), lambda n: (0, 0)),
        pl.BlockSpec((9, cmid_p, cmid_p), lambda n: (0, 0, 0)),
        pl.BlockSpec((1, cmid_p), lambda n: (0, 0)),
        pl.BlockSpec((cmid_p, cout_p), lambda n: (0, 0)),
        pl.BlockSpec((1, cout_p), lambda n: (0, 0)),
    ]
    if has_ds:
        inputs += [params["wd"], params["bd"]]
        in_specs += [pl.BlockSpec((cin_p, cout_p), lambda n: (0, 0)),
                     pl.BlockSpec((1, cout_p), lambda n: (0, 0))]

    # Advisory cost estimate so XLA schedules surrounding ops sensibly.
    flops = 2 * N * (HW * cin_p * cmid_p
                     + 9 * H * Wp * cmid_p * cmid_p
                     + HoWo * cmid_p * cout_p
                     + (HoWo * cin_p * cout_p if has_ds else 0))
    weight_bytes = int(sum(a.size * a.dtype.itemsize for a in inputs[1:]))
    bytes_accessed = int(x2.size * 4 + weight_bytes + N * HoWo * cout_p * 4)
    cost = pl.CostEstimate(flops=int(flops), transcendentals=0,
                           bytes_accessed=bytes_accessed)

    # VMEM budget: per-step blocks (double-buffered) + scratch + in-kernel
    # temporaries.  Only raise the scoped limit above the 32 MiB default when
    # necessary, and keep headroom for v7x's 64 MiB physical VMEM.
    block_bytes = HW * cin_p * 4 + HoWo * cout_p * 4 + weight_bytes
    scratch_bytes = Hs * Wp * cmid_p * 2
    temp_bytes = H * Wp * cmid_p * (4 + 4 + 2) + (H + 2) * Wp * cmid_p * 2
    vmem_est = 2 * block_bytes + scratch_bytes + 2 * temp_bytes
    cp_kwargs = dict(dimension_semantics=("parallel",))
    if vmem_est > 32 * 2 ** 20:
        cp_kwargs["vmem_limit_bytes"] = min(int(1.25 * vmem_est), 64 * 2 ** 20)

    kernel = functools.partial(_bottleneck_kernel, H=H, W=W, Wp=Wp, Hs=Hs,
                               stride=stride, has_ds=has_ds)
    out = pl.pallas_call(
        kernel,
        out_shape=jax.ShapeDtypeStruct((N, HoWo, cout_p), jnp.float32),
        grid=(N,),
        in_specs=in_specs,
        out_specs=pl.BlockSpec((1, HoWo, cout_p), lambda n: (n, 0, 0)),
        scratch_shapes=[pltpu.VMEM((Hs, Wp, cmid_p), jnp.bfloat16)],
        compiler_params=pltpu.CompilerParams(**cp_kwargs),
        cost_estimate=cost,
    )(*inputs)

    out = out.reshape(N, Ho, Wo, cout_p)
    out_planes = params["out_planes"]
    if cout_p != out_planes:
        out = out[..., :out_planes]
    return out


def bottleneck_forward(params, x_nchw):
    """PyTorch-interface wrapper (NCHW in / NCHW out)."""
    x = jnp.transpose(x_nchw, (0, 2, 3, 1))
    y = bottleneck_forward_nhwc(params, x)
    return jnp.transpose(y, (0, 3, 1, 2))


# ----------------------------------------------------------------------------
# Parameter initialization: deterministic synthetic weights, BN folded,
# channels zero-padded to lane multiples (128).
# ----------------------------------------------------------------------------
def _init_bn_folded(key, c, c_pad):
    k1, k2, k3, k4 = jax.random.split(key, 4)
    gamma = 1.0 + 0.1 * jax.random.normal(k1, (c,))
    beta = 0.1 * jax.random.normal(k2, (c,))
    mean = 0.1 * jax.random.normal(k3, (c,))
    var = 1.0 + 0.1 * jax.random.uniform(k4, (c,))
    scale = gamma / jnp.sqrt(var + BN_EPS)
    bias = beta - mean * scale
    scale = jnp.pad(scale, (0, c_pad - c))
    bias = jnp.pad(bias, (0, c_pad - c))          # padded channels stay exactly 0
    return scale.astype(jnp.float32), bias.astype(jnp.float32)


def _conv_w(key, kh, kw, cin, cout, cin_pad, cout_pad):
    std = (2.0 / (kh * kw * cin)) ** 0.5
    w = std * jax.random.normal(key, (kh, kw, cin, cout), jnp.float32)
    return jnp.pad(w, ((0, 0), (0, 0), (0, cin_pad - cin), (0, cout_pad - cout)))


def init_bottleneck(key, in_planes, planes, stride=1):
    out_planes = EXPANSION * planes
    cin_p = _pad_channels(in_planes)
    cmid_p = _pad_channels(planes)
    cout_p = _pad_channels(out_planes)
    ks = jax.random.split(key, 8)

    s1, b1 = _init_bn_folded(ks[1], planes, cmid_p)
    w1 = _conv_w(ks[0], 1, 1, in_planes, planes, cin_p, cmid_p)[0, 0] * s1[None, :]

    s2, b2 = _init_bn_folded(ks[3], planes, cmid_p)
    w2 = _conv_w(ks[2], 3, 3, planes, planes, cmid_p, cmid_p) * s2[None, None, None, :]
    w2 = w2.reshape(9, cmid_p, cmid_p)            # tap index = di * 3 + dj

    s3, b3 = _init_bn_folded(ks[5], out_planes, cout_p)
    w3 = _conv_w(ks[4], 1, 1, planes, out_planes, cmid_p, cout_p)[0, 0] * s3[None, :]

    params = {
        "stride": stride, "in_planes": in_planes, "planes": planes,
        "out_planes": out_planes,
        "w1": w1.astype(jnp.bfloat16), "b1": b1.reshape(1, -1),
        "w2": w2.astype(jnp.bfloat16), "b2": b2.reshape(1, -1),
        "w3": w3.astype(jnp.bfloat16), "b3": b3.reshape(1, -1),
    }
    if stride != 1 or in_planes != out_planes:
        sd, bd = _init_bn_folded(ks[7], out_planes, cout_p)
        wd = (_conv_w(ks[6], 1, 1, in_planes, out_planes, cin_p, cout_p)[0, 0]
              * sd[None, :])
        params["wd"] = wd.astype(jnp.bfloat16)
        params["bd"] = bd.reshape(1, -1)
    return params


# ----------------------------------------------------------------------------
# Pure-JAX reference mirroring the kernel's bf16-operand / f32-accumulate
# numerics (used only for validation in __main__).
# ----------------------------------------------------------------------------
def bottleneck_reference(params, x_nhwc):
    f32 = jnp.float32
    stride = params["stride"]
    cin_p = params["w1"].shape[0]
    cin = x_nhwc.shape[-1]
    if cin != cin_p:
        x_nhwc = jnp.pad(x_nhwc, ((0, 0), (0, 0), (0, 0), (0, cin_p - cin)))
    xb = x_nhwc.astype(jnp.bfloat16).astype(f32)

    w1 = params["w1"].astype(f32)
    y1 = jax.nn.relu(jnp.einsum("nhwc,cd->nhwd", xb, w1, precision="highest")
                     + params["b1"].astype(f32)[0])
    y1 = y1.astype(jnp.bfloat16).astype(f32)

    cmid = w1.shape[1]
    w2 = params["w2"].astype(f32).reshape(3, 3, cmid, cmid)
    y2 = jax.lax.conv_general_dilated(
        y1, w2, (stride, stride), ((1, 1), (1, 1)),
        dimension_numbers=("NHWC", "HWIO", "NHWC"),
        precision=jax.lax.Precision.HIGHEST)
    y2 = jax.nn.relu(y2 + params["b2"].astype(f32)[0])
    y2 = y2.astype(jnp.bfloat16).astype(f32)

    y3 = (jnp.einsum("nhwc,cd->nhwd", y2, params["w3"].astype(f32),
                     precision="highest") + params["b3"].astype(f32)[0])

    if "wd" in params:
        xs = xb[:, ::stride, ::stride, :]
        sc = (jnp.einsum("nhwc,cd->nhwd", xs, params["wd"].astype(f32),
                         precision="highest") + params["bd"].astype(f32)[0])
    else:
        sc = x_nhwc.astype(f32)
    out = jax.nn.relu(y3 + sc)
    return out[..., :params["out_planes"]]


# ----------------------------------------------------------------------------
if __name__ == "__main__":
    key = jax.random.PRNGKey(0)
    kp1, kp2, kx = jax.random.split(key, 3)

    # Block A: identity shortcut (in_planes == expansion*planes, stride=1)
    params_a = init_bottleneck(kp1, in_planes=128, planes=32, stride=1)
    # Block B: projection shortcut + stride 2
    params_b = init_bottleneck(kp2, in_planes=128, planes=64, stride=2)

    # Small NCHW input (PyTorch convention): batch=2, 128 channels, 16x16.
    x_nchw = jax.random.normal(kx, (2, 128, 16, 16), dtype=jnp.float32)

    # Blocks chain in NHWC; NCHW <-> NHWC only at the model boundary.
    x = jnp.transpose(x_nchw, (0, 2, 3, 1))
    y_a = bottleneck_forward_nhwc(params_a, x)           # (2, 16, 16, 128)
    y_b = bottleneck_forward_nhwc(params_b, y_a)         # (2,  8,  8, 256)
    y_a, y_b = jax.block_until_ready((y_a, y_b))

    ya_nchw = jnp.transpose(y_a, (0, 3, 1, 2))
    yb_nchw = jnp.transpose(y_b, (0, 3, 1, 2))
    assert ya_nchw.shape == (2, 128, 16, 16)             # identity-path block
    assert yb_nchw.shape == (2, 256, 8, 8)               # stride-2 projection block
    assert bool(jnp.all(y_a >= 0)) and bool(jnp.all(y_b >= 0))
    assert bool(jnp.all(jnp.isfinite(y_a))) and bool(jnp.all(jnp.isfinite(y_b)))

    # Numerical check against the pure-JAX reference (same bf16 rounding points).
    ref_a = bottleneck_reference(params_a, x)
    ref_b = bottleneck_reference(params_b, y_a)

    def _max_rel_err(a, b):
        return float(jnp.max(jnp.abs(a - b)) / (jnp.max(jnp.abs(b)) + 1e-6))

    err_a = _max_rel_err(y_a, ref_a)
    err_b = _max_rel_err(y_b, ref_b)
    assert err_a < 3e-2 and err_b < 3e-2, (err_a, err_b)

    print("KERNEL_OK")
</pallas_src>

<mosaic_0001>
module attributes {stable_mosaic.version = 11 : i64} {
  func.func @_bottleneck_kernel(%arg0: i32, %arg1: memref<1x256x128xf32, #tpu.memory_space<vmem>>, %arg2: memref<128x128xbf16, #tpu.memory_space<vmem>>, %arg3: memref<1x128xf32, #tpu.memory_space<vmem>>, %arg4: memref<9x128x128xbf16, #tpu.memory_space<vmem>>, %arg5: memref<1x128xf32, #tpu.memory_space<vmem>>, %arg6: memref<128x128xbf16, #tpu.memory_space<vmem>>, %arg7: memref<1x128xf32, #tpu.memory_space<vmem>>, %arg8: memref<1x256x128xf32, #tpu.memory_space<vmem>>, %arg9: memref<20x32x128xbf16, #tpu.memory_space<vmem>>) attributes {dimension_semantics = [#tpu.dimension_semantics<parallel>], iteration_bounds = array<i64: 2>, scalar_prefetch = 0 : i64, scratch_operands = 1 : i64, tpu.core_type = #tpu.core_type<tc>, window_params = [{transform_indices = @transform_0, window_bounds = array<i64: 1, 256, 128>}, {pipeline_mode = #tpu.pipeline_mode<synchronous>, transform_indices = @transform_1, window_bounds = array<i64: 128, 128>}, {pipeline_mode = #tpu.pipeline_mode<synchronous>, transform_indices = @transform_2, window_bounds = array<i64: 1, 128>}, {pipeline_mode = #tpu.pipeline_mode<synchronous>, transform_indices = @transform_3, window_bounds = array<i64: 9, 128, 128>}, {pipeline_mode = #tpu.pipeline_mode<synchronous>, transform_indices = @transform_4, window_bounds = array<i64: 1, 128>}, {pipeline_mode = #tpu.pipeline_mode<synchronous>, transform_indices = @transform_5, window_bounds = array<i64: 128, 128>}, {pipeline_mode = #tpu.pipeline_mode<synchronous>, transform_indices = @transform_6, window_bounds = array<i64: 1, 128>}, {transform_indices = @transform_7, window_bounds = array<i64: 1, 256, 128>}]} {
    %c0 = arith.constant 0 : index
    %c0_0 = arith.constant 0 : index
    %c0_1 = arith.constant 0 : index
    %0 = vector.load %arg1[%c0, %c0_0, %c0_1] : memref<1x256x128xf32, #tpu.memory_space<vmem>>, vector<1x256x128xf32>
    %1 = vector.shape_cast %0 : vector<1x256x128xf32> to vector<256x128xf32>
    %2 = arith.truncf %1 : vector<256x128xf32> to vector<256x128xbf16>
    %c0_2 = arith.constant 0 : index
    %c0_3 = arith.constant 0 : index
    %3 = vector.load %arg2[%c0_2, %c0_3] : memref<128x128xbf16, #tpu.memory_space<vmem>>, vector<128x128xbf16>
    %cst = arith.constant dense<0.000000e+00> : vector<256x128xf32>
    %4 = tpu.matmul %2, %3, %cst {dimension_numbers = #tpu.dot_dimension_numbers<[1], [0], [0], [1], [0, 0, 1, 1], [], []>} : vector<256x128xbf16>, vector<128x128xbf16>, vector<256x128xf32> -> vector<256x128xf32>
    %c0_4 = arith.constant 0 : index
    %c0_5 = arith.constant 0 : index
    %5 = vector.load %arg3[%c0_4, %c0_5] : memref<1x128xf32, #tpu.memory_space<vmem>>, vector<1x128xf32>
    %6 = vector.broadcast %5 : vector<1x128xf32> to vector<256x128xf32>
    %7 = arith.addf %4, %6 : vector<256x128xf32>
    %cst_6 = arith.constant 0.000000e+00 : f32
    %8 = vector.broadcast %cst_6 : f32 to vector<256x128xf32>
    %9 = arith.maximumf %7, %8 : vector<256x128xf32>
    %10 = arith.truncf %9 : vector<256x128xf32> to vector<256x128xbf16>
    %cst_7 = arith.constant 0.000000e+00 : bf16
    %11 = vector.broadcast %cst_7 : bf16 to vector<20x32x128xbf16>
    %c0_8 = arith.constant 0 : index
    %c0_9 = arith.constant 0 : index
    %c0_10 = arith.constant 0 : index
    %12 = vector.load %arg9[%c0_8, %c0_9, %c0_10] : memref<20x32x128xbf16, #tpu.memory_space<vmem>>, vector<20x32x128xbf16>
    tpu.vector_store %arg9[%c0_8, %c0_9, %c0_10], %11 {strides = array<i32>} : memref<20x32x128xbf16, #tpu.memory_space<vmem>>, vector<20x32x128xbf16>,
    %13 = vector.shape_cast %10 : vector<256x128xbf16> to vector<16x16x128xbf16>
    %c2 = arith.constant 2 : index
    %c0_11 = arith.constant 0 : index
    %c0_12 = arith.constant 0 : index
    %14 = vector.load %arg9[%c2, %c0_11, %c0_12] : memref<20x32x128xbf16, #tpu.memory_space<vmem>>, vector<16x16x128xbf16>
    tpu.vector_store %arg9[%c2, %c0_11, %c0_12], %13 {strides = array<i32>} : memref<20x32x128xbf16, #tpu.memory_space<vmem>>, vector<16x16x128xbf16>,
    %c0_13 = arith.constant 0 : index
    %c0_14 = arith.constant 0 : index
    %c0_15 = arith.constant 0 : index
    %15 = vector.load %arg9[%c0_13, %c0_14, %c0_15] : memref<20x32x128xbf16, #tpu.memory_space<vmem>>, vector<20x32x128xbf16>
    %16 = vector.shape_cast %15 : vector<20x32x128xbf16> to vector<640x128xbf16>
    %cst_16 = arith.constant 0.000000e+00 : f32
    %17 = vector.broadcast %cst_16 : f32 to vector<512x128xf32>
    %18 = vector.extract_strided_slice %16 {offsets = [31, 0], sizes = [576, 128], strides = [1, 1]} : vector<640x128xbf16> to vector<576x128xbf16>
    %19 = vector.extract_strided_slice %18 {offsets = [0, 0], sizes = [512, 128], strides = [1, 1]} : vector<576x128xbf16> to vector<512x128xbf16>
    %c0_17 = arith.constant 0 : index
    %c0_18 = arith.constant 0 : index
    %c0_19 = arith.constant 0 : index
    %20 = vector.load %arg4[%c0_17, %c0_18, %c0_19] : memref<9x128x128xbf16, #tpu.memory_space<vmem>>, vector<1x128x128xbf16>
    %21 = vector.shape_cast %20 : vector<1x128x128xbf16> to vector<128x128xbf16>
    %cst_20 = arith.constant dense<0.000000e+00> : vector<512x128xf32>
    %22 = tpu.matmul %19, %21, %cst_20 {dimension_numbers = #tpu.dot_dimension_numbers<[1], [0], [0], [1], [0, 0, 1, 1], [], []>} : vector<512x128xbf16>, vector<128x128xbf16>, vector<512x128xf32> -> vector<512x128xf32>
    %23 = arith.addf %17, %22 : vector<512x128xf32>
    %24 = vector.extract_strided_slice %18 {offsets = [32, 0], sizes = [512, 128], strides = [1, 1]} : vector<576x128xbf16> to vector<512x128xbf16>
    %c3 = arith.constant 3 : index
    %c0_21 = arith.constant 0 : index
    %c0_22 = arith.constant 0 : index
    %25 = vector.load %arg4[%c3, %c0_21, %c0_22] : memref<9x128x128xbf16, #tpu.memory_space<vmem>>, vector<1x128x128xbf16>
    %26 = vector.shape_cast %25 : vector<1x128x128xbf16> to vector<128x128xbf16>
    %cst_23 = arith.constant dense<0.000000e+00> : vector<512x128xf32>
    %27 = tpu.matmul %24, %26, %cst_23 {dimension_numbers = #tpu.dot_dimension_numbers<[1], [0], [0], [1], [0, 0, 1, 1], [], []>} : vector<512x128xbf16>, vector<128x128xbf16>, vector<512x128xf32> -> vector<512x128xf32>
    %28 = arith.addf %23, %27 : vector<512x128xf32>
    %29 = vector.extract_strided_slice %18 {offsets = [64, 0], sizes = [512, 128], strides = [1, 1]} : vector<576x128xbf16> to vector<512x128xbf16>
    %c6 = arith.constant 6 : index
    %c0_24 = arith.constant 0 : index
    %c0_25 = arith.constant 0 : index
    %30 = vector.load %arg4[%c6, %c0_24, %c0_25] : memref<9x128x128xbf16, #tpu.memory_space<vmem>>, vector<1x128x128xbf16>
    %31 = vector.shape_cast %30 : vector<1x128x128xbf16> to vector<128x128xbf16>
    %cst_26 = arith.constant dense<0.000000e+00> : vector<512x128xf32>
    %32 = tpu.matmul %29, %31, %cst_26 {dimension_numbers = #tpu.dot_dimension_numbers<[1], [0], [0], [1], [0, 0, 1, 1], [], []>} : vector<512x128xbf16>, vector<128x128xbf16>, vector<512x128xf32> -> vector<512x128xf32>
    %33 = arith.addf %28, %32 : vector<512x128xf32>
    %34 = vector.extract_strided_slice %16 {offsets = [32, 0], sizes = [576, 128], strides = [1, 1]} : vector<640x128xbf16> to vector<576x128xbf16>
    %35 = vector.extract_strided_slice %34 {offsets = [0, 0], sizes = [512, 128], strides = [1, 1]} : vector<576x128xbf16> to vector<512x128xbf16>
    %c1 = arith.constant 1 : index
    %c0_27 = arith.constant 0 : index
    %c0_28 = arith.constant 0 : index
    %36 = vector.load %arg4[%c1, %c0_27, %c0_28] : memref<9x128x128xbf16, #tpu.memory_space<vmem>>, vector<1x128x128xbf16>
    %37 = vector.shape_cast %36 : vector<1x128x128xbf16> to vector<128x128xbf16>
    %cst_29 = arith.constant dense<0.000000e+00> : vector<512x128xf32>
    %38 = tpu.matmul %35, %37, %cst_29 {dimension_numbers = #tpu.dot_dimension_numbers<[1], [0], [0], [1], [0, 0, 1, 1], [], []>} : vector<512x128xbf16>, vector<128x128xbf16>, vector<512x128xf32> -> vector<512x128xf32>
    %39 = arith.addf %33, %38 : vector<512x128xf32>
    %40 = vector.extract_strided_slice %34 {offsets = [32, 0], sizes = [512, 128], strides = [1, 1]} : vector<576x128xbf16> to vector<512x128xbf16>
    %c4 = arith.constant 4 : index
    %c0_30 = arith.constant 0 : index
    %c0_31 = arith.constant 0 : index
    %41 = vector.load %arg4[%c4, %c0_30, %c0_31] : memref<9x128x128xbf16, #tpu.memory_space<vmem>>, vector<1x128x128xbf16>
    %42 = vector.shape_cast %41 : vector<1x128x128xbf16> to vector<128x128xbf16>
    %cst_32 = arith.constant dense<0.000000e+00> : vector<512x128xf32>
    %43 = tpu.matmul %40, %42, %cst_32 {dimension_numbers = #tpu.dot_dimension_numbers<[1], [0], [0], [1], [0, 0, 1, 1], [], []>} : vector<512x128xbf16>, vector<128x128xbf16>, vector<512x128xf32> -> vector<512x128xf32>
    %44 = arith.addf %39, %43 : vector<512x128xf32>
    %45 = vector.extract_strided_slice %34 {offsets = [64, 0], sizes = [512, 128], strides = [1, 1]} : vector<576x128xbf16> to vector<512x128xbf16>
    %c7 = arith.constant 7 : index
    %c0_33 = arith.constant 0 : index
    %c0_34 = arith.constant 0 : index
    %46 = vector.load %arg4[%c7, %c0_33, %c0_34] : memref<9x128x128xbf16, #tpu.memory_space<vmem>>, vector<1x128x128xbf16>
    %47 = vector.shape_cast %46 : vector<1x128x128xbf16> to vector<128x128xbf16>
    %cst_35 = arith.constant dense<0.000000e+00> : vector<512x128xf32>
    %48 = tpu.matmul %45, %47, %cst_35 {dimension_numbers = #tpu.dot_dimension_numbers<[1], [0], [0], [1], [0, 0, 1, 1], [], []>} : vector<512x128xbf16>, vector<128x128xbf16>, vector<512x128xf32> -> vector<512x128xf32>
    %49 = arith.addf %44, %48 : vector<512x128xf32>
    %50 = vector.extract_strided_slice %16 {offsets = [33, 0], sizes = [576, 128], strides = [1, 1]} : vector<640x128xbf16> to vector<576x128xbf16>
    %51 = vector.extract_strided_slice %50 {offsets = [0, 0], sizes = [512, 128], strides = [1, 1]} : vector<576x128xbf16> to vector<512x128xbf16>
    %c2_36 = arith.constant 2 : index
    %c0_37 = arith.constant 0 : index
    %c0_38 = arith.constant 0 : index
    %52 = vector.load %arg4[%c2_36, %c0_37, %c0_38] : memref<9x128x128xbf16, #tpu.memory_space<vmem>>, vector<1x128x128xbf16>
    %53 = vector.shape_cast %52 : vector<1x128x128xbf16> to vector<128x128xbf16>
    %cst_39 = arith.constant dense<0.000000e+00> : vector<512x128xf32>
    %54 = tpu.matmul %51, %53, %cst_39 {dimension_numbers = #tpu.dot_dimension_numbers<[1], [0], [0], [1], [0, 0, 1, 1], [], []>} : vector<512x128xbf16>, vector<128x128xbf16>, vector<512x128xf32> -> vector<512x128xf32>
    %55 = arith.addf %49, %54 : vector<512x128xf32>
    %56 = vector.extract_strided_slice %50 {offsets = [32, 0], sizes = [512, 128], strides = [1, 1]} : vector<576x128xbf16> to vector<512x128xbf16>
    %c5 = arith.constant 5 : index
    %c0_40 = arith.constant 0 : index
    %c0_41 = arith.constant 0 : index
    %57 = vector.load %arg4[%c5, %c0_40, %c0_41] : memref<9x128x128xbf16, #tpu.memory_space<vmem>>, vector<1x128x128xbf16>
    %58 = vector.shape_cast %57 : vector<1x128x128xbf16> to vector<128x128xbf16>
    %cst_42 = arith.constant dense<0.000000e+00> : vector<512x128xf32>
    %59 = tpu.matmul %56, %58, %cst_42 {dimension_numbers = #tpu.dot_dimension_numbers<[1], [0], [0], [1], [0, 0, 1, 1], [], []>} : vector<512x128xbf16>, vector<128x128xbf16>, vector<512x128xf32> -> vector<512x128xf32>
    %60 = arith.addf %55, %59 : vector<512x128xf32>
    %61 = vector.extract_strided_slice %50 {offsets = [64, 0], sizes = [512, 128], strides = [1, 1]} : vector<576x128xbf16> to vector<512x128xbf16>
    %c8 = arith.constant 8 : index
    %c0_43 = arith.constant 0 : index
    %c0_44 = arith.constant 0 : index
    %62 = vector.load %arg4[%c8, %c0_43, %c0_44] : memref<9x128x128xbf16, #tpu.memory_space<vmem>>, vector<1x128x128xbf16>
    %63 = vector.shape_cast %62 : vector<1x128x128xbf16> to vector<128x128xbf16>
    %cst_45 = arith.constant dense<0.000000e+00> : vector<512x128xf32>
    %64 = tpu.matmul %61, %63, %cst_45 {dimension_numbers = #tpu.dot_dimension_numbers<[1], [0], [0], [1], [0, 0, 1, 1], [], []>} : vector<512x128xbf16>, vector<128x128xbf16>, vector<512x128xf32> -> vector<512x128xf32>
    %65 = arith.addf %60, %64 : vector<512x128xf32>
    %c0_46 = arith.constant 0 : index
    %c0_47 = arith.constant 0 : index
    %66 = vector.load %arg5[%c0_46, %c0_47] : memref<1x128xf32, #tpu.memory_space<vmem>>, vector<1x128xf32>
    %67 = vector.broadcast %66 : vector<1x128xf32> to vector<512x128xf32>
    %68 = arith.addf %65, %67 : vector<512x128xf32>
    %cst_48 = arith.constant 0.000000e+00 : f32
    %69 = vector.broadcast %cst_48 : f32 to vector<512x128xf32>
    %70 = arith.maximumf %68, %69 : vector<512x128xf32>
    %71 = arith.truncf %70 : vector<512x128xf32> to vector<512x128xbf16>
    %72 = vector.shape_cast %71 : vector<512x128xbf16> to vector<16x32x128xbf16>
    %73 = vector.extract_strided_slice %72 {offsets = [0, 0, 0], sizes = [16, 16, 128], strides = [1, 1, 1]} : vector<16x32x128xbf16> to vector<16x16x128xbf16>
    %74 = vector.shape_cast %73 : vector<16x16x128xbf16> to vector<256x128xbf16>
    %c0_49 = arith.constant 0 : index
    %c0_50 = arith.constant 0 : index
    %75 = vector.load %arg6[%c0_49, %c0_50] : memref<128x128xbf16, #tpu.memory_space<vmem>>, vector<128x128xbf16>
    %cst_51 = arith.constant dense<0.000000e+00> : vector<256x128xf32>
    %76 = tpu.matmul %74, %75, %cst_51 {dimension_numbers = #tpu.dot_dimension_numbers<[1], [0], [0], [1], [0, 0, 1, 1], [], []>} : vector<256x128xbf16>, vector<128x128xbf16>, vector<256x128xf32> -> vector<256x128xf32>
    %c0_52 = arith.constant 0 : index
    %c0_53 = arith.constant 0 : index
    %77 = vector.load %arg7[%c0_52, %c0_53] : memref<1x128xf32, #tpu.memory_space<vmem>>, vector<1x128xf32>
    %78 = vector.broadcast %77 : vector<1x128xf32> to vector<256x128xf32>
    %79 = arith.addf %76, %78 : vector<256x128xf32>
    %80 = arith.addf %79, %1 : vector<256x128xf32>
    %cst_54 = arith.constant 0.000000e+00 : f32
    %81 = vector.broadcast %cst_54 : f32 to vector<256x128xf32>
    %82 = arith.maximumf %80, %81 : vector<256x128xf32>
    %c0_55 = arith.constant 0 : index
    %c0_56 = arith.constant 0 : index
    %c0_57 = arith.constant 0 : index
    %83 = vector.load %arg8[%c0_55, %c0_56, %c0_57] : memref<1x256x128xf32, #tpu.memory_space<vmem>>, vector<1x256x128xf32>
    %84 = vector.shape_cast %83 : vector<1x256x128xf32> to vector<256x128xf32>
    %85 = vector.shape_cast %82 : vector<256x128xf32> to vector<1x256x128xf32>
    tpu.vector_store %arg8[%c0_55, %c0_56, %c0_57], %85 {strides = array<i32>} : memref<1x256x128xf32, #tpu.memory_space<vmem>>, vector<1x256x128xf32>,
    return
  }
  func.func @transform_0(%arg0: i32) -> (i32, i32, i32) {
    %c0_i32 = arith.constant 0 : i32
    %c0_i32_0 = arith.constant 0 : i32
    %c0_i32_1 = arith.constant 0 : i32
    return %arg0, %c0_i32, %c0_i32_0 : i32, i32, i32
  }
  func.func @transform_1(%arg0: i32) -> (i32, i32) {
    %c0_i32 = arith.constant 0 : i32
    %c0_i32_0 = arith.constant 0 : i32
    %c0_i32_1 = arith.constant 0 : i32
    return %c0_i32, %c0_i32_0 : i32, i32
  }
  func.func @transform_2(%arg0: i32) -> (i32, i32) {
    %c0_i32 = arith.constant 0 : i32
    %c0_i32_0 = arith.constant 0 : i32
    %c0_i32_1 = arith.constant 0 : i32
    return %c0_i32, %c0_i32_0 : i32, i32
  }
  func.func @transform_3(%arg0: i32) -> (i32, i32, i32) {
    %c0_i32 = arith.constant 0 : i32
    %c0_i32_0 = arith.constant 0 : i32
    %c0_i32_1 = arith.constant 0 : i32
    %c0_i32_2 = arith.constant 0 : i32
    return %c0_i32, %c0_i32_0, %c0_i32_1 : i32, i32, i32
  }
  func.func @transform_4(%arg0: i32) -> (i32, i32) {
    %c0_i32 = arith.constant 0 : i32
    %c0_i32_0 = arith.constant 0 : i32
    %c0_i32_1 = arith.constant 0 : i32
    return %c0_i32, %c0_i32_0 : i32, i32
  }
  func.func @transform_5(%arg0: i32) -> (i32, i32) {
    %c0_i32 = arith.constant 0 : i32
    %c0_i32_0 = arith.constant 0 : i32
    %c0_i32_1 = arith.constant 0 : i32
    return %c0_i32, %c0_i32_0 : i32, i32
  }
  func.func @transform_6(%arg0: i32) -> (i32, i32) {
    %c0_i32 = arith.constant 0 : i32
    %c0_i32_0 = arith.constant 0 : i32
    %c0_i32_1 = arith.constant 0 : i32
    return %c0_i32, %c0_i32_0 : i32, i32
  }
  func.func @transform_7(%arg0: i32) -> (i32, i32, i32) {
    %c0_i32 = arith.constant 0 : i32
    %c0_i32_0 = arith.constant 0 : i32
    %c0_i32_1 = arith.constant 0 : i32
    return %arg0, %c0_i32, %c0_i32_0 : i32, i32, i32
  }
}

</mosaic_0001>

<bundles_post_ra>
// kernel: tpu_custom_call.1
= control target key start
LH: loop header
LB: loop body
LE: loop exit
PB: predicated region body
PF: predicated region fallthrough
CT: control target
= control target key end

     0   :  { %12 = vsyncpa [#allocation4], 0  ;;  %s8311_s0 = inlined_call_operand.hbm [shape: f32[2,256,128], index: 0, kind: input, shape index: {}]   ;;  %s8312_s1 = inlined_call_operand.hbm [shape: bf16[128,128], index: 1, kind: input, shape index: {}]   ;;  %s8313_s2 = inlined_call_operand.vmem [shape: f32[1,128], index: 2, kind: input, shape index: {}]   ;;  %s8314_s3 = inlined_call_operand.hbm [shape: bf16[9,128,128], index: 3, kind: input, shape index: {}]   ;;  %s8315_s4 = inlined_call_operand.vmem [shape: f32[1,128], index: 4, kind: input, shape index: {}]   ;;  %s8316_s5 = inlined_call_operand.hbm [shape: bf16[128,128], index: 5, kind: input, shape index: {}]   ;;  %s8317_s6 = inlined_call_operand.vmem [shape: f32[1,128], index: 6, kind: input, shape index: {}]   ;;  %s8318_s7 = inlined_call_operand.hbm [shape: f32[2,256,128], index: 7, kind: output, shape index: {}]  }
   0x1   :  { %14 = vsyncpa [#allocation4 + $0x1], 0 }
   0x2   :  { %15 = vsyncpa [#allocation7], 0 }
   0x3   :  { %16 = vsyncpa [#allocation10], 0 }
   0x4   :  { %17 = vsyncpa [#allocation5], 0 }
   0x5   :  { %19 = vsyncpa [#allocation5 + $0x1], 0  ;;  %s6678_s24 = smov 0   ;;  %s6680_s25 = smov 0  }
   0x6   :  { %s6682_s26 = smov 0   ;;  %s6684_s27 = smov 0  }
   0x7 LB: > { %s6699_s28 = sadd.s32 4294967295, %s6624_s27   ;;  %s4895_s29 = sadd.s32 4294967294, %s6624_s27   ;;  %s6624_s27 = sphi %s6684_s27, %s8480_s27   ;;  %s6620_s26 = sphi %s6682_s26, %s8479_s26   ;;  %s6616_s25 = sphi %s6680_s25, %s8478_s25   ;;  %s6612_s24 = sphi %s6678_s24, %s8477_s24  }
   0x8   : > { %p45_p0 = scmp.ne.s32.totalorder %s6616_s25, %s6612_s24  ;;  %p8319_p1 = scmp.eq.s32.totalorder %s6699_s28, 0 }
   0x9   : > { %p201_p3 = scmp.eq.s32.totalorder %s4895_s29, 1  ;;  %p4896_p5 = scmp.ge.s32.totalorder %s6624_s27, 1 }
   0xa   : > { %p6708_p4 = por %p8319_p1, %p45_p0  ;;  %p208_p7 = scmp.lt.s32.totalorder %s6624_s27, 3 }
   0xb   : > { %p6713_p6 = por %p201_p3, %p45_p0  ;;  %s6626_s10 = smov [#allocation6]  }
   0xc   : > { %s8362_s30 = scalar_select %p6708_p4, 1, 0 }
   0xd   : > { %s8363_s8 = scalar_select %p6713_p6, 1, 0 }
   0xe   : > { %p6718_p8 = pnand %p4896_p5, %p208_p7  ;;  %s220_s11 = sshll.u32 %s6626_s10, 4  ;;  %s6722_s11 = int_to_ptr.vmem [resolvable:$true] %s220_s11 }
   0xf   : > { %8364 = sst [smem:[#allocation16_spill]] %s8363_s8  ;;  %s6627_s13 = smov [#allocation8]  }
  0x10   : > { %s8365_s9 = scalar_select %p6718_p8, 1, 0 }
  0x11   : > { %p6248_p9 = pneg %p6718_p8  ;;  %s236_s14 = sshll.u32 %s6627_s13, 4  ;;  %s6733_s14 = int_to_ptr.vmem [resolvable:$true] %s236_s14 }
  0x12   : > { %s6628_s15 = smov [#allocation9]   ;;  %s6436_s19 = scalar_lea.hbm %s8312_s1, 1024 }
  0x13   : > { %p6729_p11 = pnand %p6248_p9, %p8319_p1  ;;  %s6735_s16 = sshll.u32 %s6628_s15, 4  ;;  %s253_s16 = int_to_ptr.vmem [resolvable:$true] %s6735_s16 }
  0x14   : > { %p6437_p12 = scmp.ne.s32.totalorder %s8312_s1, %s6436_s19  ;;  %p6443_p5 = scmp.lt.u32.totalorder %s6436_s19, %s8312_s1 }
  0x15   : > { %p6745_p13 = pneg %p6729_p11 }
  0x17   : > { %p6439_p0 = pnand %p6745_p13, %p6437_p12 }
  0x19   : > { %p6440_p3 = pneg %p6439_p0 }
  0x1b   : > { %p6445_p7 = pnand %p6443_p5, %p6440_p3 }
  0x1d   : > { %6448 = shalt.err (!%p6445_p7)
}
  0x1e   : > { %s6449_s10 = scalar_lea.vmem %s6722_s11, 1024  ;;  %p6457_p2 = scmp.lt.s32.totalorder %s6722_s11, %s6722_s11 }
  0x1f   : > { %p6450_p9 = scmp.ne.s32.totalorder %s6722_s11, %s6449_s10  ;;  %p6458_p6 = scmp.lt.s32.totalorder %s6449_s10, %s6449_s10 }
  0x21   : > { %p6452_p10 = pnand %p6450_p9, %p6745_p13  ;;  %p6459_p12 = por %p6458_p6, %p6457_p2 }
  0x23   : > { %p6453_p1 = pneg %p6452_p10 }
  0x25   : > { %p6460_p0 = pnand %p6459_p12, %p6453_p1 }
  0x27   : > { %6463 = shalt.err (!%p6460_p0)
}
  0x28   : > { %s6629_s13 = smov 64   ;;  %s6630_s15 = smov 4  }
  0x29   : > { %6251 = dma.hbm_to_vmem [thread:$0]  (!%p6729_p11), %s8312_s1, 1024, %s6722_s11, [#allocation7], %s6629_s13, %s6629_s13, %s6630_s15  }
  0x2a   : > { %s6464_s21 = scalar_lea.hbm %s8314_s3, 9216 }
  0x2b   : > { %p6465_p1 = scmp.ne.s32.totalorder %s8314_s3, %s6464_s21  ;;  %p6471_p10 = scmp.lt.u32.totalorder %s6464_s21, %s8314_s3 }
  0x2d   : > { %p6467_p2 = pnand %p6465_p1, %p6745_p13 }
  0x2f   : > { %p6468_p6 = pneg %p6467_p2 }
  0x31   : > { %p6473_p3 = pnand %p6471_p10, %p6468_p6 }
  0x33   : > { %6476 = shalt.err (!%p6473_p3)
}
  0x34   : > { %s6477_s11 = scalar_lea.vmem %s6733_s14, 9216  ;;  %p6485_p12 = scmp.lt.s32.totalorder %s6733_s14, %s6733_s14 }
  0x35   : > { %p6478_p5 = scmp.ne.s32.totalorder %s6733_s14, %s6477_s11  ;;  %p6486_p0 = scmp.lt.s32.totalorder %s6477_s11, %s6477_s11 }
  0x37   : > { %p6480_p7 = pnand %p6478_p5, %p6745_p13  ;;  %p6487_p1 = por %p6486_p0, %p6485_p12 }
  0x39   : > { %p6481_p9 = pneg %p6480_p7 }
  0x3b   : > { %p6488_p2 = pnand %p6487_p1, %p6481_p9 }
  0x3d   : > { %6491 = shalt.err (!%p6488_p2)
}
  0x3e   : > { %6254 = dma.hbm_to_vmem [thread:$0]  (!%p6729_p11), %s8314_s3, 9216, %s6733_s14, [#allocation7], %s6629_s13, %s6629_s13, %s6630_s15  }
  0x3f   : > { %s6492_s20 = scalar_lea.hbm %s8316_s5, 1024 }
  0x40   : > { %p6493_p6 = scmp.ne.s32.totalorder %s8316_s5, %s6492_s20  ;;  %p6499_p5 = scmp.lt.u32.totalorder %s6492_s20, %s8316_s5 }
  0x42   : > { %p6495_p10 = pnand %p6493_p6, %p6745_p13 }
  0x44   : > { %p6496_p3 = pneg %p6495_p10 }
  0x46   : > { %p6501_p7 = pnand %p6499_p5, %p6496_p3 }
  0x48   : > { %6504 = shalt.err (!%p6501_p7)
}
  0x49   : > { %s6505_s11 = scalar_lea.vmem %s253_s16, 1024  ;;  %p6513_p1 = scmp.lt.s32.totalorder %s253_s16, %s253_s16 }
  0x4a   : > { %p6506_p9 = scmp.ne.s32.totalorder %s253_s16, %s6505_s11  ;;  %p6514_p2 = scmp.lt.s32.totalorder %s6505_s11, %s6505_s11 }
  0x4c   : > { %p6508_p12 = pnand %p6506_p9, %p6745_p13  ;;  %p6515_p4 = por %p6514_p2, %p6513_p1 }
  0x4e   : > { %p6509_p0 = pneg %p6508_p12 }
  0x50   : > { %p6516_p8 = pnand %p6515_p4, %p6509_p0 }
  0x52   : > { %6519 = shalt.err (!%p6516_p8)
}
  0x53   : > { %6257 = dma.hbm_to_vmem [thread:$0]  (!%p6729_p11), %s8316_s5, 1024, %s253_s16, [#allocation10], %s6629_s13, %s6629_s13, %s6630_s15  }
  0x54   : > { %s6818_s22 = sadd.s32 1, %s6624_s27   ;;  %s32_s17 = sadd.s32 1, %s6620_s26 }
  0x55   : > { %s29_s12 = ssub.s32 %s6624_s27, %s6818_s22  ;;  %p39_p8 = scmp.ne.s32.totalorder %s6620_s26, %s6616_s25 }
  0x56   : > { %p30_p4 = scmp.eq.s32.totalorder %s29_s12, 0  ;;  %p40_p13 = scmp.eq.s32.totalorder %s6624_s27, 0 }
  0x57   : > { %p6269_p6 = scmp.lt.s32.totalorder %s6624_s27, 2  ;;  %p8368_p3 = scmp.eq.s32.totalorder %s6699_s28, 1 }
  0x58   : > { %s6828_s18 = scalar_select %p30_p4, %s6620_s26, %s32_s17  }
  0x59   : > { %p41_p10 = por %p40_p13, %p39_p8  ;;  %p6832_p5 = por %p8368_p3, %p39_p8 }
  0x5a   : > { %s269_s20 = sand.u32 1, %s6620_s26   ;;  %s5006_s21 = sshll.u32 %s6624_s27, 12 }
  0x5b   : > { %s4901_s16 = sshll.u32 %s269_s20, 8  ;;  %s6841_s23 = scalar_lea.hbm %s8311_s0, %s5006_s21 }
  0x5c   : > { %s273_s29 = scalar_lea.vmem [#allocation3], %s4901_s16  ;;  %p6843_p11 = pnand %p6269_p6, %p41_p10 }
  0x5d   : > { %s280_s10 = sshll.u32 %s273_s29, 4  ;;  %s6849_s14 = scalar_lea.sflag [#allocation4], %s269_s20  ;;  %s6847_s10 = int_to_ptr.vmem [resolvable:$true] %s280_s10 }
  0x5e   : > { %s6520_s8 = scalar_lea.hbm %s6841_s23, 4096  ;;  %p6522_p9 = pneg %p6843_p11 }
  0x5f   : > { %p6521_p7 = scmp.ne.s32.totalorder %s6841_s23, %s6520_s8  ;;  %s6525_s21 = scalar_lea.hbm %s8311_s0, 8192 }
  0x60   : > { %p6526_p1 = scmp.lt.u32.totalorder %s6841_s23, %s8311_s0  ;;  %p6527_p2 = scmp.lt.u32.totalorder %s6525_s21, %s6520_s8 }
  0x61   : > { %p6523_p12 = pnand %p6522_p9, %p6521_p7  ;;  %p6529_p8 = scmp.lt.u32.totalorder %s6520_s8, %s6841_s23 }
  0x62   : > { %p6528_p4 = por %p6527_p2, %p6526_p1 }
  0x63   : > { %p6524_p0 = pneg %p6523_p12 }
  0x64   : > { %p6530_p13 = por %p6529_p8, %p6528_p4 }
  0x66   : > { %p6531_p6 = pnand %p6530_p13, %p6524_p0 }
  0x68   : > { %6534 = shalt.err (!%p6531_p6)
}
  0x69   : > { %s6535_s20 = scalar_lea.vmem %s6847_s10, 4096  ;;  %s6631_s15 = smov [#allocation3]  }
  0x6a   : > { %p6536_p10 = scmp.ne.s32.totalorder %s6847_s10, %s6535_s20  ;;  %s6540_s29 = sshll.u32 %s6631_s15, 4  ;;  %s6541_s29 = int_to_ptr.vmem [resolvable:$false] %s6540_s29 }
  0x6b   : > { %s6542_s12 = scalar_lea.vmem %s6541_s29, 8192  ;;  %p6543_p12 = scmp.lt.s32.totalorder %s6847_s10, %s6541_s29 }
  0x6c   : > { %p6538_p3 = pnand %p6536_p10, %p6522_p9  ;;  %p6544_p1 = scmp.lt.s32.totalorder %s6542_s12, %s6535_s20 }
  0x6e   : > { %p6539_p7 = pneg %p6538_p3  ;;  %p6545_p2 = por %p6544_p1, %p6543_p12 }
  0x70   : > { %p6546_p4 = pnand %p6545_p2, %p6539_p7 }
  0x72   : > { %6549 = shalt.err (!%p6546_p4)
}
  0x73   : > { %s6632_s8 = smov 128   ;;  %s6633_s17 = smov 8  }
  0x74   : > { %6261 = dma.hbm_to_vmem [thread:$0]  (!%p6843_p11), %s6841_s23, 4096, %s6847_s10, %s6849_s14, %s6632_s8, %s6632_s8, %s6633_s17  }
  0x75   : > { %p8371_p9 = scmp.ne.s32.totalorder %s8365_s9, 0 }
  0x77   : > { %292 = sbr.rel (%p8371_p9) target bundleno = 1490 (0x5d2), region = 48 }
  0x7e   : > { %s6880_s21 = sand.u32 1, %s6616_s25   ;;  %p8372_p0 = scmp.ne.s32.totalorder %s8362_s30, 0 }
  0x7f   : > { %s4905_s16 = sshll.u32 %s6880_s21, 8  ;;  %s295_s13 = scalar_lea.sflag [#allocation4], %s6880_s21 }
  0x80   : > { %s6886_s20 = scalar_lea.vmem [#allocation3], %s4905_s16 }
  0x81   : > { %6595 = dma.done.wait (%p8372_p0), %s295_s13, 4096  }
  0x82   : > { %6597 = vsyncadd (%p8372_p0), %s295_s13, 4294963200  ;;  %p8373_p11 = scmp.eq.s32.totalorder %s6699_s28, 0 }
  0x84   : > { %6599 = dma.done.wait (%p8373_p11), [#allocation7], 10240   ;;  %p8374_p8 = pmov %p8373_p11 }
  0x86   : > { %6601 = vsyncadd (%p8374_p8), [#allocation7], 4294957056  ;;  %p8375_p13 = pmov %p8374_p8 }
  0x87   : > { %p8376_p6 = pmov %p8374_p8 }
  0x88   : > { %6603 = dma.done.wait (%p8375_p13), [#allocation10], 1024  }
  0x89   : > { %6605 = vsyncadd (%p8376_p6), [#allocation10], 4294966272  ;;  %v6316_v0 = vld [vmem:[#allocation6] sm:$0xff]   ;;  %v6317_v1 = vld [vmem:[#allocation6 + $0x8] sm:$0xff]   ;;  %vm798_vm0 = vsmask.f32 256 }
  0x8a   : > { %5416 = vmatprep.subr.bf16.mxu0 %v6316_v0  ;;  %v6318_v2 = vld [vmem:[#allocation6 + $0x10] sm:$0xff]   ;;  %v6319_v3 = vld [vmem:[#allocation6 + $0x18] sm:$0xff]   ;;  %v342_v4 = vld [vmem:[%s6886_s20] sm:$0xff]  ;;  %vm3170_vm1 = vsmask.f32 7424  ;;  %s8170_s15 = scalar_lea.vmem [#allocation11], %s4905_s16 }
  0x8b   : > { %5417 = vmatpush3.bf16.msra.mxu0 %v6316_v0  ;;  %v343_v5 = vld [vmem:[%s6886_s20 + $0x8] sm:$0xff]  ;;  %v6320_v7 = vld [vmem:[#allocation6 + $0x20] sm:$0xff]   ;;  %v6322_v9 = vld [vmem:[#allocation6 + $0x30] sm:$0xff]   ;;  %s5007_s29 = sshll.u32 %s6699_s28, 12  ;;  %s4793_s12 = sshll.u32 %s8170_s15, 4  ;;  %s8264_s12 = int_to_ptr.vmem [resolvable:$true] %s4793_s12 }
  0x8c   : > { %5418 = vmatprep.subr.bf16.mxu0 %v6317_v1  ;;  %v374_v6 = vpack.c.bf16 %v343_v5, %v342_v4  ;;  %v6321_v8 = vld [vmem:[#allocation6 + $0x28] sm:$0xff]   ;;  %v6326_v10 = vld [vmem:[#allocation8 + $0xc0] sm:$0xff]   ;;  %v6323_v12 = vld [vmem:[#allocation6 + $0x38] sm:$0xff]   ;;  %s8262_s16 = scalar_lea.hbm %s8318_s7, %s5007_s29  ;;  %s4780_s28 = scalar_lea.sflag [#allocation5], %s6880_s21 }
  0x8d   : > { %5464 = vmatprep.subr.bf16.mxu1 %v6326_v10  ;;  %v6328_v11 = vld [vmem:[#allocation8 + $0xc8] sm:$0xff]   ;;  %v344_v13 = vld [vmem:[%s6886_s20 + $0x10] sm:$0xff]  ;;  %v345_v14 = vld [vmem:[%s6886_s20 + $0x18] sm:$0xff]  ;;  %s6550_s13 = scalar_lea.vmem %s8264_s12, 4096 }
  0x8e   : > { %5432 = vmatprep.mubr.bf16.mxu0 %v374_v6  ;;  %5465 = vmatpush3.bf16.msra.mxu1 %v6326_v10  ;;  %v6330_v15 = vld [vmem:[#allocation8 + $0xd0] sm:$0xff]   ;;  %v346_v16 = vld [vmem:[%s6886_s20 + $0x20] sm:$0xff]  ;;  %v347_v17 = vld [vmem:[%s6886_s20 + $0x28] sm:$0xff]  ;;  %v375_v20 = vpack.c.bf16 %v345_v14, %v344_v13  ;;  %v8323_v6 = vmov 0   ;;  %p6551_p10 = scmp.ne.s32.totalorder %s8264_s12, %s6550_s13 }
  0x8f   : > { %5419 = vmatpush3.bf16.msra.mxu0 %v6317_v1  ;;  %5466 = vmatprep.subr.bf16.mxu1 %v6328_v11  ;;  %v6324_v18 = vld [vmem:[#allocation8] sm:$0xff]   ;;  %v6332_v19 = vld [vmem:[#allocation8 + $0xd8] sm:$0xff]   ;;  %v6325_v21 = vld [vmem:[#allocation8 + $0x8] sm:$0xff]   ;;  %v376_v22 = vpack.c.bf16 %v347_v17, %v346_v16 }
  0x90   : > { %5420 = vmatprep.subr.bf16.mxu0 %v6318_v2  ;;  %v348_v23 = vld [vmem:[%s6886_s20 + $0x30] sm:$0xff]  ;;  %v349_v24 = vld [vmem:[%s6886_s20 + $0x38] sm:$0xff]  ;;  %v350_v25 = vld [vmem:[%s6886_s20 + $0x40] sm:$0xff]  ;;  %p6552_p3 = pnand %p6551_p10, %p6832_p5 }
  0x91   : > { %v351_v26 = vld [vmem:[%s6886_s20 + $0x48] sm:$0xff]  ;;  %v6327_v27 = vld [vmem:[#allocation8 + $0x10] sm:$0xff]   ;;  %v377_v28 = vpack.c.bf16 %v349_v24, %v348_v23  ;;  %v6329_v29 = vld [vmem:[#allocation8 + $0x18] sm:$0xff]  }
  0x92   : > { %5467 = vmatpush3.bf16.msra.mxu1 %v6328_v11  ;;  %v378_v30 = vpack.c.bf16 %v351_v26, %v350_v25  ;;  %v352_v31 = vld [vmem:[%s6886_s20 + $0x50] sm:$0xff]  ;;  %v353_v32 = vld [vmem:[%s6886_s20 + $0x58] sm:$0xff]  ;;  %v354_v33 = vld [vmem:[%s6886_s20 + $0x60] sm:$0xff]  ;;  %p6553_p7 = pneg %p6552_p3 }
  0x93   : > { %5421 = vmatpush3.bf16.msra.mxu0 %v6318_v2  ;;  %5468 = vmatprep.subr.bf16.mxu1 %v6330_v15  ;;  %v355_v34 = vld [vmem:[%s6886_s20 + $0x68] sm:$0xff]  ;;  %v6331_v35 = vld [vmem:[#allocation8 + $0x20] sm:$0xff]   ;;  %v379_v36 = vpack.c.bf16 %v353_v32, %v352_v31  ;;  %v356_v39 = vld [vmem:[%s6886_s20 + $0x70] sm:$0xff] }
  0x94   : > { %5422 = vmatprep.subr.bf16.mxu0 %v6319_v3  ;;  %v6333_v37 = vld [vmem:[#allocation8 + $0x28] sm:$0xff]   ;;  %v380_v38 = vpack.c.bf16 %v355_v34, %v354_v33  ;;  %v357_v40 = vld [vmem:[%s6886_s20 + $0x78] sm:$0xff]  ;;  %v358_v41 = vld [vmem:[%s6886_s20 + $0x80] sm:$0xff] }
  0x95   : > { %v359_v42 = vld [vmem:[%s6886_s20 + $0x88] sm:$0xff]  ;;  %v381_v43 = vpack.c.bf16 %v357_v40, %v356_v39  ;;  %v360_v45 = vld [vmem:[%s6886_s20 + $0x90] sm:$0xff]  ;;  %v361_v46 = vld [vmem:[%s6886_s20 + $0x98] sm:$0xff] }
  0x96   : > { %5469 = vmatpush3.bf16.msra.mxu1 %v6330_v15  ;;  %v382_v44 = vpack.c.bf16 %v359_v42, %v358_v41  ;;  %v362_v47 = vld [vmem:[%s6886_s20 + $0xa0] sm:$0xff]  ;;  %v363_v48 = vld [vmem:[%s6886_s20 + $0xa8] sm:$0xff]  ;;  %v383_v49 = vpack.c.bf16 %v361_v46, %v360_v45  ;;  %v364_v51 = vld [vmem:[%s6886_s20 + $0xb0] sm:$0xff] }
  0x97   : > { %5423 = vmatpush3.bf16.msra.mxu0 %v6319_v3  ;;  %5470 = vmatprep.subr.bf16.mxu1 %v6332_v19  ;;  %v384_v50 = vpack.c.bf16 %v363_v48, %v362_v47  ;;  %v365_v52 = vld [vmem:[%s6886_s20 + $0xb8] sm:$0xff]  ;;  %v366_v53 = vld [vmem:[%s6886_s20 + $0xc0] sm:$0xff]  ;;  %v367_v54 = vld [vmem:[%s6886_s20 + $0xc8] sm:$0xff] }
  0x98   : > { %5424 = vmatprep.subr.bf16.mxu0 %v6320_v7  ;;  %v385_v55 = vpack.c.bf16 %v365_v52, %v364_v51  ;;  %v386_v56 = vpack.c.bf16 %v367_v54, %v366_v53  ;;  %v368_v57 = vld [vmem:[%s6886_s20 + $0xd0] sm:$0xff]  ;;  %v369_v58 = vld [vmem:[%s6886_s20 + $0xd8] sm:$0xff]  ;;  %v370_v59 = vld [vmem:[%s6886_s20 + $0xe0] sm:$0xff] }
  0x99   : > { %v371_v60 = vld [vmem:[%s6886_s20 + $0xe8] sm:$0xff]  ;;  %v387_v61 = vpack.c.bf16 %v369_v58, %v368_v57  ;;  %v372_v63 = vld [vmem:[%s6886_s20 + $0xf0] sm:$0xff]  ;;  %v373_v0 = vld [vmem:[%s6886_s20 + $0xf8] sm:$0xff] }
  0x9a   : > { %5471 = vmatpush3.bf16.msra.mxu1 %v6332_v19  ;;  %v388_v62 = vpack.c.bf16 %v371_v60, %v370_v59  ;;  %v389_v1 = vpack.c.bf16 %v373_v0, %v372_v63  ;;  %v6334_v2 = vld [vmem:[#allocation8 + $0xe0] sm:$0xff]   ;;  %v6335_v3 = vld [vmem:[#allocation8 + $0x30] sm:$0xff]   ;;  %v6336_v4 = vld [vmem:[#allocation8 + $0xe8] sm:$0xff]  }
  0x9b   : > { %5425 = vmatpush3.bf16.msra.mxu0 %v6320_v7  ;;  %5472 = vmatprep.subr.bf16.mxu1 %v6334_v2  ;;  %v6337_v5 = vld [vmem:[#allocation8 + $0x38] sm:$0xff]   ;;  %v6933_v7 = vrot.slane %v8323_v6, 7  ;;  %v6937_v10 = vld [vmem:[#allocation8 + $0x180] sm:$0xff]   ;;  %v6349_v13 = vld [vmem:[#allocation8 + $0x50] sm:$0xff]  }
  0x9c   : > { %5426 = vmatprep.subr.bf16.mxu0 %v6321_v8  ;;  %v6346_v11 = vld [vmem:[#allocation8 + $0x40] sm:$0xff]   ;;  %v6350_v14 = vld [vmem:[#allocation8 + $0x58] sm:$0xff]   ;;  %v6352_v16 = vld [vmem:[#allocation8 + $0x68] sm:$0xff]  }
  0x9d   : > { %v6351_v15 = vld [vmem:[#allocation8 + $0x60] sm:$0xff]   ;;  %v6355_v26 = vld [vmem:[#allocation8 + $0x78] sm:$0xff]  }
  0x9e   : > { %5473 = vmatpush3.bf16.msra.mxu1 %v6334_v2  ;;  %v6943_v17 = vld [vmem:[%s8313_s2] ss:$0 sm:$0xff] }
  0x9f   : > { %5427 = vmatpush3.bf16.msra.mxu0 %v6321_v8  ;;  %5474 = vmatprep.subr.bf16.mxu1 %v6336_v4  ;;  %v6338_v8 = vld [vmem:[#allocation8 + $0xf0] sm:$0xff]  }
  0xa0   : > { %5428 = vmatprep.subr.bf16.mxu0 %v6322_v9 }
  0xa2   : > { %5475 = vmatpush3.bf16.msra.mxu1 %v6336_v4 }
  0xa3   : > { %5429 = vmatpush3.bf16.msra.mxu0 %v6322_v9  ;;  %5476 = vmatprep.subr.bf16.mxu1 %v6338_v8  ;;  %v6339_v9 = vld [vmem:[#allocation8 + $0xf8] sm:$0xff]  }
  0xa4   : > { %5430 = vmatprep.subr.bf16.mxu0 %v6323_v12 }
  0xa6   : > { %5477 = vmatpush3.bf16.msra.mxu1 %v6338_v8 }
  0xa7   : > { %5431 = vmatpush3.bf16.msra.mxu0 %v6323_v12  ;;  %5478 = vmatprep.subr.bf16.mxu1 %v6339_v9  ;;  %v6347_v12 = vld [vmem:[#allocation8 + $0x48] sm:$0xff]  }
  0xa8   : > { %5544 = vmatprep.subr.bf16.mxu0 %v6324_v18 }
  0xaa   : > { %5433 = vmatmul.mubr.bf16.vlgmr.msra.gmra.mrb[0].mxu0 %v375_v20  ;;  %5479 = vmatpush3.bf16.msra.mxu1 %v6339_v9 }
  0xab   : > { %5436 = vmatprep.mubr.bf16.mxu0 %v376_v22  ;;  %5545 = vmatpush3.bf16.msra.mxu0 %v6324_v18 }
  0xac   : > { %5546 = vmatprep.subr.bf16.mxu0 %v6325_v21  ;;  %5624 = vmatprep.subr.bf16.mxu1 %v6937_v10 }
  0xaf   : > { %5547 = vmatpush3.bf16.msra.mxu0 %v6325_v21  ;;  %v6354_v21 = vld [vmem:[#allocation8 + $0x70] sm:$0xff]  }
  0xb0   : > { %5548 = vmatprep.subr.bf16.mxu0 %v6327_v27 }
  0xb2   : > { %5437 = vmatmul.mubr.bf16.gmra.mrb[4].mxu0 %v377_v28 }
  0xb3   : > { %5440 = vmatprep.mubr.bf16.mxu0 %v378_v30  ;;  %5549 = vmatpush3.bf16.msra.mxu0 %v6327_v27 }
  0xb4   : > { %5550 = vmatprep.subr.bf16.mxu0 %v6329_v29 }
  0xb7   : > { %5551 = vmatpush3.bf16.msra.mxu0 %v6329_v29 }
  0xb8   : > { %5552 = vmatprep.subr.bf16.mxu0 %v6331_v35 }
  0xba   : > { %5441 = vmatmul.mubr.bf16.gmra.mrb[8].mxu0 %v379_v36 }
  0xbb   : > { %5444 = vmatprep.mubr.bf16.mxu0 %v380_v38  ;;  %5553 = vmatpush3.bf16.msra.mxu0 %v6331_v35 }
  0xbc   : > { %5554 = vmatprep.subr.bf16.mxu0 %v6333_v37 }
  0xbf   : > { %5555 = vmatpush3.bf16.msra.mxu0 %v6333_v37 }
  0xc0   : > { %5556 = vmatprep.subr.bf16.mxu0 %v6335_v3 }
  0xc2   : > { %5445 = vmatmul.mubr.bf16.gmra.mrb[12].mxu0 %v381_v43 }
  0xc3   : > { %5448 = vmatprep.mubr.bf16.mxu0 %v382_v44  ;;  %5557 = vmatpush3.bf16.msra.mxu0 %v6335_v3 }
  0xc4   : > { %5558 = vmatprep.subr.bf16.mxu0 %v6337_v5 }
  0xc7   : > { %5559 = vmatpush3.bf16.msra.mxu0 %v6337_v5 }
  0xc8   : > { %5704 = vmatprep.subr.bf16.mxu0 %v6346_v11 }
  0xca   : > { %5449 = vmatmul.mubr.bf16.gmra.mrb[16].mxu0 %v383_v49 }
  0xcb   : > { %5452 = vmatprep.mubr.bf16.mxu0 %v384_v50 }
  0xd2   : > { %5453 = vmatmul.mubr.bf16.gmra.mrb[20].mxu0 %v385_v55 }
  0xd3   : > { %5456 = vmatprep.mubr.bf16.mxu0 %v386_v56 }
  0xda   : > { %5457 = vmatmul.mubr.bf16.gmra.mrb[24].mxu0 %v387_v61 }
  0xdb   : > { %5460 = vmatprep.mubr.bf16.mxu0 %v388_v62  ;;  %v6341_v62 = vld [vmem:[#allocation8 + $0x188] sm:$0xff]  }
  0xe2   : > { %5461 = vmatmul.mubr.bf16.gmra.mrb[28].mxu0 %v389_v1 }
  0xe3   : > { %5560 = vmatprep.mubr.bf16.mxu0 %v6933_v7 }
  0xea   : > { %5561 = vmatmul.mubr.bf16.vlgmr.msra.gmra.mrb[32].mxu0 %v6933_v7 }
  0xeb   : > { %5705 = vmatpush3.bf16.msra.mxu0 %v6346_v11 }
  0xec   : > { %5706 = vmatprep.subr.bf16.mxu0 %v6347_v12 }
  0xef   : > { %5707 = vmatpush3.bf16.msra.mxu0 %v6347_v12 }
  0xf0   : > { %5708 = vmatprep.subr.bf16.mxu0 %v6349_v13 }
  0xf3   : > { %5709 = vmatpush3.bf16.msra.mxu0 %v6349_v13 }
  0xf4   : > { %5710 = vmatprep.subr.bf16.mxu0 %v6350_v14 }
  0xf7   : > { %5711 = vmatpush3.bf16.msra.mxu0 %v6350_v14 }
  0xf8   : > { %5712 = vmatprep.subr.bf16.mxu0 %v6351_v15 }
  0xfb   : > { %5713 = vmatpush3.bf16.msra.mxu0 %v6351_v15 }
  0xfc   : > { %5714 = vmatprep.subr.bf16.mxu0 %v6352_v16 }
  0xff   : > { %5715 = vmatpush3.bf16.msra.mxu0 %v6352_v16 }
 0x100   : > { %5716 = vmatprep.subr.bf16.mxu0 %v6354_v21 }
 0x103   : > { %5717 = vmatpush3.bf16.msra.mxu0 %v6354_v21 }
 0x104   : > { %5718 = vmatprep.subr.bf16.mxu0 %v6355_v26 }
 0x107   : > { %5719 = vmatpush3.bf16.msra.mxu0 %v6355_v26 }
 0x17d   : > { %v5434_v18 = vpop.f32.mrb[0].mxu0 }
 0x17e   : > { %v504_v19 = vadd.f32 %v5434_v18, %v6943_v17  ;;  %v495_v20 = vpop.f32.mrb[1].mxu0 }
 0x17f   : > { %v496_v22 = vadd.f32 %v6943_v17, %v495_v20  ;;  %v5435_v23 = vpop.f32.mrb[2].mxu0 }
 0x180   : > { %v507_v24 = vadd.f32 %v5435_v23, %v6943_v17  ;;  %v498_v25 = vpop.f32.mrb[3].mxu0  ;;  %v624_v28 = vmax.f32 %v504_v19, 0.0  ;;  %v6342_v19 = vld [vmem:[#allocation8 + $0x190] sm:$0xff]  }
 0x181   : > { %v499_v27 = vadd.f32 %v6943_v17, %v498_v25  ;;  %v622_v30 = vmax.f32 %v496_v22, 0.0 }
 0x182   : > { %v625_v29 = vmax.f32 %v507_v24, 0.0 }
 0x183   : > { %v623_v31 = vmax.f32 %v499_v27, 0.0 }
 0x184   : > { %v6949_v32 = vpack.c.bf16 %v625_v29, %v624_v28 }
 0x185   : > { %v6951_v33 = vpack.c.bf16 %v623_v31, %v622_v30  ;;  %v5438_v34 = vpop.f32.mrb[4].mxu0 }
 0x186   : > { %v520_v35 = vadd.f32 %v5438_v34, %v6943_v17  ;;  %v511_v36 = vpop.f32.mrb[5].mxu0  ;;  %v820_v37 = vshrl.u32 %v6949_v32, 16  ;;  %v823_v38 = vshll.u32 %v6949_v32, 16 }
 0x187   : > { %v512_v39 = vadd.f32 %v6943_v17, %v511_v36  ;;  %v5439_v40 = vpop.f32.mrb[6].mxu0  ;;  %v804_v41 = vshrl.u32 %v6951_v33, 16  ;;  %v807_v42 = vshll.u32 %v6951_v33, 16  ;;  %v6343_v36 = vld [vmem:[#allocation8 + $0x198] sm:$0xff]  }
 0x188   : > { %v628_v43 = vmax.f32 %v520_v35, 0.0  ;;  %v523_v44 = vadd.f32 %v5439_v40, %v6943_v17  ;;  %v514_v45 = vpop.f32.mrb[7].mxu0  ;;  %v822_v46 = vrot.slane %v820_v37, 7  ;;  %v6960_v47 = vrot.slane %v823_v38, 1 }
 0x189   : > { %v626_v48 = vmax.f32 %v512_v39, 0.0  ;;  %v515_v49 = vadd.f32 %v6943_v17, %v514_v45  ;;  %v806_v50 = vrot.slane %v804_v41, 7  ;;  %v6963_v51 = vrot.slane %v807_v42, 1 }
 0x18a   : > { %v629_v52 = vmax.f32 %v523_v44, 0.0  ;;  %v825_v55 = vor.u32 %v823_v38, %v822_v46  ;;  %v6971_v58 = vor.u32 %v6960_v47, %v820_v37  ;;  %v7014_v30 = vsel %vm798_vm0, %v822_v46, %v6933_v7 }
 0x18b   : > { %v627_v53 = vmax.f32 %v515_v49, 0.0  ;;  %v809_v54 = vor.u32 %v807_v42, %v806_v50  ;;  %v6966_v56 = vor.u32 %v6963_v51, %v804_v41  ;;  %v818_v63 = vsel %vm798_vm0, %v806_v50, %v6933_v7 }
 0x18c   : > { %v6968_v57 = vpack.c.bf16 %v629_v52, %v628_v43  ;;  %v6983_v3 = vsel %vm798_vm0, %v6933_v7, %v825_v55 }
 0x18d   : > { %v6973_v59 = vpack.c.bf16 %v627_v53, %v626_v48  ;;  %v810_v60 = vsel %vm798_vm0, %v6933_v7, %v809_v54  ;;  %v5442_v61 = vpop.f32.mrb[8].mxu0  ;;  %v6344_v53 = vld [vmem:[#allocation8 + $0x1a0] sm:$0xff]  }
 0x18e   : > { %5480 = vmatprep.mubr.bf16.mxu1 %v810_v60  ;;  %5564 = vmatprep.mubr.bf16.mxu0 %v810_v60  ;;  %v536_v0 = vadd.f32 %v5442_v61, %v6943_v17  ;;  %v527_v1 = vpop.f32.mrb[9].mxu0  ;;  %v855_v2 = vshll.u32 %v6968_v57, 16 }
 0x18f   : > { %5481 = vmatmul.mubr.bf16.vlgmr.msra.gmra.mrb[0].mxu1 %v818_v63  ;;  %5565 = vmatmul.mubr.bf16.gmra.mrb[36].mxu0 %v818_v63  ;;  %v528_v4 = vadd.f32 %v6943_v17, %v527_v1  ;;  %v836_v5 = vshrl.u32 %v6973_v59, 16  ;;  %v839_v8 = vshll.u32 %v6973_v59, 16  ;;  %v5443_v9 = vpop.f32.mrb[10].mxu0 }
 0x190   : > { %5625 = vmatpush3.bf16.msra.mxu1 %v6937_v10  ;;  %5484 = vmatprep.mubr.bf16.mxu1 %v6983_v3  ;;  %v632_v11 = vmax.f32 %v536_v0, 0.0  ;;  %v539_v12 = vadd.f32 %v5443_v9, %v6943_v17  ;;  %v530_v13 = vpop.f32.mrb[11].mxu0  ;;  %v6991_v14 = vrot.slane %v855_v2, 1  ;;  %v852_v10 = vshrl.u32 %v6968_v57, 16  ;;  %v6345_v9 = vld [vmem:[#allocation8 + $0x1a8] sm:$0xff]  }
 0x191   : > { %5568 = vmatprep.mubr.bf16.mxu0 %v6983_v3  ;;  %v630_v15 = vmax.f32 %v528_v4, 0.0  ;;  %v838_v16 = vrot.slane %v836_v5, 7  ;;  %v531_v18 = vadd.f32 %v6943_v17, %v530_v13  ;;  %5626 = vmatprep.subr.bf16.mxu1 %v6341_v62  ;;  %v6995_v20 = vrot.slane %v839_v8, 1 }
 0x192   : > { %v633_v21 = vmax.f32 %v539_v12, 0.0  ;;  %v7004_v26 = vor.u32 %v6991_v14, %v852_v10  ;;  %v7020_v37 = vrot.slane %v852_v10, 7 }
 0x193   : > { %v841_v22 = vor.u32 %v839_v8, %v838_v16  ;;  %v631_v23 = vmax.f32 %v531_v18, 0.0  ;;  %v7001_v25 = vor.u32 %v6995_v20, %v836_v5  ;;  %v7051_v4 = vsel %vm798_vm0, %v838_v16, %v6933_v7 }
 0x194   : > { %v6998_v24 = vpack.c.bf16 %v633_v21, %v632_v11  ;;  %5627 = vmatpush3.bf16.msra.mxu1 %v6341_v62  ;;  %8377 = vst [vmem:[#allocation17_spill] sm:$0xff] %v7004_v26  ;;  %v857_v54 = vor.u32 %v855_v2, %v7020_v37 }
 0x195   : > { %v7008_v27 = vsel %vm798_vm0, %v6933_v7, %v841_v22  ;;  %v7010_v28 = vpack.c.bf16 %v631_v23, %v630_v15  ;;  %v5446_v29 = vpop.f32.mrb[12].mxu0  ;;  %5628 = vmatprep.subr.bf16.mxu1 %v6342_v19 }
 0x196   : > { %v552_v31 = vadd.f32 %v5446_v29, %v6943_v17  ;;  %v543_v34 = vpop.f32.mrb[13].mxu0  ;;  %v887_v35 = vshll.u32 %v6998_v24, 16  ;;  %v884_v52 = vshrl.u32 %v6998_v24, 16  ;;  %v7059_v11 = vsel %vm798_vm0, %v6933_v7, %v857_v54 }
 0x197   : > { %5485 = vmatmul.mubr.bf16.gmra.mrb[4].mxu1 %v7014_v30  ;;  %5569 = vmatmul.mubr.bf16.gmra.mrb[40].mxu0 %v7014_v30  ;;  %v544_v38 = vadd.f32 %v6943_v17, %v543_v34  ;;  %v871_v39 = vshll.u32 %v7010_v28, 16  ;;  %v5447_v40 = vpop.f32.mrb[14].mxu0  ;;  %v868_v46 = vshrl.u32 %v7010_v28, 16 }
 0x198   : > { %5488 = vmatprep.mubr.bf16.mxu1 %v7008_v27  ;;  %5572 = vmatprep.mubr.bf16.mxu0 %v7008_v27  ;;  %v636_v41 = vmax.f32 %v552_v31, 0.0  ;;  %v555_v42 = vadd.f32 %v5447_v40, %v6943_v17  ;;  %v546_v43 = vpop.f32.mrb[15].mxu0  ;;  %v7029_v44 = vrot.slane %v887_v35, 1 }
 0x199   : > { %v634_v45 = vmax.f32 %v544_v38, 0.0  ;;  %v547_v48 = vadd.f32 %v6943_v17, %v546_v43  ;;  %5629 = vmatpush3.bf16.msra.mxu1 %v6342_v19  ;;  %v7033_v49 = vrot.slane %v871_v39, 1  ;;  %v7045_v63 = vrot.slane %v868_v46, 7  ;;  %v6348_v38 = vld [vmem:[#allocation8 + $0x1b0] sm:$0xff]  }
 0x19a   : > { %8378 = vst [vmem:[#allocation18_spill] sm:$0xff] %v7029_v44  ;;  %v637_v50 = vmax.f32 %v555_v42, 0.0  ;;  %5630 = vmatprep.subr.bf16.mxu1 %v6343_v36  ;;  %v7043_v62 = vor.u32 %v7029_v44, %v884_v52 }
 0x19b   : > { %8379 = vst [vmem:[#allocation19_spill] sm:$0xff] %v7033_v49  ;;  %v635_v55 = vmax.f32 %v547_v48, 0.0  ;;  %v7040_v61 = vor.u32 %v7033_v49, %v868_v46  ;;  %v873_v10 = vor.u32 %v871_v39, %v7045_v63  ;;  %v7097_v48 = vsel %vm798_vm0, %v7020_v37, %v6933_v7 }
 0x19c   : > { %v7037_v60 = vpack.c.bf16 %v637_v50, %v636_v41  ;;  %8381 = vst [vmem:[#allocation21_spill] sm:$0xff] %v7043_v62 }
 0x19d   : > { %8380 = vst [vmem:[#allocation20_spill] sm:$0xff] %v7040_v61  ;;  %v7047_v0 = vpack.c.bf16 %v635_v55, %v634_v45  ;;  %v5450_v1 = vpop.f32.mrb[16].mxu0  ;;  %5631 = vmatpush3.bf16.msra.mxu1 %v6343_v36  ;;  %v7090_v43 = vsel %vm798_vm0, %v6933_v7, %v873_v10  ;;  %v6353_v55 = vld [vmem:[#allocation8 + $0x1b8] sm:$0xff]  }
 0x19e   : > { %v568_v2 = vadd.f32 %v5450_v1, %v6943_v17  ;;  %v559_v5 = vpop.f32.mrb[17].mxu0  ;;  %v8329_v8 = vshll.u32 %v7037_v60, 16  ;;  %5632 = vmatprep.subr.bf16.mxu1 %v6344_v53  ;;  %v8331_v36 = vshrl.u32 %v7037_v60, 16  ;;  %v7103_v1 = vrot.slane %v884_v52, 7 }
 0x19f   : > { %5489 = vmatmul.mubr.bf16.gmra.mrb[8].mxu1 %v7051_v4  ;;  %5573 = vmatmul.mubr.bf16.gmra.mrb[44].mxu0 %v7051_v4  ;;  %v560_v12 = vadd.f32 %v6943_v17, %v559_v5  ;;  %v903_v13 = vshll.u32 %v7047_v0, 16  ;;  %v5451_v15 = vpop.f32.mrb[18].mxu0  ;;  %v900_v31 = vshrl.u32 %v7047_v0, 16 }
 0x1a0   : > { %5492 = vmatprep.mubr.bf16.mxu1 %v7059_v11  ;;  %5576 = vmatprep.mubr.bf16.mxu0 %v7059_v11  ;;  %v640_v16 = vmax.f32 %v568_v2, 0.0  ;;  %v571_v18 = vadd.f32 %v5451_v15, %v6943_v17  ;;  %v562_v19 = vpop.f32.mrb[19].mxu0  ;;  %v7068_v21 = vrot.slane %v8329_v8, 1 }
 0x1a1   : > { %v638_v22 = vmax.f32 %v560_v12, 0.0  ;;  %v563_v23 = vadd.f32 %v6943_v17, %v562_v19  ;;  %5633 = vmatpush3.bf16.msra.mxu1 %v6344_v53  ;;  %v7074_v29 = vrot.slane %v903_v13, 1 }
 0x1a2   : > { %8382 = vst [vmem:[#allocation22_spill] sm:$0xff] %v7068_v21  ;;  %v641_v34 = vmax.f32 %v571_v18, 0.0  ;;  %5634 = vmatprep.subr.bf16.mxu1 %v6345_v9  ;;  %v7086_v42 = vor.u32 %v7068_v21, %v8331_v36  ;;  %v7113_v18 = vrot.slane %v8323_v6, 1 }
 0x1a3   : > { %8383 = vst [vmem:[#allocation23_spill] sm:$0xff] %v7074_v29  ;;  %v639_v40 = vmax.f32 %v563_v23, 0.0  ;;  %v7081_v39 = vor.u32 %v7074_v29, %v900_v31 }
 0x1a4   : > { %v7078_v41 = vpack.c.bf16 %v641_v34, %v640_v16  ;;  %8385 = vst [vmem:[#allocation25_spill] sm:$0xff] %v7086_v42  ;;  %8386 = vst [vmem:[#allocation26_spill] sm:$0xff] %v7113_v18 }
 0x1a5   : > { %8384 = vst [vmem:[#allocation24_spill] sm:$0xff] %v7081_v39  ;;  %v7092_v45 = vpack.c.bf16 %v639_v40, %v638_v22  ;;  %v5454_v46 = vpop.f32.mrb[20].mxu0  ;;  %5635 = vmatpush3.bf16.msra.mxu1 %v6345_v9  ;;  %v7122_v40 = vld [vmem:[#allocation8 + $0x100] sm:$0xff]  }
 0x1a6   : > { %v584_v50 = vadd.f32 %v5454_v46, %v6943_v17  ;;  %v575_v53 = vpop.f32.mrb[21].mxu0  ;;  %v8325_v54 = vshll.u32 %v7078_v41, 16  ;;  %5636 = vmatprep.subr.bf16.mxu1 %v6348_v38  ;;  %v8326_v34 = vshrl.u32 %v7078_v41, 16  ;;  %v6362_v39 = vld [vmem:[#allocation8 + $0x1c0] sm:$0xff]  }
 0x1a7   : > { %5493 = vmatmul.mubr.bf16.gmra.mrb[12].mxu1 %v7097_v48  ;;  %5577 = vmatmul.mubr.bf16.gmra.mrb[48].mxu0 %v7097_v48  ;;  %v576_v2 = vadd.f32 %v6943_v17, %v575_v53  ;;  %v8327_v5 = vshll.u32 %v7092_v45, 16  ;;  %v5455_v9 = vpop.f32.mrb[22].mxu0  ;;  %v8328_v22 = vshrl.u32 %v7092_v45, 16 }
 0x1a8   : > { %5496 = vmatprep.mubr.bf16.mxu1 %v7090_v43  ;;  %5580 = vmatprep.mubr.bf16.mxu0 %v7090_v43  ;;  %v644_v37 = vmax.f32 %v584_v50, 0.0  ;;  %v587_v12 = vadd.f32 %v5455_v9, %v6943_v17  ;;  %v578_v15 = vpop.f32.mrb[23].mxu0  ;;  %v3230_v16 = vrot.slane %v8325_v54, 1 }
 0x1a9   : > { %v642_v52 = vmax.f32 %v576_v2, 0.0  ;;  %v579_v19 = vadd.f32 %v6943_v17, %v578_v15  ;;  %5637 = vmatpush3.bf16.msra.mxu1 %v6348_v38  ;;  %v7118_v10 = vrot.slane %v8327_v5, 1  ;;  %v889_v38 = vor.u32 %v887_v35, %v7103_v1  ;;  %5864 = vmatprep.subr.bf16.mxu0 %v6362_v39 }
 0x1aa   : > { %v645_v23 = vmax.f32 %v587_v12, 0.0  ;;  %5638 = vmatprep.subr.bf16.mxu1 %v6353_v55  ;;  %v7126_v46 = vsel %vm3170_vm1, %v7113_v18, %v3230_v16  ;;  %v3232_v9 = vor.u32 %v3230_v16, %v8326_v34  ;;  %v7138_v12 = vrot.slane %v900_v31, 7 }
 0x1ab   : > { %8387 = vst [vmem:[#allocation27_spill] sm:$0xff] %v7118_v10  ;;  %8388 = vst [vmem:[#allocation28_spill] sm:$0xff] %v7126_v46  ;;  %v643_v50 = vmax.f32 %v579_v19, 0.0  ;;  %v3226_v2 = vor.u32 %v7118_v10, %v8328_v22  ;;  %v7145_v35 = vsel %vm798_vm0, %v7045_v63, %v6933_v7 }
 0x1ac   : > { %v7131_v53 = vpack.c.bf16 %v645_v23, %v644_v37 }
 0x1ad   : > { %v7140_v15 = vpack.c.bf16 %v643_v50, %v642_v52  ;;  %v5458_v6 = vpop.f32.mrb[24].mxu0  ;;  %5639 = vmatpush3.bf16.msra.mxu1 %v6353_v55  ;;  %v7152_v31 = vsel %vm3170_vm1, %v3226_v2, %v7113_v18  ;;  %v7158_v55 = vsel %vm798_vm0, %v6933_v7, %v889_v38  ;;  %v7164_v52 = vsel %vm3170_vm1, %v3232_v9, %v7113_v18 }
 0x1ae   : > { %v600_v37 = vadd.f32 %v5458_v6, %v6943_v17  ;;  %v591_v19 = vpop.f32.mrb[25].mxu0  ;;  %v8330_v23 = vshll.u32 %v7131_v53, 16  ;;  %5784 = vmatprep.subr.bf16.mxu1 %v7122_v40  ;;  %8389 = vst [vmem:[#allocation29_spill] sm:$0xff] %v7152_v31  ;;  %8390 = vst [vmem:[#allocation30_spill] sm:$0xff] %v7164_v52 }
 0x1af   : > { %5497 = vmatmul.mubr.bf16.gmra.mrb[16].mxu1 %v7145_v35  ;;  %5581 = vmatmul.mubr.bf16.gmra.mrb[52].mxu0 %v7145_v35  ;;  %v592_v63 = vadd.f32 %v6943_v17, %v591_v19  ;;  %v8332_v6 = vshll.u32 %v7140_v15, 16  ;;  %v5459_v16 = vpop.f32.mrb[26].mxu0  ;;  %v905_v19 = vor.u32 %v903_v13, %v7138_v12  ;;  %v8335_v22 = vshrl.u32 %v7140_v15, 16 }
 0x1b0   : > { %5500 = vmatprep.mubr.bf16.mxu1 %v7158_v55  ;;  %5584 = vmatprep.mubr.bf16.mxu0 %v7158_v55  ;;  %v648_v50 = vmax.f32 %v600_v37, 0.0  ;;  %v603_v2 = vadd.f32 %v5459_v16, %v6943_v17  ;;  %v594_v54 = vpop.f32.mrb[27].mxu0  ;;  %v3242_v38 = vrot.slane %v8330_v23, 1  ;;  %v8334_v37 = vshrl.u32 %v7131_v53, 16 }
 0x1b1   : > { %v646_v34 = vmax.f32 %v592_v63, 0.0  ;;  %v3236_v9 = vrot.slane %v8332_v6, 1  ;;  %v595_v5 = vadd.f32 %v6943_v17, %v594_v54 }
 0x1b2   : > { %v649_v8 = vmax.f32 %v603_v2, 0.0  ;;  %v7181_v16 = vsel %vm3170_vm1, %v7113_v18, %v3242_v38  ;;  %v3244_v54 = vor.u32 %v3242_v38, %v8334_v37  ;;  %v7195_v2 = vsel %vm798_vm0, %v6933_v7, %v905_v19 }
 0x1b3   : > { %8391 = vst [vmem:[#allocation31_spill] sm:$0xff] %v7181_v16  ;;  %v647_v23 = vmax.f32 %v595_v5, 0.0  ;;  %v7185_v36 = vsel %vm3170_vm1, %v7113_v18, %v3236_v9  ;;  %v3238_v63 = vor.u32 %v3236_v9, %v8335_v22  ;;  %v7202_v5 = vsel %vm798_vm0, %v7103_v1, %v6933_v7 }
 0x1b4   : > { %8392 = vst [vmem:[#allocation32_spill] sm:$0xff] %v7185_v36  ;;  %v7187_v13 = vpack.c.bf16 %v649_v8, %v648_v50 }
 0x1b5   : > { %v7197_v6 = vpack.c.bf16 %v647_v23, %v646_v34  ;;  %v5462_v16 = vpop.f32.mrb[28].mxu0  ;;  %v7208_v38 = vsel %vm3170_vm1, %v3238_v63, %v7113_v18  ;;  %v8394_v34 = vshrl.u32 %v7037_v60, 16 }
 0x1b6   : > { %v616_v8 = vadd.f32 %v5462_v16, %v6943_v17  ;;  %v607_v50 = vpop.f32.mrb[29].mxu0  ;;  %8393 = vst [vmem:[#allocation33_spill] sm:$0xff] %v7208_v38  ;;  %v7218_v16 = vsel %vm3170_vm1, %v3244_v54, %v7113_v18  ;;  %v8396_v38 = vshll.u32 %v7187_v13, 16  ;;  %v8344_v46 = vshrl.u32 %v7187_v13, 16 }
 0x1b7   : > { %5501 = vmatmul.mubr.bf16.gmra.mrb[20].mxu1 %v7202_v5  ;;  %5585 = vmatmul.mubr.bf16.gmra.mrb[56].mxu0 %v7202_v5  ;;  %v918_v23 = vrot.slane %v8394_v34, 7  ;;  %v608_v19 = vadd.f32 %v6943_v17, %v607_v50  ;;  %v8343_v1 = vshll.u32 %v7197_v6, 16  ;;  %v5463_v37 = vpop.f32.mrb[30].mxu0  ;;  %8395 = vst [vmem:[#allocation34_spill] sm:$0xff] %v7218_v16  ;;  %v996_v54 = vshrl.u32 %v7197_v6, 16 }
 0x1b8   : > { %5504 = vmatprep.mubr.bf16.mxu1 %v7195_v2  ;;  %5588 = vmatprep.mubr.bf16.mxu0 %v7195_v2  ;;  %v652_v63 = vmax.f32 %v616_v8, 0.0  ;;  %v619_v22 = vadd.f32 %v5463_v37, %v6943_v17  ;;  %v610_v9 = vpop.f32.mrb[31].mxu0  ;;  %v3254_v34 = vrot.slane %v8396_v38, 1  ;;  %v8398_v37 = vshll.u32 %v7037_v60, 16 }
 0x1b9   : > { %v650_v36 = vmax.f32 %v608_v19, 0.0  ;;  %v3248_v50 = vrot.slane %v8343_v1, 1  ;;  %v611_v52 = vadd.f32 %v6943_v17, %v610_v9  ;;  %v8400_v9 = vshrl.u32 %v7092_v45, 16 }
 0x1ba   : > { %v653_v16 = vmax.f32 %v619_v22, 0.0  ;;  %v7232_v8 = vsel %vm3170_vm1, %v7113_v18, %v3254_v34  ;;  %v921_v31 = vor.u32 %v8398_v37, %v918_v23  ;;  %v3256_v22 = vor.u32 %v3254_v34, %v8344_v46 }
 0x1bb   : > { %8397 = vst [vmem:[#allocation35_spill] sm:$0xff] %v7232_v8  ;;  %v651_v10 = vmax.f32 %v611_v52, 0.0  ;;  %v7238_v38 = vsel %vm3170_vm1, %v7113_v18, %v3248_v50  ;;  %v3250_v17 = vor.u32 %v3248_v50, %v996_v54  ;;  %v934_v1 = vrot.slane %v8400_v9, 7 }
 0x1bc   : > { %8399 = vst [vmem:[#allocation36_spill] sm:$0xff] %v7238_v38  ;;  %v7240_v19 = vpack.c.bf16 %v653_v16, %v652_v63  ;;  %v7251_v37 = vsel %vm798_vm0, %v7138_v12, %v6933_v7  ;;  %v7260_v63 = vsel %vm3170_vm1, %v3256_v22, %v7113_v18  ;;  %v8403_v50 = vshll.u32 %v7092_v45, 16 }
 0x1bd   : > { %v7246_v42 = vpack.c.bf16 %v651_v10, %v650_v36  ;;  %v7256_v16 = vsel %vm3170_vm1, %v3250_v17, %v7113_v18  ;;  %8402 = vst [vmem:[#allocation38_spill] sm:$0xff] %v7260_v63  ;;  %v7266_v36 = vsel %vm798_vm0, %v6933_v7, %v921_v31 }
 0x1be   : > { %v8346_v52 = vshll.u32 %v7240_v19, 16  ;;  %8401 = vst [vmem:[#allocation37_spill] sm:$0xff] %v7256_v16  ;;  %v8349_v12 = vshrl.u32 %v7240_v19, 16  ;;  %v937_v17 = vor.u32 %v8403_v50, %v934_v1 }
 0x1bf   : > { %5505 = vmatmul.mubr.bf16.gmra.mrb[24].mxu1 %v7251_v37  ;;  %5589 = vmatmul.mubr.bf16.gmra.mrb[60].mxu0 %v7251_v37  ;;  %v8348_v10 = vshll.u32 %v7246_v42, 16  ;;  %v1028_v22 = vshrl.u32 %v7246_v42, 16  ;;  %v8417_v44 = vshll.u32 %v7246_v42, 16 }
 0x1c0   : > { %5508 = vmatprep.mubr.bf16.mxu1 %v7266_v36  ;;  %5592 = vmatprep.mubr.bf16.mxu0 %v7266_v36  ;;  %v3266_v34 = vrot.slane %v8346_v52, 1  ;;  %v7295_v8 = vsel %vm798_vm0, %v6933_v7, %v937_v17  ;;  %v8409_v17 = vshll.u32 %v7078_v41, 16 }
 0x1c1   : > { %v3260_v31 = vrot.slane %v8348_v10, 1  ;;  %v1030_v62 = vrot.slane %v1028_v22, 7 }
 0x1c2   : > { %v7281_v9 = vsel %vm3170_vm1, %v7113_v18, %v3266_v34  ;;  %v3654_v46 = vor.u32 %v3266_v34, %v8349_v12  ;;  %v7303_v34 = vsel %vm798_vm0, %v918_v23, %v6933_v7  ;;  %v7317_v23 = vsel %vm798_vm0, %v934_v1, %v6933_v7 }
 0x1c3   : > { %8404 = vst [vmem:[#allocation39_spill] sm:$0xff] %v7281_v9  ;;  %v7287_v63 = vsel %vm3170_vm1, %v7113_v18, %v3260_v31  ;;  %v3262_v52 = vor.u32 %v3260_v31, %v1028_v22  ;;  %v8408_v31 = vshrl.u32 %v7078_v41, 16 }
 0x1c4   : > { %8405 = vst [vmem:[#allocation40_spill] sm:$0xff] %v7287_v63  ;;  %v7291_v50 = vsel %vm3170_vm1, %v3654_v46, %v7113_v18  ;;  %v8413_v63 = vshll.u32 %v7131_v53, 16 }
 0x1c5   : > { %8406 = vst [vmem:[#allocation41_spill] sm:$0xff] %v7291_v50  ;;  %v7299_v10 = vsel %vm3170_vm1, %v3262_v52, %v7113_v18  ;;  %v950_v46 = vrot.slane %v8408_v31, 7  ;;  %v8410_v52 = vshrl.u32 %v7140_v15, 16 }
 0x1c6   : > { %8407 = vst [vmem:[#allocation42_spill] sm:$0xff] %v7299_v10 }
 0x1c7   : > { %5509 = vmatmul.mubr.bf16.gmra.mrb[28].mxu1 %v7303_v34  ;;  %5593 = vmatmul.mubr.bf16.gmra.mrb[64].mxu0 %v7303_v34  ;;  %v953_v12 = vor.u32 %v8409_v17, %v950_v46  ;;  %v966_v50 = vrot.slane %v8410_v52, 7  ;;  %v8411_v17 = vshll.u32 %v7140_v15, 16  ;;  %v7335_v1 = vsel %vm798_vm0, %v950_v46, %v6933_v7 }
 0x1c8   : > { %5512 = vmatprep.mubr.bf16.mxu1 %v7295_v8  ;;  %5596 = vmatprep.mubr.bf16.mxu0 %v7295_v8  ;;  %v998_v46 = vrot.slane %v996_v54, 7  ;;  %v8414_v54 = vshll.u32 %v7197_v6, 16 }
 0x1c9   : > { %v7323_v31 = vsel %vm798_vm0, %v6933_v7, %v953_v12  ;;  %v969_v9 = vor.u32 %v8411_v17, %v966_v50  ;;  %v8412_v12 = vshrl.u32 %v7131_v53, 16  ;;  %v5562_v17 = vpop.f32.mrb[32].mxu0  ;;  %v7349_v21 = vsel %vm798_vm0, %v966_v50, %v6933_v7 }
 0x1ca   : > { %v7345_v16 = vpop.f32.mrb[33].mxu0 }
 0x1cb   : > { %v7331_v52 = vsel %vm798_vm0, %v6933_v7, %v969_v9  ;;  %v982_v10 = vrot.slane %v8412_v12, 7  ;;  %v5563_v38 = vpop.f32.mrb[34].mxu0 }
 0x1cc   : > { %v1001_v38 = vor.u32 %v8414_v54, %v998_v46  ;;  %v8416_v54 = vshll.u32 %v7187_v13, 16 }
 0x1cd   : > { %v985_v9 = vor.u32 %v8413_v63, %v982_v10  ;;  %v7359_v63 = vpop.f32.mrb[35].mxu0  ;;  %v7369_v17 = vsel %vm798_vm0, %v982_v10, %v6933_v7  ;;  %v7381_v10 = vsel %vm798_vm0, %v998_v46, %v6933_v7 }
 0x1ce   : > { %v7365_v50 = vsel %vm798_vm0, %v6933_v7, %v1001_v38 }
 0x1cf   : > { %5513 = vmatmul.mubr.bf16.gmra.mrb[32].mxu1 %v7317_v23  ;;  %5597 = vmatmul.mubr.bf16.gmra.mrb[68].mxu0 %v7317_v23  ;;  %v7355_v12 = vsel %vm798_vm0, %v6933_v7, %v985_v9  ;;  %v8415_v9 = vshrl.u32 %v7187_v13, 16 }
 0x1d0   : > { %5516 = vmatprep.mubr.bf16.mxu1 %v7323_v31  ;;  %5600 = vmatprep.mubr.bf16.mxu0 %v7323_v31 }
 0x1d1   : > { %v1014_v29 = vrot.slane %v8415_v9, 7 }
 0x1d3   : > { %v1017_v38 = vor.u32 %v8416_v54, %v1014_v29  ;;  %v1033_v54 = vor.u32 %v8417_v44, %v1030_v62  ;;  %v7399_v46 = vsel %vm798_vm0, %v1014_v29, %v6933_v7  ;;  %v8419_v44 = vshll.u32 %v7240_v19, 16 }
 0x1d5   : > { %v7387_v9 = vsel %vm798_vm0, %v6933_v7, %v1017_v38  ;;  %v7395_v22 = vsel %vm798_vm0, %v6933_v7, %v1033_v54  ;;  %v8418_v38 = vshrl.u32 %v7240_v19, 16  ;;  %v7411_v54 = vsel %vm798_vm0, %v1030_v62, %v6933_v7  ;;  %v6357_v62 = vld [vmem:[#allocation8 + $0x108] sm:$0xff]  }
 0x1d7   : > { %5517 = vmatmul.mubr.bf16.gmra.mrb[36].mxu1 %v7335_v1  ;;  %5601 = vmatmul.mubr.bf16.gmra.mrb[72].mxu0 %v7335_v1  ;;  %v1046_v61 = vrot.slane %v8418_v38, 7  ;;  %v8420_v38 = vmov 0  }
 0x1d8   : > { %5520 = vmatprep.mubr.bf16.mxu1 %v7331_v52  ;;  %5604 = vmatprep.mubr.bf16.mxu0 %v7331_v52 }
 0x1d9   : > { %v1049_v49 = vor.u32 %v8419_v44, %v1046_v61  ;;  %v7423_v26 = vsel %vm798_vm0, %v1046_v61, %v6933_v7  ;;  %v6363_v44 = vld [vmem:[#allocation8 + $0x1c8] sm:$0xff]   ;;  %v6366_v61 = vld [vmem:[#allocation8 + $0x1d8] sm:$0xff]  }
 0x1db   : > { %v7417_v29 = vsel %vm798_vm0, %v6933_v7, %v1049_v49  ;;  %v6365_v49 = vld [vmem:[#allocation8 + $0x1d0] sm:$0xff]  }
 0x1df   : > { %5521 = vmatmul.mubr.bf16.gmra.mrb[40].mxu1 %v7349_v21  ;;  %5605 = vmatmul.mubr.bf16.gmra.mrb[76].mxu0 %v7349_v21 }
 0x1e0   : > { %5524 = vmatprep.mubr.bf16.mxu1 %v7355_v12  ;;  %5608 = vmatprep.mubr.bf16.mxu0 %v7355_v12 }
 0x1e7   : > { %5525 = vmatmul.mubr.bf16.gmra.mrb[44].mxu1 %v7369_v17  ;;  %5609 = vmatmul.mubr.bf16.gmra.mrb[80].mxu0 %v7369_v17 }
 0x1e8   : > { %5528 = vmatprep.mubr.bf16.mxu1 %v7365_v50  ;;  %5612 = vmatprep.mubr.bf16.mxu0 %v7365_v50 }
 0x1ef   : > { %5529 = vmatmul.mubr.bf16.gmra.mrb[48].mxu1 %v7381_v10  ;;  %5613 = vmatmul.mubr.bf16.gmra.mrb[84].mxu0 %v7381_v10 }
 0x1f0   : > { %5532 = vmatprep.mubr.bf16.mxu1 %v7387_v9  ;;  %5616 = vmatprep.mubr.bf16.mxu0 %v7387_v9 }
 0x1f7   : > { %5533 = vmatmul.mubr.bf16.gmra.mrb[52].mxu1 %v7399_v46  ;;  %5617 = vmatmul.mubr.bf16.gmra.mrb[88].mxu0 %v7399_v46 }
 0x1f8   : > { %5536 = vmatprep.mubr.bf16.mxu1 %v7395_v22  ;;  %5620 = vmatprep.mubr.bf16.mxu0 %v7395_v22 }
 0x1ff   : > { %5537 = vmatmul.mubr.bf16.gmra.mrb[56].mxu1 %v7411_v54  ;;  %5621 = vmatmul.mubr.bf16.gmra.mrb[92].mxu0 %v7411_v54 }
 0x200   : > { %5540 = vmatprep.mubr.bf16.mxu1 %v7417_v29  ;;  %5720 = vmatprep.mubr.bf16.mxu0 %v8420_v38 }
 0x207   : > { %5541 = vmatmul.mubr.bf16.gmra.mrb[60].mxu1 %v7423_v26  ;;  %5721 = vmatmul.mubr.bf16.vlgmr.msra.gmra.mrb[96].mxu0 %v8420_v38 }
 0x208   : > { %5640 = vmatprep.mubr.bf16.mxu1 %v6983_v3  ;;  %5724 = vmatprep.mubr.bf16.mxu0 %v6951_v33  ;;  %v6358_v3 = vld [vmem:[#allocation8 + $0x110] sm:$0xff]  }
 0x209   : > { %5865 = vmatpush3.bf16.msra.mxu0 %v6362_v39  ;;  %v6367_v39 = vld [vmem:[#allocation8 + $0x1e0] sm:$0xff]  }
 0x20a   : > { %5866 = vmatprep.subr.bf16.mxu0 %v6363_v44 }
 0x20d   : > { %5867 = vmatpush3.bf16.msra.mxu0 %v6363_v44  ;;  %v6359_v44 = vld [vmem:[#allocation8 + $0x118] sm:$0xff]  }
 0x20e   : > { %5868 = vmatprep.subr.bf16.mxu0 %v6365_v49 }
 0x20f   : > { %5641 = vmatmul.mubr.bf16.vlgmr.msra.gmra.mrb[64].mxu1 %v7014_v30  ;;  %5725 = vmatmul.mubr.bf16.gmra.mrb[100].mxu0 %v8420_v38  ;;  %v6368_v30 = vld [vmem:[#allocation8 + $0x1e8] sm:$0xff]  }
 0x210   : > { %5785 = vmatpush3.bf16.msra.mxu1 %v7122_v40  ;;  %5644 = vmatprep.mubr.bf16.mxu1 %v7008_v27  ;;  %v6360_v27 = vld [vmem:[#allocation8 + $0x120] sm:$0xff]   ;;  %v6370_v40 = vld [vmem:[#allocation8 + $0x1f0] sm:$0xff]  }
 0x211   : > { %5728 = vmatprep.mubr.bf16.mxu0 %v6949_v32  ;;  %5786 = vmatprep.subr.bf16.mxu1 %v6357_v62 }
 0x212   : > { %5869 = vmatpush3.bf16.msra.mxu0 %v6365_v49  ;;  %v6361_v49 = vld [vmem:[#allocation8 + $0x128] sm:$0xff]  }
 0x213   : > { %5870 = vmatprep.subr.bf16.mxu0 %v6366_v61 }
 0x214   : > { %5787 = vmatpush3.bf16.msra.mxu1 %v6357_v62  ;;  %v6369_v62 = vld [vmem:[#allocation8 + $0x138] sm:$0xff]  }
 0x215   : > { %5788 = vmatprep.subr.bf16.mxu1 %v6358_v3 }
 0x216   : > { %5871 = vmatpush3.bf16.msra.mxu0 %v6366_v61 }
 0x217   : > { %5645 = vmatmul.mubr.bf16.gmra.mrb[68].mxu1 %v7051_v4  ;;  %5729 = vmatmul.mubr.bf16.gmra.mrb[104].mxu0 %v8420_v38  ;;  %v6371_v4 = vld [vmem:[#allocation8 + $0x1f8] sm:$0xff]  }
 0x218   : > { %5648 = vmatprep.mubr.bf16.mxu1 %v7059_v11  ;;  %5732 = vmatprep.mubr.bf16.mxu0 %v6973_v59  ;;  %v6364_v11 = vld [vmem:[#allocation8 + $0x130] sm:$0xff]  }
 0x219   : > { %5789 = vmatpush3.bf16.msra.mxu1 %v6358_v3  ;;  %5872 = vmatprep.subr.bf16.mxu0 %v6367_v39 }
 0x21a   : > { %5790 = vmatprep.subr.bf16.mxu1 %v6359_v44  ;;  %5873 = vmatpush3.bf16.msra.mxu0 %v6367_v39 }
 0x21b   : > { %5874 = vmatprep.subr.bf16.mxu0 %v6368_v30 }
 0x21d   : > { %5791 = vmatpush3.bf16.msra.mxu1 %v6359_v44 }
 0x21e   : > { %5792 = vmatprep.subr.bf16.mxu1 %v6360_v27  ;;  %5875 = vmatpush3.bf16.msra.mxu0 %v6368_v30 }
 0x21f   : > { %5649 = vmatmul.mubr.bf16.gmra.mrb[72].mxu1 %v7097_v48  ;;  %5733 = vmatmul.mubr.bf16.gmra.mrb[108].mxu0 %v8420_v38 }
 0x220   : > { %5652 = vmatprep.mubr.bf16.mxu1 %v7090_v43  ;;  %5736 = vmatprep.mubr.bf16.mxu0 %v6968_v57  ;;  %v7446_v43 = vld [vmem:[#allocation8 + $0x80] sm:$0xff]  }
 0x221   : > { %5793 = vmatpush3.bf16.msra.mxu1 %v6360_v27  ;;  %5876 = vmatprep.subr.bf16.mxu0 %v6370_v40 }
 0x222   : > { %5794 = vmatprep.subr.bf16.mxu1 %v6361_v49  ;;  %5877 = vmatpush3.bf16.msra.mxu0 %v6370_v40 }
 0x223   : > { %5878 = vmatprep.subr.bf16.mxu0 %v6371_v4 }
 0x225   : > { %5795 = vmatpush3.bf16.msra.mxu1 %v6361_v49 }
 0x226   : > { %5796 = vmatprep.subr.bf16.mxu1 %v6364_v11  ;;  %5879 = vmatpush3.bf16.msra.mxu0 %v6371_v4 }
 0x227   : > { %5653 = vmatmul.mubr.bf16.gmra.mrb[76].mxu1 %v7145_v35  ;;  %5737 = vmatmul.mubr.bf16.gmra.mrb[112].mxu0 %v8420_v38 }
 0x228   : > { %5656 = vmatprep.mubr.bf16.mxu1 %v7158_v55  ;;  %5740 = vmatprep.mubr.bf16.mxu0 %v7010_v28 }
 0x229   : > { %5797 = vmatpush3.bf16.msra.mxu1 %v6364_v11 }
 0x22a   : > { %5798 = vmatprep.subr.bf16.mxu1 %v6369_v62 }
 0x22d   : > { %5799 = vmatpush3.bf16.msra.mxu1 %v6369_v62 }
 0x22e   : > { %5944 = vmatprep.subr.bf16.mxu1 %v7446_v43 }
 0x22f   : > { %5657 = vmatmul.mubr.bf16.gmra.mrb[80].mxu1 %v7202_v5  ;;  %5741 = vmatmul.mubr.bf16.gmra.mrb[116].mxu0 %v8420_v38 }
 0x230   : > { %5660 = vmatprep.mubr.bf16.mxu1 %v7195_v2  ;;  %5744 = vmatprep.mubr.bf16.mxu0 %v6998_v24 }
 0x237   : > { %5661 = vmatmul.mubr.bf16.gmra.mrb[84].mxu1 %v7251_v37  ;;  %5745 = vmatmul.mubr.bf16.gmra.mrb[120].mxu0 %v8420_v38 }
 0x238   : > { %5664 = vmatprep.mubr.bf16.mxu1 %v7266_v36  ;;  %5748 = vmatprep.mubr.bf16.mxu0 %v7047_v0 }
 0x23f   : > { %5665 = vmatmul.mubr.bf16.gmra.mrb[88].mxu1 %v7303_v34  ;;  %5749 = vmatmul.mubr.bf16.gmra.mrb[124].mxu0 %v8420_v38 }
 0x240   : > { %5668 = vmatprep.mubr.bf16.mxu1 %v7295_v8  ;;  %5752 = vmatprep.mubr.bf16.mxu0 %v7037_v60 }
 0x247   : > { %5669 = vmatmul.mubr.bf16.gmra.mrb[92].mxu1 %v7317_v23  ;;  %5753 = vmatmul.mubr.bf16.gmra.mrb[128].mxu0 %v8420_v38  ;;  %v6378_v23 = vld [vmem:[#allocation8 + $0x140] sm:$0xff]  }
 0x248   : > { %5672 = vmatprep.mubr.bf16.mxu1 %v7323_v31  ;;  %5756 = vmatprep.mubr.bf16.mxu0 %v7092_v45 }
 0x249   : > { %6024 = vmatprep.subr.bf16.mxu0 %v6378_v23 }
 0x24f   : > { %5673 = vmatmul.mubr.bf16.gmra.mrb[96].mxu1 %v7335_v1  ;;  %5757 = vmatmul.mubr.bf16.gmra.mrb[132].mxu0 %v8420_v38 }
 0x250   : > { %5676 = vmatprep.mubr.bf16.mxu1 %v7331_v52  ;;  %5760 = vmatprep.mubr.bf16.mxu0 %v7078_v41 }
 0x257   : > { %5677 = vmatmul.mubr.bf16.gmra.mrb[100].mxu1 %v7349_v21  ;;  %5761 = vmatmul.mubr.bf16.gmra.mrb[136].mxu0 %v8420_v38 }
 0x258   : > { %5680 = vmatprep.mubr.bf16.mxu1 %v7355_v12  ;;  %5764 = vmatprep.mubr.bf16.mxu0 %v7140_v15 }
 0x25f   : > { %5681 = vmatmul.mubr.bf16.gmra.mrb[104].mxu1 %v7369_v17  ;;  %5765 = vmatmul.mubr.bf16.gmra.mrb[140].mxu0 %v8420_v38 }
 0x260   : > { %5684 = vmatprep.mubr.bf16.mxu1 %v7365_v50  ;;  %5768 = vmatprep.mubr.bf16.mxu0 %v7131_v53 }
 0x262   : > { %v5482_v48 = vpop.f32.mrb[0].mxu1  ;;  %v5566_v35 = vpop.f32.mrb[36].mxu0 }
 0x263   : > { %v1173_v55 = vpop.f32.mrb[1].mxu1  ;;  %v1510_v2 = vpop.f32.mrb[37].mxu0 }
 0x264   : > { %v5483_v5 = vpop.f32.mrb[2].mxu1  ;;  %v5567_v21 = vpop.f32.mrb[38].mxu0  ;;  %v7478_v8 = vadd.f32 %v7345_v16, %v1173_v55 }
 0x265   : > { %v1176_v37 = vpop.f32.mrb[3].mxu1  ;;  %v1513_v36 = vpop.f32.mrb[39].mxu0 }
 0x266   : > { %v7481_v34 = vadd.f32 %v7359_v63, %v1176_v37 }
 0x267   : > { %5685 = vmatmul.mubr.bf16.gmra.mrb[108].mxu1 %v7381_v10  ;;  %5769 = vmatmul.mubr.bf16.gmra.mrb[144].mxu0 %v8420_v38 }
 0x268   : > { %5688 = vmatprep.mubr.bf16.mxu1 %v7387_v9  ;;  %5772 = vmatprep.mubr.bf16.mxu0 %v7197_v6 }
 0x26a   : > { %v5486_v31 = vpop.f32.mrb[4].mxu1  ;;  %v5570_v52 = vpop.f32.mrb[40].mxu0 }
 0x26b   : > { %v1187_v1 = vpop.f32.mrb[5].mxu1  ;;  %v1524_v16 = vpop.f32.mrb[41].mxu0 }
 0x26c   : > { %v5487_v12 = vpop.f32.mrb[6].mxu1  ;;  %v5571_v50 = vpop.f32.mrb[42].mxu0  ;;  %v7487_v17 = vadd.f32 %v1510_v2, %v1187_v1 }
 0x26d   : > { %v1190_v63 = vpop.f32.mrb[7].mxu1  ;;  %v1527_v61 = vpop.f32.mrb[43].mxu0 }
 0x26e   : > { %v7489_v3 = vadd.f32 %v1513_v36, %v1190_v63  ;;  %v6379_v63 = vld [vmem:[#allocation8 + $0x148] sm:$0xff]  }
 0x26f   : > { %5689 = vmatmul.mubr.bf16.gmra.mrb[112].mxu1 %v7399_v46  ;;  %5773 = vmatmul.mubr.bf16.gmra.mrb[148].mxu0 %v8420_v38 }
 0x270   : > { %5692 = vmatprep.mubr.bf16.mxu1 %v7395_v22  ;;  %5776 = vmatprep.mubr.bf16.mxu0 %v7187_v13 }
 0x272   : > { %v5490_v10 = vpop.f32.mrb[8].mxu1  ;;  %v5574_v9 = vpop.f32.mrb[44].mxu0 }
 0x273   : > { %v1201_v39 = vpop.f32.mrb[9].mxu1  ;;  %v1538_v44 = vpop.f32.mrb[45].mxu0  ;;  %v6381_v9 = vld [vmem:[#allocation8 + $0x150] sm:$0xff]  }
 0x274   : > { %v5491_v30 = vpop.f32.mrb[10].mxu1  ;;  %v5575_v27 = vpop.f32.mrb[46].mxu0  ;;  %v7495_v40 = vadd.f32 %v1524_v16, %v1201_v39 }
 0x275   : > { %v1204_v49 = vpop.f32.mrb[11].mxu1  ;;  %v1541_v4 = vpop.f32.mrb[47].mxu0 }
 0x276   : > { %v7497_v11 = vadd.f32 %v1527_v61, %v1204_v49 }
 0x277   : > { %5693 = vmatmul.mubr.bf16.gmra.mrb[116].mxu1 %v7411_v54  ;;  %5777 = vmatmul.mubr.bf16.gmra.mrb[152].mxu0 %v8420_v38 }
 0x278   : > { %5696 = vmatprep.mubr.bf16.mxu1 %v7417_v29  ;;  %5780 = vmatprep.mubr.bf16.mxu0 %v7246_v42 }
 0x27a   : > { %v5494_v22 = vpop.f32.mrb[12].mxu1  ;;  %v5578_v46 = vpop.f32.mrb[48].mxu0 }
 0x27b   : > { %v1215_v62 = vpop.f32.mrb[13].mxu1  ;;  %v1552_v48 = vpop.f32.mrb[49].mxu0 }
 0x27c   : > { %v5495_v35 = vpop.f32.mrb[14].mxu1  ;;  %v5579_v55 = vpop.f32.mrb[50].mxu0  ;;  %v7503_v2 = vadd.f32 %v1538_v44, %v1215_v62 }
 0x27d   : > { %v1218_v5 = vpop.f32.mrb[15].mxu1  ;;  %v1555_v21 = vpop.f32.mrb[51].mxu0 }
 0x27e   : > { %v7505_v37 = vadd.f32 %v1541_v4, %v1218_v5 }
 0x27f   : > { %5697 = vmatmul.mubr.bf16.gmra.mrb[120].mxu1 %v7423_v26  ;;  %5781 = vmatmul.mubr.bf16.gmra.mrb[156].mxu0 %v8420_v38 }
 0x280   : > { %5880 = vmatprep.mubr.bf16.mxu0 %v6949_v32  ;;  %5700 = vmatprep.mubr.bf16.mxu1 %v6933_v7 }
 0x282   : > { %v5498_v54 = vpop.f32.mrb[16].mxu1  ;;  %v5582_v29 = vpop.f32.mrb[52].mxu0 }
 0x283   : > { %v1229_v36 = vpop.f32.mrb[17].mxu1  ;;  %v1566_v31 = vpop.f32.mrb[53].mxu0 }
 0x284   : > { %v5499_v52 = vpop.f32.mrb[18].mxu1  ;;  %v5583_v1 = vpop.f32.mrb[54].mxu0  ;;  %v7511_v16 = vadd.f32 %v1552_v48, %v1229_v36 }
 0x285   : > { %v1232_v12 = vpop.f32.mrb[19].mxu1  ;;  %v1569_v50 = vpop.f32.mrb[55].mxu0  ;;  %v6384_v52 = vld [vmem:[#allocation8 + $0x168] sm:$0xff]  }
 0x286   : > { %v7513_v61 = vadd.f32 %v1555_v21, %v1232_v12 }
 0x287   : > { %5701 = vmatmul.mubr.bf16.gmra.mrb[124].mxu1 %v6933_v7  ;;  %5881 = vmatmul.mubr.bf16.vlgmr.msra.gmra.mrb[160].mxu0 %v8420_v38  ;;  %v6373_v7 = vld [vmem:[#allocation8 + $0x88] sm:$0xff]  }
 0x288   : > { %5800 = vmatprep.mubr.bf16.mxu1 %v6951_v33  ;;  %5884 = vmatprep.mubr.bf16.mxu0 %v6973_v59  ;;  %v6382_v33 = vld [vmem:[#allocation8 + $0x158] sm:$0xff]  }
 0x289   : > { %6025 = vmatpush3.bf16.msra.mxu0 %v6378_v23  ;;  %v6374_v23 = vld [vmem:[#allocation8 + $0x90] sm:$0xff]  }
 0x28a   : > { %v5502_v26 = vpop.f32.mrb[20].mxu1  ;;  %v5586_v10 = vpop.f32.mrb[56].mxu0  ;;  %6026 = vmatprep.subr.bf16.mxu0 %v6379_v63 }
 0x28b   : > { %v1243_v39 = vpop.f32.mrb[21].mxu1  ;;  %v1580_v44 = vpop.f32.mrb[57].mxu0 }
 0x28c   : > { %v5503_v30 = vpop.f32.mrb[22].mxu1  ;;  %v5587_v27 = vpop.f32.mrb[58].mxu0  ;;  %v7519_v49 = vadd.f32 %v1566_v31, %v1243_v39 }
 0x28d   : > { %v1246_v4 = vpop.f32.mrb[23].mxu1  ;;  %v1583_v22 = vpop.f32.mrb[59].mxu0  ;;  %6027 = vmatpush3.bf16.msra.mxu0 %v6379_v63  ;;  %v6377_v27 = vld [vmem:[#allocation8 + $0xa8] sm:$0xff]  }
 0x28e   : > { %6028 = vmatprep.subr.bf16.mxu0 %v6381_v9  ;;  %v7521_v46 = vadd.f32 %v1569_v50, %v1246_v4  ;;  %v6376_v50 = vld [vmem:[#allocation8 + $0xa0] sm:$0xff]  }
 0x28f   : > { %5801 = vmatmul.mubr.bf16.vlgmr.msra.gmra.mrb[128].mxu1 %v8420_v38  ;;  %5885 = vmatmul.mubr.bf16.gmra.mrb[164].mxu0 %v8420_v38 }
 0x290   : > { %5945 = vmatpush3.bf16.msra.mxu1 %v7446_v43  ;;  %5804 = vmatprep.mubr.bf16.mxu1 %v6949_v32  ;;  %v6383_v43 = vld [vmem:[#allocation8 + $0x160] sm:$0xff]   ;;  %v6375_v32 = vld [vmem:[#allocation8 + $0x98] sm:$0xff]  }
 0x291   : > { %5888 = vmatprep.mubr.bf16.mxu0 %v6968_v57  ;;  %5946 = vmatprep.subr.bf16.mxu1 %v6373_v7 }
 0x292   : > { %v5506_v62 = vpop.f32.mrb[24].mxu1  ;;  %v5590_v48 = vpop.f32.mrb[60].mxu0  ;;  %6029 = vmatpush3.bf16.msra.mxu0 %v6381_v9 }
 0x293   : > { %v1257_v35 = vpop.f32.mrb[25].mxu1  ;;  %v1594_v55 = vpop.f32.mrb[61].mxu0  ;;  %6030 = vmatprep.subr.bf16.mxu0 %v6382_v33 }
 0x294   : > { %v5507_v5 = vpop.f32.mrb[26].mxu1  ;;  %v5591_v21 = vpop.f32.mrb[62].mxu0  ;;  %5947 = vmatpush3.bf16.msra.mxu1 %v6373_v7  ;;  %v7528_v54 = vadd.f32 %v1580_v44, %v1257_v35 }
 0x295   : > { %v1260_v29 = vpop.f32.mrb[27].mxu1  ;;  %v1597_v36 = vpop.f32.mrb[63].mxu0  ;;  %5948 = vmatprep.subr.bf16.mxu1 %v6374_v23 }
 0x296   : > { %6031 = vmatpush3.bf16.msra.mxu0 %v6382_v33  ;;  %v7530_v31 = vadd.f32 %v1583_v22, %v1260_v29  ;;  %v6387_v22 = vld [vmem:[#allocation8 + $0x178] sm:$0xff]  }
 0x297   : > { %5805 = vmatmul.mubr.bf16.gmra.mrb[132].mxu1 %v8420_v38  ;;  %5889 = vmatmul.mubr.bf16.gmra.mrb[168].mxu0 %v8420_v38 }
 0x298   : > { %5808 = vmatprep.mubr.bf16.mxu1 %v6973_v59  ;;  %5892 = vmatprep.mubr.bf16.mxu0 %v7010_v28  ;;  %v6386_v59 = vld [vmem:[#allocation8 + $0x170] sm:$0xff]  }
 0x299   : > { %5949 = vmatpush3.bf16.msra.mxu1 %v6374_v23  ;;  %6032 = vmatprep.subr.bf16.mxu0 %v6383_v43  ;;  %v6380_v23 = vld [vmem:[#allocation8 + $0xb0] sm:$0xff]  }
 0x29a   : > { %v5510_v1 = vpop.f32.mrb[28].mxu1  ;;  %v5594_v12 = vpop.f32.mrb[64].mxu0  ;;  %5950 = vmatprep.subr.bf16.mxu1 %v6375_v32  ;;  %6033 = vmatpush3.bf16.msra.mxu0 %v6383_v43 }
 0x29b   : > { %v1271_v63 = vpop.f32.mrb[29].mxu1  ;;  %v1608_v26 = vpop.f32.mrb[65].mxu0  ;;  %6034 = vmatprep.subr.bf16.mxu0 %v6384_v52 }
 0x29c   : > { %v5511_v10 = vpop.f32.mrb[30].mxu1  ;;  %v5595_v9 = vpop.f32.mrb[66].mxu0  ;;  %v7536_v39 = vadd.f32 %v1594_v55, %v1271_v63 }
 0x29d   : > { %v1274_v44 = vpop.f32.mrb[31].mxu1  ;;  %v1611_v30 = vpop.f32.mrb[67].mxu0  ;;  %5951 = vmatpush3.bf16.msra.mxu1 %v6375_v32 }
 0x29e   : > { %5952 = vmatprep.subr.bf16.mxu1 %v6376_v50  ;;  %6035 = vmatpush3.bf16.msra.mxu0 %v6384_v52  ;;  %v7538_v4 = vadd.f32 %v1597_v36, %v1274_v44  ;;  %v7552_v52 = vld [vmem:[#allocation8 + $0x200] sm:$0xff]  }
 0x29f   : > { %5809 = vmatmul.mubr.bf16.gmra.mrb[136].mxu1 %v8420_v38  ;;  %5893 = vmatmul.mubr.bf16.gmra.mrb[172].mxu0 %v8420_v38 }
 0x2a0   : > { %5812 = vmatprep.mubr.bf16.mxu1 %v6968_v57  ;;  %5896 = vmatprep.mubr.bf16.mxu0 %v6998_v24  ;;  %v6385_v57 = vld [vmem:[#allocation8 + $0xb8] sm:$0xff]  }
 0x2a1   : > { %5953 = vmatpush3.bf16.msra.mxu1 %v6376_v50  ;;  %6036 = vmatprep.subr.bf16.mxu0 %v6386_v59 }
 0x2a2   : > { %v5514_v7 = vpop.f32.mrb[32].mxu1  ;;  %v5598_v33 = vpop.f32.mrb[68].mxu0  ;;  %5954 = vmatprep.subr.bf16.mxu1 %v6377_v27  ;;  %6037 = vmatpush3.bf16.msra.mxu0 %v6386_v59 }
 0x2a3   : > { %v1285_v62 = vpop.f32.mrb[33].mxu1  ;;  %v1622_v48 = vpop.f32.mrb[69].mxu0  ;;  %6038 = vmatprep.subr.bf16.mxu0 %v6387_v22 }
 0x2a4   : > { %v5515_v35 = vpop.f32.mrb[34].mxu1  ;;  %v5599_v55 = vpop.f32.mrb[70].mxu0  ;;  %v7544_v5 = vadd.f32 %v1608_v26, %v1285_v62 }
 0x2a5   : > { %v1288_v21 = vpop.f32.mrb[35].mxu1  ;;  %v1625_v29 = vpop.f32.mrb[71].mxu0  ;;  %5955 = vmatpush3.bf16.msra.mxu1 %v6377_v27 }
 0x2a6   : > { %5956 = vmatprep.subr.bf16.mxu1 %v6380_v23  ;;  %6039 = vmatpush3.bf16.msra.mxu0 %v6387_v22  ;;  %v7546_v36 = vadd.f32 %v1611_v30, %v1288_v21 }
 0x2a7   : > { %5813 = vmatmul.mubr.bf16.gmra.mrb[140].mxu1 %v8420_v38  ;;  %5897 = vmatmul.mubr.bf16.gmra.mrb[176].mxu0 %v8420_v38 }
 0x2a8   : > { %5816 = vmatprep.mubr.bf16.mxu1 %v7010_v28  ;;  %5900 = vmatprep.mubr.bf16.mxu0 %v7047_v0 }
 0x2a9   : > { %5957 = vmatpush3.bf16.msra.mxu1 %v6380_v23 }
 0x2aa   : > { %v5518_v43 = vpop.f32.mrb[36].mxu1  ;;  %v5602_v32 = vpop.f32.mrb[72].mxu0  ;;  %5958 = vmatprep.subr.bf16.mxu1 %v6385_v57 }
 0x2ab   : > { %v1299_v1 = vpop.f32.mrb[37].mxu1  ;;  %v1636_v12 = vpop.f32.mrb[73].mxu0 }
 0x2ac   : > { %v5519_v50 = vpop.f32.mrb[38].mxu1  ;;  %v5603_v63 = vpop.f32.mrb[74].mxu0  ;;  %v7554_v26 = vadd.f32 %v1622_v48, %v1299_v1 }
 0x2ad   : > { %v1302_v10 = vpop.f32.mrb[39].mxu1  ;;  %v1639_v9 = vpop.f32.mrb[75].mxu0  ;;  %5959 = vmatpush3.bf16.msra.mxu1 %v6385_v57 }
 0x2ae   : > { %6104 = vmatprep.subr.bf16.mxu1 %v7552_v52  ;;  %v7557_v28 = vadd.f32 %v1625_v29, %v1302_v10 }
 0x2af   : > { %5817 = vmatmul.mubr.bf16.gmra.mrb[144].mxu1 %v8420_v38  ;;  %5901 = vmatmul.mubr.bf16.gmra.mrb[180].mxu0 %v8420_v38 }
 0x2b0   : > { %5820 = vmatprep.mubr.bf16.mxu1 %v6998_v24  ;;  %5904 = vmatprep.mubr.bf16.mxu0 %v7037_v60 }
 0x2b2   : > { %v5522_v44 = vpop.f32.mrb[40].mxu1  ;;  %v5606_v30 = vpop.f32.mrb[76].mxu0 }
 0x2b3   : > { %v1313_v59 = vpop.f32.mrb[41].mxu1  ;;  %v1650_v27 = vpop.f32.mrb[77].mxu0 }
 0x2b4   : > { %v5523_v22 = vpop.f32.mrb[42].mxu1  ;;  %v5607_v7 = vpop.f32.mrb[78].mxu0  ;;  %v7563_v33 = vadd.f32 %v1636_v12, %v1313_v59 }
 0x2b5   : > { %v1316_v23 = vpop.f32.mrb[43].mxu1  ;;  %v1653_v62 = vpop.f32.mrb[79].mxu0 }
 0x2b6   : > { %v7565_v48 = vadd.f32 %v1639_v9, %v1316_v23 }
 0x2b7   : > { %5821 = vmatmul.mubr.bf16.gmra.mrb[148].mxu1 %v8420_v38  ;;  %5905 = vmatmul.mubr.bf16.gmra.mrb[184].mxu0 %v8420_v38 }
 0x2b8   : > { %5824 = vmatprep.mubr.bf16.mxu1 %v7047_v0  ;;  %5908 = vmatprep.mubr.bf16.mxu0 %v7092_v45 }
 0x2ba   : > { %v5526_v24 = vpop.f32.mrb[44].mxu1  ;;  %v5610_v35 = vpop.f32.mrb[80].mxu0 }
 0x2bb   : > { %v1327_v55 = vpop.f32.mrb[45].mxu1  ;;  %v1664_v21 = vpop.f32.mrb[81].mxu0 }
 0x2bc   : > { %v5527_v29 = vpop.f32.mrb[46].mxu1  ;;  %v5611_v57 = vpop.f32.mrb[82].mxu0  ;;  %v7571_v43 = vadd.f32 %v1650_v27, %v1327_v55 }
 0x2bd   : > { %v1330_v32 = vpop.f32.mrb[47].mxu1  ;;  %v1667_v1 = vpop.f32.mrb[83].mxu0 }
 0x2be   : > { %v7573_v12 = vadd.f32 %v1653_v62, %v1330_v32 }
 0x2bf   : > { %5825 = vmatmul.mubr.bf16.gmra.mrb[152].mxu1 %v8420_v38  ;;  %5909 = vmatmul.mubr.bf16.gmra.mrb[188].mxu0 %v8420_v38 }
 0x2c0   : > { %5828 = vmatprep.mubr.bf16.mxu1 %v7037_v60  ;;  %5912 = vmatprep.mubr.bf16.mxu0 %v7078_v41 }
 0x2c2   : > { %v5530_v0 = vpop.f32.mrb[48].mxu1  ;;  %v5614_v50 = vpop.f32.mrb[84].mxu0 }
 0x2c3   : > { %v1341_v63 = vpop.f32.mrb[49].mxu1  ;;  %v1678_v10 = vpop.f32.mrb[85].mxu0 }
 0x2c4   : > { %v5531_v9 = vpop.f32.mrb[50].mxu1  ;;  %v5615_v44 = vpop.f32.mrb[86].mxu0  ;;  %v7579_v30 = vadd.f32 %v1664_v21, %v1341_v63 }
 0x2c5   : > { %v1344_v59 = vpop.f32.mrb[51].mxu1  ;;  %v1681_v27 = vpop.f32.mrb[87].mxu0 }
 0x2c6   : > { %v7581_v22 = vadd.f32 %v1667_v1, %v1344_v59 }
 0x2c7   : > { %5829 = vmatmul.mubr.bf16.gmra.mrb[156].mxu1 %v8420_v38  ;;  %5913 = vmatmul.mubr.bf16.gmra.mrb[192].mxu0 %v8420_v38 }
 0x2c8   : > { %5832 = vmatprep.mubr.bf16.mxu1 %v7092_v45  ;;  %5916 = vmatprep.mubr.bf16.mxu0 %v7140_v15 }
 0x2ca   : > { %v5534_v60 = vpop.f32.mrb[52].mxu1  ;;  %v5618_v7 = vpop.f32.mrb[88].mxu0 }
 0x2cb   : > { %v1355_v23 = vpop.f32.mrb[53].mxu1  ;;  %v1692_v62 = vpop.f32.mrb[89].mxu0 }
 0x2cc   : > { %v5535_v24 = vpop.f32.mrb[54].mxu1  ;;  %v5619_v35 = vpop.f32.mrb[90].mxu0  ;;  %v7587_v55 = vadd.f32 %v1678_v10, %v1355_v23 }
 0x2cd   : > { %v1358_v21 = vpop.f32.mrb[55].mxu1  ;;  %v1695_v29 = vpop.f32.mrb[91].mxu0 }
 0x2ce   : > { %v7589_v57 = vadd.f32 %v1681_v27, %v1358_v21 }
 0x2cf   : > { %5833 = vmatmul.mubr.bf16.gmra.mrb[160].mxu1 %v8420_v38  ;;  %5917 = vmatmul.mubr.bf16.gmra.mrb[196].mxu0 %v8420_v38 }
 0x2d0   : > { %5836 = vmatprep.mubr.bf16.mxu1 %v7078_v41  ;;  %5920 = vmatprep.mubr.bf16.mxu0 %v7131_v53 }
 0x2d2   : > { %v5538_v45 = vpop.f32.mrb[56].mxu1  ;;  %v5622_v32 = vpop.f32.mrb[92].mxu0 }
 0x2d3   : > { %v1369_v1 = vpop.f32.mrb[57].mxu1  ;;  %v1706_v0 = vpop.f32.mrb[93].mxu0 }
 0x2d4   : > { %v5539_v50 = vpop.f32.mrb[58].mxu1  ;;  %v5623_v63 = vpop.f32.mrb[94].mxu0  ;;  %v7595_v10 = vadd.f32 %v1692_v62, %v1369_v1 }
 0x2d5   : > { %v1372_v9 = vpop.f32.mrb[59].mxu1  ;;  %v1709_v44 = vpop.f32.mrb[95].mxu0 }
 0x2d6   : > { %v7597_v59 = vadd.f32 %v1695_v29, %v1372_v9 }
 0x2d7   : > { %5837 = vmatmul.mubr.bf16.gmra.mrb[164].mxu1 %v8420_v38  ;;  %5921 = vmatmul.mubr.bf16.gmra.mrb[200].mxu0 %v8420_v38 }
 0x2d8   : > { %5840 = vmatprep.mubr.bf16.mxu1 %v7140_v15  ;;  %5924 = vmatprep.mubr.bf16.mxu0 %v7197_v6 }
 0x2da   : > { %v5542_v41 = vpop.f32.mrb[60].mxu1  ;;  %v5722_v27 = vpop.f32.mrb[96].mxu0 }
 0x2db   : > { %v1383_v60 = vpop.f32.mrb[61].mxu1  ;;  %v2190_v7 = vpop.f32.mrb[97].mxu0 }
 0x2dc   : > { %v5543_v23 = vpop.f32.mrb[62].mxu1  ;;  %v5723_v24 = vpop.f32.mrb[98].mxu0  ;;  %v7603_v62 = vadd.f32 %v1706_v0, %v1383_v60 }
 0x2dd   : > { %v1386_v35 = vpop.f32.mrb[63].mxu1  ;;  %v2193_v21 = vpop.f32.mrb[99].mxu0 }
 0x2de   : > { %v7605_v29 = vadd.f32 %v1709_v44, %v1386_v35 }
 0x2df   : > { %5841 = vmatmul.mubr.bf16.gmra.mrb[168].mxu1 %v8420_v38  ;;  %5925 = vmatmul.mubr.bf16.gmra.mrb[204].mxu0 %v8420_v38 }
 0x2e0   : > { %5844 = vmatprep.mubr.bf16.mxu1 %v7131_v53  ;;  %5928 = vmatprep.mubr.bf16.mxu0 %v7187_v13 }
 0x2e2   : > { %v5642_v15 = vpop.f32.mrb[64].mxu1  ;;  %v5726_v45 = vpop.f32.mrb[100].mxu0 }
 0x2e3   : > { %v1836_v32 = vpop.f32.mrb[65].mxu1  ;;  %v2204_v1 = vpop.f32.mrb[101].mxu0 }
 0x2e4   : > { %v2059_v50 = vadd.f32 %v1836_v32, %v7478_v8  ;;  %v5643_v0 = vpop.f32.mrb[66].mxu1  ;;  %v5727_v63 = vpop.f32.mrb[102].mxu0 }
 0x2e5   : > { %v1839_v9 = vpop.f32.mrb[67].mxu1  ;;  %v2207_v41 = vpop.f32.mrb[103].mxu0 }
 0x2e6   : > { %v2060_v44 = vadd.f32 %v1839_v9, %v7481_v34  ;;  %v7613_v27 = vadd.f32 %v2190_v7, %v2059_v50 }
 0x2e7   : > { %5845 = vmatmul.mubr.bf16.gmra.mrb[172].mxu1 %v8420_v38  ;;  %5929 = vmatmul.mubr.bf16.gmra.mrb[208].mxu0 %v8420_v38 }
 0x2e8   : > { %v7617_v53 = vadd.f32 %v2193_v21, %v2060_v44  ;;  %5848 = vmatprep.mubr.bf16.mxu1 %v7197_v6  ;;  %5932 = vmatprep.mubr.bf16.mxu0 %v7246_v42 }
 0x2ea   : > { %v5646_v60 = vpop.f32.mrb[68].mxu1  ;;  %v5730_v8 = vpop.f32.mrb[104].mxu0 }
 0x2eb   : > { %v1850_v23 = vpop.f32.mrb[69].mxu1  ;;  %v2218_v24 = vpop.f32.mrb[105].mxu0 }
 0x2ec   : > { %v2061_v35 = vadd.f32 %v1850_v23, %v7487_v17  ;;  %v5647_v15 = vpop.f32.mrb[70].mxu1  ;;  %v5731_v34 = vpop.f32.mrb[106].mxu0 }
 0x2ed   : > { %v1853_v7 = vpop.f32.mrb[71].mxu1  ;;  %v2221_v45 = vpop.f32.mrb[107].mxu0 }
 0x2ee   : > { %v2062_v32 = vadd.f32 %v1853_v7, %v7489_v3  ;;  %v7623_v50 = vadd.f32 %v2204_v1, %v2061_v35 }
 0x2ef   : > { %5849 = vmatmul.mubr.bf16.gmra.mrb[176].mxu1 %v8420_v38  ;;  %5933 = vmatmul.mubr.bf16.gmra.mrb[212].mxu0 %v8420_v38 }
 0x2f0   : > { %v7627_v6 = vadd.f32 %v2207_v41, %v2062_v32  ;;  %5852 = vmatprep.mubr.bf16.mxu1 %v7187_v13  ;;  %5936 = vmatprep.mubr.bf16.mxu0 %v7240_v19 }
 0x2f2   : > { %v5650_v21 = vpop.f32.mrb[72].mxu1  ;;  %v5734_v17 = vpop.f32.mrb[108].mxu0 }
 0x2f3   : > { %v1864_v0 = vpop.f32.mrb[73].mxu1  ;;  %v2232_v63 = vpop.f32.mrb[109].mxu0 }
 0x2f4   : > { %v2063_v9 = vadd.f32 %v1864_v0, %v7495_v40  ;;  %v5651_v44 = vpop.f32.mrb[74].mxu1  ;;  %v5735_v3 = vpop.f32.mrb[110].mxu0 }
 0x2f5   : > { %v1867_v1 = vpop.f32.mrb[75].mxu1  ;;  %v2235_v60 = vpop.f32.mrb[111].mxu0 }
 0x2f6   : > { %v2064_v8 = vadd.f32 %v1867_v1, %v7497_v11  ;;  %v7633_v23 = vadd.f32 %v2218_v24, %v2063_v9 }
 0x2f7   : > { %5853 = vmatmul.mubr.bf16.gmra.mrb[180].mxu1 %v8420_v38  ;;  %5937 = vmatmul.mubr.bf16.gmra.mrb[216].mxu0 %v8420_v38 }
 0x2f8   : > { %v7637_v13 = vadd.f32 %v2221_v45, %v2064_v8  ;;  %5856 = vmatprep.mubr.bf16.mxu1 %v7246_v42  ;;  %5940 = vmatprep.mubr.bf16.mxu0 %v8420_v38  ;;  %v3180_v42 = vsel %vm3170_vm1, %v6966_v56, %v7113_v18  ;;  %v3183_v56 = vsel %vm3170_vm1, %v7113_v18, %v6960_v47 }
 0x2fa   : > { %v5654_v41 = vpop.f32.mrb[76].mxu1  ;;  %v5738_v40 = vpop.f32.mrb[112].mxu0 }
 0x2fb   : > { %v1878_v35 = vpop.f32.mrb[77].mxu1  ;;  %v2246_v15 = vpop.f32.mrb[113].mxu0 }
 0x2fc   : > { %v2065_v34 = vadd.f32 %v1878_v35, %v7503_v2  ;;  %v5655_v7 = vpop.f32.mrb[78].mxu1  ;;  %v5739_v11 = vpop.f32.mrb[114].mxu0 }
 0x2fd   : > { %v1881_v24 = vpop.f32.mrb[79].mxu1  ;;  %v2249_v32 = vpop.f32.mrb[115].mxu0 }
 0x2fe   : > { %v2066_v21 = vadd.f32 %v1881_v24, %v7505_v37  ;;  %v7643_v17 = vadd.f32 %v2232_v63, %v2065_v34  ;;  %v6389_v24 = vld [vmem:[#allocation8 + $0x208] sm:$0xff]  }
 0x2ff   : > { %5857 = vmatmul.mubr.bf16.gmra.mrb[184].mxu1 %v8420_v38  ;;  %5941 = vmatmul.mubr.bf16.gmra.mrb[220].mxu0 %v8420_v38 }
 0x300   : > { %v7650_v45 = vadd.f32 %v2235_v60, %v2066_v21  ;;  %5860 = vmatprep.mubr.bf16.mxu1 %v7240_v19  ;;  %6040 = vmatprep.mubr.bf16.mxu0 %v3180_v42  ;;  %v7664_v19 = vsel %vm3170_vm1, %v6971_v58, %v7113_v18 }
 0x302   : > { %v5658_v2 = vpop.f32.mrb[80].mxu1  ;;  %v5742_v0 = vpop.f32.mrb[116].mxu0 }
 0x303   : > { %v1892_v9 = vpop.f32.mrb[81].mxu1  ;;  %v2260_v44 = vpop.f32.mrb[117].mxu0  ;;  %v7680_v2 = vsel %vm3170_vm1, %v7113_v18, %v6995_v20 }
 0x304   : > { %v2067_v37 = vadd.f32 %v1892_v9, %v7511_v16  ;;  %v5659_v63 = vpop.f32.mrb[82].mxu1  ;;  %v5743_v3 = vpop.f32.mrb[118].mxu0 }
 0x305   : > { %v1895_v1 = vpop.f32.mrb[83].mxu1  ;;  %v2263_v8 = vpop.f32.mrb[119].mxu0 }
 0x306   : > { %v2068_v41 = vadd.f32 %v1895_v1, %v7513_v61  ;;  %v7655_v40 = vadd.f32 %v2246_v15, %v2067_v37 }
 0x307   : > { %5861 = vmatmul.mubr.bf16.gmra.mrb[188].mxu1 %v8420_v38  ;;  %6041 = vmatmul.mubr.bf16.vlgmr.msra.gmra.mrb[224].mxu0 %v3183_v56 }
 0x308   : > { %v7666_v16 = vadd.f32 %v2249_v32, %v2068_v41  ;;  %6044 = vmatprep.mubr.bf16.mxu0 %v7664_v19  ;;  %5960 = vmatprep.mubr.bf16.mxu1 %v7113_v18  ;;  %v3177_v32 = vsel %vm3170_vm1, %v7113_v18, %v6963_v51  ;;  %v6390_v51 = vld [vmem:[#allocation8 + $0x210] sm:$0xff]   ;;  %v6391_v41 = vld [vmem:[#allocation8 + $0x218] sm:$0xff]  }
 0x30a   : > { %v5662_v61 = vpop.f32.mrb[84].mxu1  ;;  %v5746_v60 = vpop.f32.mrb[120].mxu0 }
 0x30b   : > { %v1906_v35 = vpop.f32.mrb[85].mxu1  ;;  %v2274_v15 = vpop.f32.mrb[121].mxu0 }
 0x30c   : > { %v2069_v47 = vadd.f32 %v1906_v35, %v7519_v49  ;;  %v5663_v34 = vpop.f32.mrb[86].mxu1  ;;  %v5747_v38 = vpop.f32.mrb[122].mxu0 }
 0x30d   : > { %v1909_v7 = vpop.f32.mrb[87].mxu1  ;;  %v2277_v11 = vpop.f32.mrb[123].mxu0 }
 0x30e   : > { %v2070_v58 = vadd.f32 %v1909_v7, %v7521_v46  ;;  %v7672_v21 = vadd.f32 %v2260_v44, %v2069_v47  ;;  %v7689_v46 = vsel %vm3170_vm1, %v7001_v25, %v7113_v18 }
 0x30f   : > { %5961 = vmatmul.mubr.bf16.vlgmr.msra.gmra.mrb[192].mxu1 %v3177_v32  ;;  %6045 = vmatmul.mubr.bf16.gmra.mrb[228].mxu0 %v7680_v2  ;;  %v8422_v32 = vld [vmem:[#allocation19_spill] sm:$0xff] }
 0x310   : > { %v7683_v49 = vadd.f32 %v2263_v8, %v2070_v58  ;;  %6105 = vmatpush3.bf16.msra.mxu1 %v7552_v52  ;;  %5964 = vmatprep.mubr.bf16.mxu1 %v3180_v42  ;;  %v7699_v8 = vsel %vm3170_vm1, %v7113_v18, %v6991_v14  ;;  %v6392_v14 = vld [vmem:[#allocation8 + $0x220] sm:$0xff]  }
 0x311   : > { %6048 = vmatprep.mubr.bf16.mxu0 %v7689_v46  ;;  %6106 = vmatprep.subr.bf16.mxu1 %v6389_v24 }
 0x312   : > { %v5666_v0 = vpop.f32.mrb[88].mxu1  ;;  %v5750_v20 = vpop.f32.mrb[124].mxu0 }
 0x313   : > { %v1920_v9 = vpop.f32.mrb[89].mxu1  ;;  %v2288_v44 = vpop.f32.mrb[125].mxu0  ;;  %v6393_v0 = vld [vmem:[#allocation8 + $0x228] sm:$0xff]  }
 0x314   : > { %v2071_v37 = vadd.f32 %v1920_v9, %v7528_v54  ;;  %v5667_v63 = vpop.f32.mrb[90].mxu1  ;;  %v5751_v3 = vpop.f32.mrb[126].mxu0  ;;  %6107 = vmatpush3.bf16.msra.mxu1 %v6389_v24  ;;  %v8421_v54 = vld [vmem:[#allocation17_spill] sm:$0xff] }
 0x315   : > { %v1923_v52 = vpop.f32.mrb[91].mxu1  ;;  %v2291_v42 = vpop.f32.mrb[127].mxu0  ;;  %6108 = vmatprep.subr.bf16.mxu1 %v6390_v51  ;;  %v7705_v61 = vsel %vm3170_vm1, %v8421_v54, %v7113_v18 }
 0x316   : > { %v2072_v1 = vadd.f32 %v1923_v52, %v7530_v31  ;;  %v7694_v25 = vadd.f32 %v2274_v15, %v2071_v37  ;;  %v6394_v37 = vld [vmem:[#allocation8 + $0x230] sm:$0xff]  }
 0x317   : > { %5965 = vmatmul.mubr.bf16.gmra.mrb[196].mxu1 %v3183_v56  ;;  %6049 = vmatmul.mubr.bf16.gmra.mrb[232].mxu0 %v7699_v8 }
 0x318   : > { %v7707_v60 = vadd.f32 %v2277_v11, %v2072_v1  ;;  %5968 = vmatprep.mubr.bf16.mxu1 %v7664_v19  ;;  %6052 = vmatprep.mubr.bf16.mxu0 %v7705_v61 }
 0x319   : > { %6109 = vmatpush3.bf16.msra.mxu1 %v6390_v51  ;;  %v7718_v51 = vsel %vm3170_vm1, %v7113_v18, %v8422_v32 }
 0x31a   : > { %v5670_v31 = vpop.f32.mrb[92].mxu1  ;;  %v5754_v35 = vpop.f32.mrb[128].mxu0  ;;  %6110 = vmatprep.subr.bf16.mxu1 %v6391_v41 }
 0x31b   : > { %v1934_v15 = vpop.f32.mrb[93].mxu1  ;;  %v2302_v56 = vpop.f32.mrb[129].mxu0 }
 0x31c   : > { %v2073_v47 = vadd.f32 %v1934_v15, %v7536_v39  ;;  %v5671_v34 = vpop.f32.mrb[94].mxu1  ;;  %v5755_v38 = vpop.f32.mrb[130].mxu0  ;;  %v8423_v39 = vld [vmem:[#allocation20_spill] sm:$0xff]  ;;  %v8424_v15 = vld [vmem:[#allocation18_spill] sm:$0xff] }
 0x31d   : > { %v1937_v7 = vpop.f32.mrb[95].mxu1  ;;  %v2305_v24 = vpop.f32.mrb[131].mxu0  ;;  %6111 = vmatpush3.bf16.msra.mxu1 %v6391_v41  ;;  %v7725_v20 = vsel %vm3170_vm1, %v8423_v39, %v7113_v18 }
 0x31e   : > { %v2074_v11 = vadd.f32 %v1937_v7, %v7538_v4  ;;  %v7713_v58 = vadd.f32 %v2288_v44, %v2073_v47  ;;  %6112 = vmatprep.subr.bf16.mxu1 %v6392_v14  ;;  %v6395_v47 = vld [vmem:[#allocation8 + $0x238] sm:$0xff]  }
 0x31f   : > { %5969 = vmatmul.mubr.bf16.gmra.mrb[200].mxu1 %v7680_v2  ;;  %6053 = vmatmul.mubr.bf16.gmra.mrb[236].mxu0 %v7718_v51 }
 0x320   : > { %v7727_v9 = vadd.f32 %v2291_v42, %v2074_v11  ;;  %5972 = vmatprep.mubr.bf16.mxu1 %v7689_v46  ;;  %6056 = vmatprep.mubr.bf16.mxu0 %v7725_v20 }
 0x321   : > { %6113 = vmatpush3.bf16.msra.mxu1 %v6392_v14  ;;  %v7738_v14 = vsel %vm3170_vm1, %v7113_v18, %v8424_v15 }
 0x322   : > { %v5674_v4 = vpop.f32.mrb[96].mxu1  ;;  %v5758_v44 = vpop.f32.mrb[132].mxu0  ;;  %6114 = vmatprep.subr.bf16.mxu1 %v6393_v0 }
 0x323   : > { %v1948_v63 = vpop.f32.mrb[97].mxu1  ;;  %v2316_v3 = vpop.f32.mrb[133].mxu0 }
 0x324   : > { %v2075_v52 = vadd.f32 %v1948_v63, %v7544_v5  ;;  %v5675_v1 = vpop.f32.mrb[98].mxu1  ;;  %v5759_v41 = vpop.f32.mrb[134].mxu0  ;;  %v8425_v5 = vld [vmem:[#allocation21_spill] sm:$0xff] }
 0x325   : > { %v1951_v54 = vpop.f32.mrb[99].mxu1  ;;  %v2319_v31 = vpop.f32.mrb[135].mxu0  ;;  %6115 = vmatpush3.bf16.msra.mxu1 %v6393_v0  ;;  %v7745_v34 = vsel %vm3170_vm1, %v8425_v5, %v7113_v18 }
 0x326   : > { %v2076_v42 = vadd.f32 %v1951_v54, %v7546_v36  ;;  %v7733_v35 = vadd.f32 %v2302_v56, %v2075_v52  ;;  %6116 = vmatprep.subr.bf16.mxu1 %v6394_v37  ;;  %v8426_v52 = vld [vmem:[#allocation23_spill] sm:$0xff] }
 0x327   : > { %5973 = vmatmul.mubr.bf16.gmra.mrb[204].mxu1 %v7699_v8  ;;  %6057 = vmatmul.mubr.bf16.gmra.mrb[240].mxu0 %v7738_v14 }
 0x328   : > { %v7747_v38 = vadd.f32 %v2305_v24, %v2076_v42  ;;  %5976 = vmatprep.mubr.bf16.mxu1 %v7705_v61  ;;  %6060 = vmatprep.mubr.bf16.mxu0 %v7745_v34 }
 0x329   : > { %6117 = vmatpush3.bf16.msra.mxu1 %v6394_v37  ;;  %v7758_v37 = vsel %vm3170_vm1, %v7113_v18, %v8426_v52 }
 0x32a   : > { %v5678_v36 = vpop.f32.mrb[100].mxu1  ;;  %v5762_v56 = vpop.f32.mrb[136].mxu0  ;;  %6118 = vmatprep.subr.bf16.mxu1 %v6395_v47 }
 0x32b   : > { %v1962_v7 = vpop.f32.mrb[101].mxu1  ;;  %v2330_v11 = vpop.f32.mrb[137].mxu0 }
 0x32c   : > { %v2077_v32 = vadd.f32 %v1962_v7, %v7554_v26  ;;  %v5679_v0 = vpop.f32.mrb[102].mxu1  ;;  %v5763_v39 = vpop.f32.mrb[138].mxu0  ;;  %v8427_v26 = vld [vmem:[#allocation24_spill] sm:$0xff] }
 0x32d   : > { %v1965_v4 = vpop.f32.mrb[103].mxu1  ;;  %v2333_v44 = vpop.f32.mrb[139].mxu0  ;;  %6119 = vmatpush3.bf16.msra.mxu1 %v6395_v47  ;;  %v7765_v1 = vsel %vm3170_vm1, %v8427_v26, %v7113_v18  ;;  %v8429_v39 = vld [vmem:[#allocation25_spill] sm:$0xff] }
 0x32e   : > { %v2078_v24 = vadd.f32 %v1965_v4, %v7557_v28  ;;  %v7753_v63 = vadd.f32 %v2316_v3, %v2077_v32 }
 0x32f   : > { %5977 = vmatmul.mubr.bf16.gmra.mrb[208].mxu1 %v7718_v51  ;;  %6061 = vmatmul.mubr.bf16.gmra.mrb[244].mxu0 %v7758_v37 }
 0x330   : > { %v7767_v41 = vadd.f32 %v2319_v31, %v2078_v24  ;;  %5980 = vmatprep.mubr.bf16.mxu1 %v7725_v20  ;;  %6064 = vmatprep.mubr.bf16.mxu0 %v7765_v1  ;;  %v8428_v31 = vld [vmem:[#allocation22_spill] sm:$0xff] }
 0x331   : > { %v7778_v0 = vsel %vm3170_vm1, %v7113_v18, %v8428_v31 }
 0x332   : > { %v5682_v28 = vpop.f32.mrb[104].mxu1  ;;  %v5766_v3 = vpop.f32.mrb[140].mxu0 }
 0x333   : > { %v1976_v54 = vpop.f32.mrb[105].mxu1  ;;  %v2344_v42 = vpop.f32.mrb[141].mxu0 }
 0x334   : > { %v2079_v15 = vadd.f32 %v1976_v54, %v7563_v33  ;;  %v5683_v47 = vpop.f32.mrb[106].mxu1  ;;  %v5767_v5 = vpop.f32.mrb[142].mxu0  ;;  %v7785_v33 = vsel %vm3170_vm1, %v8429_v39, %v7113_v18 }
 0x335   : > { %v1979_v36 = vpop.f32.mrb[107].mxu1  ;;  %v2347_v56 = vpop.f32.mrb[143].mxu0 }
 0x336   : > { %v2080_v7 = vadd.f32 %v1979_v36, %v7565_v48  ;;  %v7773_v32 = vadd.f32 %v2330_v11, %v2079_v15 }
 0x337   : > { %5981 = vmatmul.mubr.bf16.gmra.mrb[212].mxu1 %v7738_v14  ;;  %6065 = vmatmul.mubr.bf16.gmra.mrb[248].mxu0 %v7778_v0 }
 0x338   : > { %v7787_v4 = vadd.f32 %v2333_v44, %v2080_v7  ;;  %5984 = vmatprep.mubr.bf16.mxu1 %v7745_v34  ;;  %6068 = vmatprep.mubr.bf16.mxu0 %v7785_v33  ;;  %v8430_v44 = vld [vmem:[#allocation27_spill] sm:$0xff] }
 0x339   : > { %v7798_v36 = vsel %vm3170_vm1, %v7113_v18, %v8430_v44  ;;  %v8435_v44 = vld [vmem:[#allocation30_spill] sm:$0xff] }
 0x33a   : > { %v5686_v48 = vpop.f32.mrb[108].mxu1  ;;  %v5770_v11 = vpop.f32.mrb[144].mxu0 }
 0x33b   : > { %v1990_v24 = vpop.f32.mrb[109].mxu1  ;;  %v2358_v52 = vpop.f32.mrb[145].mxu0 }
 0x33c   : > { %v2081_v26 = vadd.f32 %v1990_v24, %v7571_v43  ;;  %v5687_v28 = vpop.f32.mrb[110].mxu1  ;;  %v5771_v3 = vpop.f32.mrb[146].mxu0  ;;  %v8431_v43 = vld [vmem:[#allocation29_spill] sm:$0xff] }
 0x33d   : > { %v1993_v54 = vpop.f32.mrb[111].mxu1  ;;  %v2361_v15 = vpop.f32.mrb[147].mxu0 }
 0x33e   : > { %v2082_v47 = vadd.f32 %v1993_v54, %v7573_v12  ;;  %v7793_v5 = vadd.f32 %v2344_v42, %v2081_v26 }
 0x33f   : > { %5985 = vmatmul.mubr.bf16.gmra.mrb[216].mxu1 %v7758_v37  ;;  %6069 = vmatmul.mubr.bf16.gmra.mrb[252].mxu0 %v7798_v36 }
 0x340   : > { %v7802_v7 = vadd.f32 %v2347_v56, %v2082_v47  ;;  %5988 = vmatprep.mubr.bf16.mxu1 %v7765_v1  ;;  %6072 = vmatprep.mubr.bf16.mxu0 %v8431_v43  ;;  %v8433_v56 = vld [vmem:[#allocation28_spill] sm:$0xff] }
 0x342   : > { %v5690_v31 = vpop.f32.mrb[112].mxu1  ;;  %v5774_v39 = vpop.f32.mrb[148].mxu0 }
 0x343   : > { %v2004_v12 = vpop.f32.mrb[113].mxu1  ;;  %v2372_v42 = vpop.f32.mrb[149].mxu0 }
 0x344   : > { %v2083_v48 = vadd.f32 %v2004_v12, %v7579_v30  ;;  %v5691_v11 = vpop.f32.mrb[114].mxu1  ;;  %v5775_v24 = vpop.f32.mrb[150].mxu0 }
 0x345   : > { %v2007_v26 = vpop.f32.mrb[115].mxu1  ;;  %v2375_v28 = vpop.f32.mrb[151].mxu0 }
 0x346   : > { %v2084_v3 = vadd.f32 %v2007_v26, %v7581_v22  ;;  %v7808_v54 = vadd.f32 %v2358_v52, %v2083_v48 }
 0x347   : > { %5989 = vmatmul.mubr.bf16.gmra.mrb[220].mxu1 %v7778_v0  ;;  %6073 = vmatmul.mubr.bf16.gmra.mrb[0].mxu0 %v8433_v56 }
 0x348   : > { %8432 = vst [vmem:[#allocation17_spill] sm:$0xff] %v7808_v54  ;;  %v7812_v47 = vadd.f32 %v2361_v15, %v2084_v3  ;;  %5992 = vmatprep.mubr.bf16.mxu1 %v7785_v33  ;;  %6076 = vmatprep.mubr.bf16.mxu0 %v8435_v44  ;;  %v8437_v15 = vld [vmem:[#allocation32_spill] sm:$0xff] }
 0x34a   : > { %8434 = vst [vmem:[#allocation19_spill] sm:$0xff] %v7812_v47  ;;  %v5694_v31 = vpop.f32.mrb[116].mxu1  ;;  %v5778_v30 = vpop.f32.mrb[152].mxu0 }
 0x34b   : > { %v2018_v39 = vpop.f32.mrb[117].mxu1  ;;  %v2386_v12 = vpop.f32.mrb[153].mxu0  ;;  %v8439_v31 = vld [vmem:[#allocation33_spill] sm:$0xff] }
 0x34c   : > { %v2085_v11 = vadd.f32 %v2018_v39, %v7587_v55  ;;  %v5695_v24 = vpop.f32.mrb[118].mxu1  ;;  %v5779_v22 = vpop.f32.mrb[154].mxu0 }
 0x34d   : > { %v2021_v52 = vpop.f32.mrb[119].mxu1  ;;  %v2389_v48 = vpop.f32.mrb[155].mxu0 }
 0x34e   : > { %v2086_v26 = vadd.f32 %v2021_v52, %v7589_v57  ;;  %v7818_v54 = vadd.f32 %v2372_v42, %v2085_v11 }
 0x34f   : > { %5993 = vmatmul.mubr.bf16.gmra.mrb[224].mxu1 %v7798_v36  ;;  %6077 = vmatmul.mubr.bf16.gmra.mrb[4].mxu0 %v8437_v15 }
 0x350   : > { %8436 = vst [vmem:[#allocation20_spill] sm:$0xff] %v7818_v54  ;;  %v7822_v3 = vadd.f32 %v2375_v28, %v2086_v26  ;;  %5996 = vmatprep.mubr.bf16.mxu1 %v8431_v43  ;;  %6080 = vmatprep.mubr.bf16.mxu0 %v8439_v31  ;;  %v8441_v28 = vld [vmem:[#allocation31_spill] sm:$0xff] }
 0x352   : > { %8438 = vst [vmem:[#allocation18_spill] sm:$0xff] %v7822_v3  ;;  %v5698_v30 = vpop.f32.mrb[120].mxu1  ;;  %v5782_v55 = vpop.f32.mrb[156].mxu0 }
 0x353   : > { %v2032_v39 = vpop.f32.mrb[121].mxu1  ;;  %v2400_v24 = vpop.f32.mrb[157].mxu0  ;;  %v8443_v30 = vld [vmem:[#allocation34_spill] sm:$0xff] }
 0x354   : > { %v2087_v22 = vadd.f32 %v2032_v39, %v7595_v10  ;;  %v5699_v47 = vpop.f32.mrb[122].mxu1  ;;  %v5783_v57 = vpop.f32.mrb[158].mxu0 }
 0x355   : > { %v2035_v42 = vpop.f32.mrb[123].mxu1  ;;  %v2403_v11 = vpop.f32.mrb[159].mxu0 }
 0x356   : > { %v2088_v52 = vadd.f32 %v2035_v42, %v7597_v59  ;;  %v7828_v54 = vadd.f32 %v2386_v12, %v2087_v22 }
 0x357   : > { %5997 = vmatmul.mubr.bf16.gmra.mrb[228].mxu1 %v8433_v56  ;;  %6081 = vmatmul.mubr.bf16.gmra.mrb[8].mxu0 %v8441_v28 }
 0x358   : > { %8440 = vst [vmem:[#allocation21_spill] sm:$0xff] %v7828_v54  ;;  %v7832_v26 = vadd.f32 %v2389_v48, %v2088_v52  ;;  %6000 = vmatprep.mubr.bf16.mxu1 %v8435_v44  ;;  %6084 = vmatprep.mubr.bf16.mxu0 %v8443_v30  ;;  %v8445_v48 = vld [vmem:[#allocation36_spill] sm:$0xff] }
 0x35a   : > { %8442 = vst [vmem:[#allocation23_spill] sm:$0xff] %v7832_v26  ;;  %v5702_v55 = vpop.f32.mrb[124].mxu1  ;;  %v5882_v10 = vpop.f32.mrb[160].mxu0 }
 0x35b   : > { %v2046_v47 = vpop.f32.mrb[125].mxu1  ;;  %v2898_v39 = vpop.f32.mrb[161].mxu0  ;;  %v8447_v55 = vld [vmem:[#allocation37_spill] sm:$0xff] }
 0x35c   : > { %v2089_v57 = vadd.f32 %v2046_v47, %v7603_v62  ;;  %v5703_v3 = vpop.f32.mrb[126].mxu1  ;;  %v5883_v59 = vpop.f32.mrb[162].mxu0 }
 0x35d   : > { %v2049_v12 = vpop.f32.mrb[127].mxu1  ;;  %v2901_v22 = vpop.f32.mrb[163].mxu0 }
 0x35e   : > { %v2090_v42 = vadd.f32 %v2049_v12, %v7605_v29  ;;  %v7838_v54 = vadd.f32 %v2400_v24, %v2089_v57 }
 0x35f   : > { %6001 = vmatmul.mubr.bf16.gmra.mrb[232].mxu1 %v8437_v15  ;;  %6085 = vmatmul.mubr.bf16.gmra.mrb[12].mxu0 %v8445_v48 }
 0x360   : > { %8444 = vst [vmem:[#allocation24_spill] sm:$0xff] %v7838_v54  ;;  %v7842_v52 = vadd.f32 %v2403_v11, %v2090_v42  ;;  %6004 = vmatprep.mubr.bf16.mxu1 %v8439_v31  ;;  %6088 = vmatprep.mubr.bf16.mxu0 %v8447_v55  ;;  %v8449_v11 = vld [vmem:[#allocation35_spill] sm:$0xff] }
 0x362   : > { %8446 = vst [vmem:[#allocation22_spill] sm:$0xff] %v7842_v52  ;;  %v5802_v10 = vpop.f32.mrb[128].mxu1  ;;  %v5886_v62 = vpop.f32.mrb[164].mxu0 }
 0x363   : > { %v2544_v3 = vpop.f32.mrb[129].mxu1  ;;  %v2912_v47 = vpop.f32.mrb[165].mxu0  ;;  %v8451_v10 = vld [vmem:[#allocation38_spill] sm:$0xff] }
 0x364   : > { %v2767_v59 = vadd.f32 %v2544_v3, %v7613_v27  ;;  %v5803_v26 = vpop.f32.mrb[130].mxu1  ;;  %v5887_v29 = vpop.f32.mrb[166].mxu0 }
 0x365   : > { %v2547_v24 = vpop.f32.mrb[131].mxu1  ;;  %v2915_v57 = vpop.f32.mrb[167].mxu0 }
 0x366   : > { %v2768_v12 = vadd.f32 %v2547_v24, %v7617_v53  ;;  %v7848_v54 = vadd.f32 %v2898_v39, %v2767_v59 }
 0x367   : > { %6005 = vmatmul.mubr.bf16.gmra.mrb[236].mxu1 %v8441_v28  ;;  %6089 = vmatmul.mubr.bf16.gmra.mrb[16].mxu0 %v8449_v11 }
 0x368   : > { %8448 = vst [vmem:[#allocation25_spill] sm:$0xff] %v7848_v54  ;;  %v7852_v42 = vadd.f32 %v2901_v22, %v2768_v12  ;;  %6008 = vmatprep.mubr.bf16.mxu1 %v8443_v30  ;;  %6092 = vmatprep.mubr.bf16.mxu0 %v8451_v10  ;;  %v8453_v22 = vld [vmem:[#allocation40_spill] sm:$0xff] }
 0x36a   : > { %8450 = vst [vmem:[#allocation27_spill] sm:$0xff] %v7852_v42  ;;  %v5806_v62 = vpop.f32.mrb[132].mxu1  ;;  %v5890_v27 = vpop.f32.mrb[168].mxu0 }
 0x36b   : > { %v2558_v26 = vpop.f32.mrb[133].mxu1  ;;  %v2926_v3 = vpop.f32.mrb[169].mxu0  ;;  %v8455_v62 = vld [vmem:[#allocation42_spill] sm:$0xff] }
 0x36c   : > { %v2769_v29 = vadd.f32 %v2558_v26, %v7623_v50  ;;  %v5807_v52 = vpop.f32.mrb[134].mxu1  ;;  %v5891_v53 = vpop.f32.mrb[170].mxu0 }
 0x36d   : > { %v2561_v39 = vpop.f32.mrb[135].mxu1  ;;  %v2929_v59 = vpop.f32.mrb[171].mxu0 }
 0x36e   : > { %v2770_v24 = vadd.f32 %v2561_v39, %v7627_v6  ;;  %v7858_v54 = vadd.f32 %v2912_v47, %v2769_v29 }
 0x36f   : > { %6009 = vmatmul.mubr.bf16.gmra.mrb[240].mxu1 %v8445_v48  ;;  %6093 = vmatmul.mubr.bf16.gmra.mrb[20].mxu0 %v8453_v22 }
 0x370   : > { %8452 = vst [vmem:[#allocation29_spill] sm:$0xff] %v7858_v54  ;;  %v7862_v12 = vadd.f32 %v2915_v57, %v2770_v24  ;;  %6012 = vmatprep.mubr.bf16.mxu1 %v8447_v55  ;;  %6096 = vmatprep.mubr.bf16.mxu0 %v8455_v62  ;;  %v8457_v57 = vld [vmem:[#allocation39_spill] sm:$0xff] }
 0x372   : > { %8454 = vst [vmem:[#allocation28_spill] sm:$0xff] %v7862_v12  ;;  %v5810_v27 = vpop.f32.mrb[136].mxu1  ;;  %v5894_v50 = vpop.f32.mrb[172].mxu0 }
 0x373   : > { %v2572_v52 = vpop.f32.mrb[137].mxu1  ;;  %v2940_v26 = vpop.f32.mrb[173].mxu0  ;;  %v8458_v27 = vld [vmem:[#allocation41_spill] sm:$0xff] }
 0x374   : > { %v2771_v53 = vadd.f32 %v2572_v52, %v7633_v23  ;;  %v5811_v42 = vpop.f32.mrb[138].mxu1  ;;  %v5895_v6 = vpop.f32.mrb[174].mxu0 }
 0x375   : > { %v2575_v47 = vpop.f32.mrb[139].mxu1  ;;  %v2943_v29 = vpop.f32.mrb[175].mxu0 }
 0x376   : > { %v2772_v39 = vadd.f32 %v2575_v47, %v7637_v13  ;;  %v7868_v54 = vadd.f32 %v2926_v3, %v2771_v53 }
 0x377   : > { %6013 = vmatmul.mubr.bf16.gmra.mrb[244].mxu1 %v8449_v11  ;;  %6097 = vmatmul.mubr.bf16.gmra.mrb[24].mxu0 %v8457_v57 }
 0x378   : > { %8456 = vst [vmem:[#allocation30_spill] sm:$0xff] %v7868_v54  ;;  %v7872_v24 = vadd.f32 %v2929_v59, %v2772_v39  ;;  %6016 = vmatprep.mubr.bf16.mxu1 %v8451_v10  ;;  %6100 = vmatprep.mubr.bf16.mxu0 %v8458_v27 }
 0x37a   : > { %v5814_v50 = vpop.f32.mrb[140].mxu1  ;;  %v5898_v23 = vpop.f32.mrb[176].mxu0 }
 0x37b   : > { %v2586_v42 = vpop.f32.mrb[141].mxu1  ;;  %v2954_v52 = vpop.f32.mrb[177].mxu0 }
 0x37c   : > { %v2773_v6 = vadd.f32 %v2586_v42, %v7643_v17  ;;  %v5815_v12 = vpop.f32.mrb[142].mxu1  ;;  %v5899_v13 = vpop.f32.mrb[178].mxu0 }
 0x37d   : > { %v2589_v3 = vpop.f32.mrb[143].mxu1  ;;  %v2957_v53 = vpop.f32.mrb[179].mxu0 }
 0x37e   : > { %v2774_v47 = vadd.f32 %v2589_v3, %v7650_v45  ;;  %v7878_v54 = vadd.f32 %v2940_v26, %v2773_v6 }
 0x37f   : > { %6017 = vmatmul.mubr.bf16.gmra.mrb[248].mxu1 %v8453_v22  ;;  %6101 = vmatmul.mubr.bf16.gmra.mrb[28].mxu0 %v7113_v18 }
 0x380   : > { %v7882_v59 = vadd.f32 %v2943_v29, %v2774_v47  ;;  %6020 = vmatprep.mubr.bf16.mxu1 %v8455_v62 }
 0x382   : > { %v5818_v39 = vpop.f32.mrb[144].mxu1  ;;  %v5902_v50 = vpop.f32.mrb[180].mxu0 }
 0x383   : > { %v2600_v23 = vpop.f32.mrb[145].mxu1  ;;  %v2968_v17 = vpop.f32.mrb[181].mxu0 }
 0x384   : > { %v2775_v12 = vadd.f32 %v2600_v23, %v7655_v40  ;;  %v5819_v42 = vpop.f32.mrb[146].mxu1  ;;  %v5903_v13 = vpop.f32.mrb[182].mxu0 }
 0x385   : > { %v2603_v27 = vpop.f32.mrb[147].mxu1  ;;  %v2971_v45 = vpop.f32.mrb[183].mxu0 }
 0x386   : > { %v2776_v26 = vadd.f32 %v2603_v27, %v7666_v16  ;;  %v7887_v6 = vadd.f32 %v2954_v52, %v2775_v12 }
 0x387   : > { %6021 = vmatmul.mubr.bf16.gmra.mrb[252].mxu1 %v8457_v57 }
 0x388   : > { %v7890_v29 = vadd.f32 %v2957_v53, %v2776_v26  ;;  %6120 = vmatprep.mubr.bf16.mxu1 %v7664_v19 }
 0x38a   : > { %v5822_v3 = vpop.f32.mrb[148].mxu1  ;;  %v5906_v47 = vpop.f32.mrb[184].mxu0 }
 0x38b   : > { %v2614_v39 = vpop.f32.mrb[149].mxu1  ;;  %v2982_v50 = vpop.f32.mrb[185].mxu0 }
 0x38c   : > { %v2777_v40 = vadd.f32 %v2614_v39, %v7672_v21  ;;  %v5823_v23 = vpop.f32.mrb[150].mxu1  ;;  %v5907_v42 = vpop.f32.mrb[186].mxu0 }
 0x38d   : > { %v2617_v13 = vpop.f32.mrb[151].mxu1  ;;  %v2985_v18 = vpop.f32.mrb[187].mxu0 }
 0x38e   : > { %v2778_v16 = vadd.f32 %v2617_v13, %v7683_v49  ;;  %v7895_v27 = vadd.f32 %v2968_v17, %v2777_v40 }
 0x38f   : > { %6121 = vmatmul.mubr.bf16.vlgmr.msra.gmra.mrb[0].mxu1 %v7680_v2 }
 0x390   : > { %v7898_v52 = vadd.f32 %v2971_v45, %v2778_v16  ;;  %6124 = vmatprep.mubr.bf16.mxu1 %v7689_v46 }
 0x392   : > { %v5826_v19 = vpop.f32.mrb[152].mxu1  ;;  %v5910_v53 = vpop.f32.mrb[188].mxu0 }
 0x393   : > { %v2628_v12 = vpop.f32.mrb[153].mxu1  ;;  %v2996_v26 = vpop.f32.mrb[189].mxu0 }
 0x394   : > { %v2779_v21 = vadd.f32 %v2628_v12, %v7694_v25  ;;  %v5827_v3 = vpop.f32.mrb[154].mxu1  ;;  %v5911_v47 = vpop.f32.mrb[190].mxu0 }
 0x395   : > { %v2631_v39 = vpop.f32.mrb[155].mxu1  ;;  %v2999_v23 = vpop.f32.mrb[191].mxu0 }
 0x396   : > { %v2780_v49 = vadd.f32 %v2631_v39, %v7707_v60  ;;  %v7903_v17 = vadd.f32 %v2982_v50, %v2779_v21 }
 0x397   : > { %6125 = vmatmul.mubr.bf16.gmra.mrb[4].mxu1 %v7699_v8 }
 0x398   : > { %v7906_v2 = vadd.f32 %v2985_v18, %v2780_v49  ;;  %6128 = vmatprep.mubr.bf16.mxu1 %v7705_v61 }
 0x39a   : > { %v5830_v46 = vpop.f32.mrb[156].mxu1  ;;  %v5914_v45 = vpop.f32.mrb[192].mxu0 }
 0x39b   : > { %v2642_v40 = vpop.f32.mrb[157].mxu1  ;;  %v3010_v42 = vpop.f32.mrb[193].mxu0 }
 0x39c   : > { %v2781_v25 = vadd.f32 %v2642_v40, %v7713_v58  ;;  %v5831_v13 = vpop.f32.mrb[158].mxu1  ;;  %v5915_v16 = vpop.f32.mrb[194].mxu0 }
 0x39d   : > { %v2645_v19 = vpop.f32.mrb[159].mxu1  ;;  %v3013_v53 = vpop.f32.mrb[195].mxu0 }
 0x39e   : > { %v2782_v60 = vadd.f32 %v2645_v19, %v7727_v9  ;;  %v7911_v50 = vadd.f32 %v2996_v26, %v2781_v25  ;;  %v6396_v19 = vld [vmem:[#allocation9] sm:$0xff]  }
 0x39f   : > { %6129 = vmatmul.mubr.bf16.gmra.mrb[8].mxu1 %v7718_v51  ;;  %6184 = vmatprep.subr.bf16.mxu0 %v6396_v19 }
 0x3a0   : > { %v7914_v18 = vadd.f32 %v2999_v23, %v2782_v60  ;;  %6132 = vmatprep.mubr.bf16.mxu1 %v7725_v20  ;;  %6185 = vmatpush3.bf16.msra.mxu0 %v6396_v19 }
 0x3a2   : > { %v5834_v8 = vpop.f32.mrb[160].mxu1  ;;  %v5918_v61 = vpop.f32.mrb[196].mxu0 }
 0x3a3   : > { %v2656_v12 = vpop.f32.mrb[161].mxu1  ;;  %v3024_v21 = vpop.f32.mrb[197].mxu0 }
 0x3a4   : > { %v2783_v58 = vadd.f32 %v2656_v12, %v7733_v35  ;;  %v5835_v3 = vpop.f32.mrb[162].mxu1  ;;  %v5919_v47 = vpop.f32.mrb[198].mxu0 }
 0x3a5   : > { %v2659_v39 = vpop.f32.mrb[163].mxu1  ;;  %v3027_v49 = vpop.f32.mrb[199].mxu0 }
 0x3a6   : > { %v2784_v9 = vadd.f32 %v2659_v39, %v7747_v38  ;;  %v7919_v26 = vadd.f32 %v3010_v42, %v2783_v58 }
 0x3a7   : > { %6133 = vmatmul.mubr.bf16.gmra.mrb[12].mxu1 %v7738_v14 }
 0x3a8   : > { %v7922_v51 = vadd.f32 %v3013_v53, %v2784_v9  ;;  %6136 = vmatprep.mubr.bf16.mxu1 %v7745_v34 }
 0x3aa   : > { %v5838_v20 = vpop.f32.mrb[164].mxu1  ;;  %v5922_v23 = vpop.f32.mrb[200].mxu0 }
 0x3ab   : > { %v2670_v46 = vpop.f32.mrb[165].mxu1  ;;  %v3038_v45 = vpop.f32.mrb[201].mxu0 }
 0x3ac   : > { %v2785_v35 = vadd.f32 %v2670_v46, %v7753_v63  ;;  %v5839_v40 = vpop.f32.mrb[166].mxu1  ;;  %v5923_v25 = vpop.f32.mrb[202].mxu0 }
 0x3ad   : > { %v2673_v13 = vpop.f32.mrb[167].mxu1  ;;  %v3041_v16 = vpop.f32.mrb[203].mxu0 }
 0x3ae   : > { %v2786_v38 = vadd.f32 %v2673_v13, %v7767_v41  ;;  %v7927_v42 = vadd.f32 %v3024_v21, %v2785_v35  ;;  %v6397_v35 = vld [vmem:[#allocation9 + $0x8] sm:$0xff]   ;;  %v8459_v13 = vld [vmem:[#allocation17_spill] sm:$0xff] }
 0x3af   : > { %6137 = vmatmul.mubr.bf16.gmra.mrb[16].mxu1 %v7758_v37  ;;  %6186 = vmatprep.subr.bf16.mxu0 %v6397_v35 }
 0x3b0   : > { %v7930_v14 = vadd.f32 %v3027_v49, %v2786_v38  ;;  %6140 = vmatprep.mubr.bf16.mxu1 %v7765_v1  ;;  %6187 = vmatpush3.bf16.msra.mxu0 %v6397_v35  ;;  %v8463_v35 = vld [vmem:[#allocation21_spill] sm:$0xff] }
 0x3b2   : > { %v5842_v34 = vpop.f32.mrb[168].mxu1  ;;  %v5926_v53 = vpop.f32.mrb[204].mxu0 }
 0x3b3   : > { %v2684_v63 = vpop.f32.mrb[169].mxu1  ;;  %v3052_v60 = vpop.f32.mrb[205].mxu0  ;;  %v8460_v53 = vld [vmem:[#allocation19_spill] sm:$0xff] }
 0x3b4   : > { %v2787_v8 = vadd.f32 %v2684_v63, %v7773_v32  ;;  %v5843_v61 = vpop.f32.mrb[170].mxu1  ;;  %v5927_v12 = vpop.f32.mrb[206].mxu0 }
 0x3b5   : > { %v2687_v41 = vpop.f32.mrb[171].mxu1  ;;  %v3055_v21 = vpop.f32.mrb[207].mxu0 }
 0x3b6   : > { %v2788_v58 = vadd.f32 %v2687_v41, %v7787_v4  ;;  %v7935_v3 = vadd.f32 %v3038_v45, %v2787_v8  ;;  %v8461_v41 = vld [vmem:[#allocation20_spill] sm:$0xff] }
 0x3b7   : > { %6141 = vmatmul.mubr.bf16.gmra.mrb[20].mxu1 %v7778_v0 }
 0x3b8   : > { %v7938_v37 = vadd.f32 %v3041_v16, %v2788_v58  ;;  %6144 = vmatprep.mubr.bf16.mxu1 %v7785_v33 }
 0x3ba   : > { %v5846_v1 = vpop.f32.mrb[172].mxu1  ;;  %v5930_v47 = vpop.f32.mrb[208].mxu0 }
 0x3bb   : > { %v2698_v39 = vpop.f32.mrb[173].mxu1  ;;  %v3066_v49 = vpop.f32.mrb[209].mxu0 }
 0x3bc   : > { %v2789_v32 = vadd.f32 %v2698_v39, %v7793_v5  ;;  %v5847_v9 = vpop.f32.mrb[174].mxu1  ;;  %v5931_v20 = vpop.f32.mrb[210].mxu0 }
 0x3bd   : > { %v2701_v23 = vpop.f32.mrb[175].mxu1  ;;  %v3069_v46 = vpop.f32.mrb[211].mxu0  ;;  %v6398_v20 = vld [vmem:[#allocation9 + $0x10] sm:$0xff]  }
 0x3be   : > { %v2790_v4 = vadd.f32 %v2701_v23, %v7802_v7  ;;  %v7943_v45 = vadd.f32 %v3052_v60, %v2789_v32  ;;  %v8462_v32 = vld [vmem:[#allocation18_spill] sm:$0xff]  ;;  %6188 = vmatprep.subr.bf16.mxu0 %v6398_v20 }
 0x3bf   : > { %6145 = vmatmul.mubr.bf16.gmra.mrb[24].mxu1 %v7798_v36  ;;  %6189 = vmatpush3.bf16.msra.mxu0 %v6398_v20  ;;  %v8467_v20 = vld [vmem:[#allocation25_spill] sm:$0xff] }
 0x3c0   : > { %v7946_v0 = vadd.f32 %v3055_v21, %v2790_v4  ;;  %6148 = vmatprep.mubr.bf16.mxu1 %v8431_v43 }
 0x3c2   : > { %v5850_v33 = vpop.f32.mrb[176].mxu1  ;;  %v5934_v40 = vpop.f32.mrb[212].mxu0 }
 0x3c3   : > { %v2712_v5 = vpop.f32.mrb[177].mxu1  ;;  %v3080_v25 = vpop.f32.mrb[213].mxu0 }
 0x3c4   : > { %v2791_v16 = vadd.f32 %v2712_v5, %v8459_v13  ;;  %v5851_v38 = vpop.f32.mrb[178].mxu1  ;;  %v5935_v19 = vpop.f32.mrb[214].mxu0 }
 0x3c5   : > { %v2715_v7 = vpop.f32.mrb[179].mxu1  ;;  %v3083_v34 = vpop.f32.mrb[215].mxu0  ;;  %v8464_v38 = vld [vmem:[#allocation23_spill] sm:$0xff] }
 0x3c6   : > { %v2792_v63 = vadd.f32 %v2715_v7, %v8460_v53  ;;  %v7951_v60 = vadd.f32 %v3066_v49, %v2791_v16 }
 0x3c7   : > { %6149 = vmatmul.mubr.bf16.gmra.mrb[28].mxu1 %v8433_v56 }
 0x3c8   : > { %v7954_v36 = vadd.f32 %v3069_v46, %v2792_v63  ;;  %6152 = vmatprep.mubr.bf16.mxu1 %v8435_v44  ;;  %v8465_v63 = vld [vmem:[#allocation24_spill] sm:$0xff] }
 0x3ca   : > { %v5854_v43 = vpop.f32.mrb[180].mxu1  ;;  %v5938_v8 = vpop.f32.mrb[216].mxu0 }
 0x3cb   : > { %v2726_v61 = vpop.f32.mrb[181].mxu1  ;;  %v3094_v12 = vpop.f32.mrb[217].mxu0 }
 0x3cc   : > { %v2793_v21 = vadd.f32 %v2726_v61, %v8461_v41  ;;  %v5855_v58 = vpop.f32.mrb[182].mxu1  ;;  %v5939_v1 = vpop.f32.mrb[218].mxu0 }
 0x3cd   : > { %v2729_v47 = vpop.f32.mrb[183].mxu1  ;;  %v3097_v39 = vpop.f32.mrb[219].mxu0 }
 0x3ce   : > { %v2794_v9 = vadd.f32 %v2729_v47, %v8462_v32  ;;  %v7959_v49 = vadd.f32 %v3080_v25, %v2793_v21  ;;  %v6399_v47 = vld [vmem:[#allocation9 + $0x18] sm:$0xff]  }
 0x3cf   : > { %6153 = vmatmul.mubr.bf16.gmra.mrb[32].mxu1 %v8437_v15  ;;  %6190 = vmatprep.subr.bf16.mxu0 %v6399_v47 }
 0x3d0   : > { %v7962_v56 = vadd.f32 %v3083_v34, %v2794_v9  ;;  %6156 = vmatprep.mubr.bf16.mxu1 %v8439_v31  ;;  %6191 = vmatpush3.bf16.msra.mxu0 %v6399_v47  ;;  %v6403_v47 = vld [vmem:[#allocation9 + $0x38] sm:$0xff]  }
 0x3d2   : > { %v5858_v44 = vpop.f32.mrb[184].mxu1  ;;  %v5942_v23 = vpop.f32.mrb[220].mxu0 }
 0x3d3   : > { %v2740_v46 = vpop.f32.mrb[185].mxu1  ;;  %v3108_v4 = vpop.f32.mrb[221].mxu0 }
 0x3d4   : > { %v2795_v33 = vadd.f32 %v2740_v46, %v8463_v35  ;;  %v5859_v40 = vpop.f32.mrb[186].mxu1  ;;  %v5943_v5 = vpop.f32.mrb[222].mxu0 }
 0x3d5   : > { %v2743_v13 = vpop.f32.mrb[187].mxu1  ;;  %v3111_v25 = vpop.f32.mrb[223].mxu0 }
 0x3d6   : > { %v7966_v16 = vadd.f32 %v3094_v12, %v2795_v33  ;;  %v2796_v15 = vadd.f32 %v2743_v13, %v8464_v38  ;;  %v8466_v12 = vld [vmem:[#allocation22_spill] sm:$0xff]  ;;  %v8468_v33 = vld [vmem:[#allocation27_spill] sm:$0xff] }
 0x3d7   : > { %6157 = vmatmul.mubr.bf16.gmra.mrb[36].mxu1 %v8441_v28  ;;  %v6401_v38 = vld [vmem:[#allocation9 + $0x28] sm:$0xff]  }
 0x3d8   : > { %v7970_v19 = vadd.f32 %v3097_v39, %v2796_v15  ;;  %6160 = vmatprep.mubr.bf16.mxu1 %v8443_v30 }
 0x3da   : > { %v5862_v31 = vpop.f32.mrb[188].mxu1  ;;  %v6042_v7 = vpop.f32.mrb[224].mxu0 }
 0x3db   : > { %v2754_v34 = vpop.f32.mrb[189].mxu1  ;;  %v3744_v53 = vpop.f32.mrb[225].mxu0  ;;  %v8469_v7 = vld [vmem:[#allocation29_spill] sm:$0xff] }
 0x3dc   : > { %v2797_v43 = vadd.f32 %v2754_v34, %v8465_v63  ;;  %v5863_v8 = vpop.f32.mrb[190].mxu1  ;;  %v6043_v61 = vpop.f32.mrb[226].mxu0 }
 0x3dd   : > { %v2757_v41 = vpop.f32.mrb[191].mxu1  ;;  %v3747_v21 = vpop.f32.mrb[227].mxu0 }
 0x3de   : > { %v2798_v58 = vadd.f32 %v2757_v41, %v8466_v12  ;;  %v7975_v1 = vadd.f32 %v3108_v4, %v2797_v43  ;;  %v6402_v41 = vld [vmem:[#allocation9 + $0x30] sm:$0xff]  }
 0x3df   : > { %6161 = vmatmul.mubr.bf16.gmra.mrb[40].mxu1 %v8445_v48  ;;  %v6400_v48 = vld [vmem:[#allocation9 + $0x20] sm:$0xff]  }
 0x3e0   : > { %6164 = vmatprep.mubr.bf16.mxu1 %v8447_v55  ;;  %v7979_v28 = vadd.f32 %v3111_v25, %v2798_v58  ;;  %6192 = vmatprep.subr.bf16.mxu0 %v6400_v48 }
 0x3e1   : > { %6193 = vmatpush3.bf16.msra.mxu0 %v6400_v48 }
 0x3e2   : > { %v5962_v30 = vpop.f32.mrb[192].mxu1  ;;  %v6046_v39 = vpop.f32.mrb[228].mxu0  ;;  %6194 = vmatprep.subr.bf16.mxu0 %v6401_v38 }
 0x3e3   : > { %v3382_v32 = vpop.f32.mrb[193].mxu1  ;;  %v3758_v9 = vpop.f32.mrb[229].mxu0 }
 0x3e4   : > { %v3605_v44 = vadd.f32 %v3382_v32, %v8467_v20  ;;  %v5963_v23 = vpop.f32.mrb[194].mxu1  ;;  %v6047_v46 = vpop.f32.mrb[230].mxu0  ;;  %v8471_v32 = vld [vmem:[#allocation30_spill] sm:$0xff] }
 0x3e5   : > { %v3385_v35 = vpop.f32.mrb[195].mxu1  ;;  %v3761_v4 = vpop.f32.mrb[231].mxu0  ;;  %6195 = vmatpush3.bf16.msra.mxu0 %v6401_v38 }
 0x3e6   : > { %v3606_v40 = vadd.f32 %v3385_v35, %v8468_v33  ;;  %v7983_v5 = vadd.f32 %v3744_v53, %v3605_v44  ;;  %6196 = vmatprep.subr.bf16.mxu0 %v6402_v41  ;;  %v8472_v35 = vld [vmem:[#allocation41_spill] sm:$0xff] }
 0x3e7   : > { %6165 = vmatmul.mubr.bf16.gmra.mrb[44].mxu1 %v8449_v11  ;;  %v8470_v11 = vld [vmem:[#allocation28_spill] sm:$0xff] }
 0x3e8   : > { %6168 = vmatprep.mubr.bf16.mxu1 %v8451_v10  ;;  %v7987_v55 = vadd.f32 %v3747_v21, %v3606_v40 }
 0x3e9   : > { %6197 = vmatpush3.bf16.msra.mxu0 %v6402_v41 }
 0x3ea   : > { %v5966_v13 = vpop.f32.mrb[196].mxu1  ;;  %v6050_v25 = vpop.f32.mrb[232].mxu0  ;;  %6198 = vmatprep.subr.bf16.mxu0 %v6403_v47 }
 0x3eb   : > { %v3396_v15 = vpop.f32.mrb[197].mxu1  ;;  %v3772_v31 = vpop.f32.mrb[233].mxu0 }
 0x3ec   : > { %v3607_v34 = vadd.f32 %v3396_v15, %v8469_v7  ;;  %v5967_v63 = vpop.f32.mrb[198].mxu1  ;;  %v6051_v43 = vpop.f32.mrb[234].mxu0 }
 0x3ed   : > { %v3399_v53 = vpop.f32.mrb[199].mxu1  ;;  %v3775_v8 = vpop.f32.mrb[235].mxu0  ;;  %6199 = vmatpush3.bf16.msra.mxu0 %v6403_v47  ;;  %v8473_v63 = vld [vmem:[#allocation26_spill] sm:$0xff] }
 0x3ee   : > { %v3608_v61 = vadd.f32 %v3399_v53, %v8470_v11  ;;  %v7991_v10 = vadd.f32 %v3758_v9, %v3607_v34 }
 0x3ef   : > { %6169 = vmatmul.mubr.bf16.gmra.mrb[48].mxu1 %v8453_v22 }
 0x3f0   : > { %6172 = vmatprep.mubr.bf16.mxu1 %v8455_v62  ;;  %v7995_v21 = vadd.f32 %v3761_v4, %v3608_v61 }
 0x3f2   : > { %v5970_v12 = vpop.f32.mrb[200].mxu1  ;;  %v6054_v58 = vpop.f32.mrb[236].mxu0 }
 0x3f3   : > { %v3410_v30 = vpop.f32.mrb[201].mxu1  ;;  %v3786_v39 = vpop.f32.mrb[237].mxu0 }
 0x3f4   : > { %v3609_v20 = vadd.f32 %v3410_v30, %v8471_v32  ;;  %v5971_v44 = vpop.f32.mrb[202].mxu1  ;;  %v6055_v23 = vpop.f32.mrb[238].mxu0 }
 0x3f5   : > { %v3413_v9 = vpop.f32.mrb[203].mxu1  ;;  %v3789_v46 = vpop.f32.mrb[239].mxu0 }
 0x3f6   : > { %v3610_v22 = vadd.f32 %v3413_v9, %v7872_v24  ;;  %v7999_v62 = vadd.f32 %v3772_v31, %v3609_v20 }
 0x3f7   : > { %6173 = vmatmul.mubr.bf16.gmra.mrb[52].mxu1 %v8457_v57 }
 0x3f8   : > { %6176 = vmatprep.mubr.bf16.mxu1 %v8472_v35  ;;  %v8003_v4 = vadd.f32 %v3775_v8, %v3610_v22 }
 0x3fa   : > { %v5974_v33 = vpop.f32.mrb[204].mxu1  ;;  %v6058_v40 = vpop.f32.mrb[240].mxu0 }
 0x3fb   : > { %v3424_v48 = vpop.f32.mrb[205].mxu1  ;;  %v3800_v13 = vpop.f32.mrb[241].mxu0 }
 0x3fc   : > { %v3611_v25 = vadd.f32 %v3424_v48, %v7878_v54  ;;  %v5975_v38 = vpop.f32.mrb[206].mxu1  ;;  %v6059_v15 = vpop.f32.mrb[242].mxu0 }
 0x3fd   : > { %v3427_v7 = vpop.f32.mrb[207].mxu1  ;;  %v3803_v34 = vpop.f32.mrb[243].mxu0 }
 0x3fe   : > { %v3612_v24 = vadd.f32 %v3427_v7, %v7882_v59  ;;  %v8007_v31 = vadd.f32 %v3786_v39, %v3611_v25 }
 0x3ff   : > { %6177 = vmatmul.mubr.bf16.gmra.mrb[56].mxu1 %v8473_v63 }
 0x400   : > { %6180 = vmatprep.mubr.bf16.mxu1 %v8473_v63  ;;  %v8011_v57 = vadd.f32 %v3789_v46, %v3612_v24 }
 0x402   : > { %v5978_v43 = vpop.f32.mrb[208].mxu1  ;;  %v6062_v53 = vpop.f32.mrb[244].mxu0 }
 0x403   : > { %v3438_v8 = vpop.f32.mrb[209].mxu1  ;;  %v3814_v11 = vpop.f32.mrb[245].mxu0 }
 0x404   : > { %v3613_v54 = vadd.f32 %v3438_v8, %v7887_v6  ;;  %v5979_v61 = vpop.f32.mrb[210].mxu1  ;;  %v6063_v41 = vpop.f32.mrb[246].mxu0 }
 0x405   : > { %v3441_v12 = vpop.f32.mrb[211].mxu1  ;;  %v3817_v58 = vpop.f32.mrb[247].mxu0 }
 0x406   : > { %v3614_v59 = vadd.f32 %v3441_v12, %v7890_v29  ;;  %v8015_v47 = vadd.f32 %v3800_v13, %v3613_v54 }
 0x407   : > { %6181 = vmatmul.mubr.bf16.gmra.mrb[60].mxu1 %v8473_v63 }
 0x408   : > { %v8018_v30 = vadd.f32 %v3803_v34, %v3614_v59 }
 0x40a   : > { %v5982_v39 = vpop.f32.mrb[212].mxu1  ;;  %v6066_v32 = vpop.f32.mrb[248].mxu0 }
 0x40b   : > { %v3452_v20 = vpop.f32.mrb[213].mxu1  ;;  %v3828_v44 = vpop.f32.mrb[249].mxu0 }
 0x40c   : > { %v3615_v23 = vadd.f32 %v3452_v20, %v7895_v27  ;;  %v5983_v9 = vpop.f32.mrb[214].mxu1  ;;  %v6067_v6 = vpop.f32.mrb[250].mxu0 }
 0x40d   : > { %v3455_v46 = vpop.f32.mrb[215].mxu1  ;;  %v3831_v22 = vpop.f32.mrb[251].mxu0 }
 0x40e   : > { %v3616_v35 = vadd.f32 %v3455_v46, %v7898_v52  ;;  %v8022_v33 = vadd.f32 %v3814_v11, %v3615_v23 }
 0x410   : > { %v8024_v29 = vadd.f32 %v3817_v58, %v3616_v35 }
 0x412   : > { %v5986_v40 = vpop.f32.mrb[216].mxu1  ;;  %v6070_v48 = vpop.f32.mrb[252].mxu0 }
 0x413   : > { %v3466_v13 = vpop.f32.mrb[217].mxu1  ;;  %v3842_v25 = vpop.f32.mrb[253].mxu0 }
 0x414   : > { %v3617_v38 = vadd.f32 %v3466_v13, %v7903_v17  ;;  %v5987_v15 = vpop.f32.mrb[218].mxu1  ;;  %v6071_v7 = vpop.f32.mrb[254].mxu0 }
 0x415   : > { %v3469_v34 = vpop.f32.mrb[219].mxu1  ;;  %v3845_v27 = vpop.f32.mrb[255].mxu0 }
 0x416   : > { %v3618_v24 = vadd.f32 %v3469_v34, %v7906_v2  ;;  %v8028_v63 = vadd.f32 %v3828_v44, %v3617_v38 }
 0x418   : > { %v8030_v43 = vadd.f32 %v3831_v22, %v3618_v24 }
 0x41a   : > { %v5990_v52 = vpop.f32.mrb[220].mxu1  ;;  %v6074_v53 = vpop.f32.mrb[0].mxu0 }
 0x41b   : > { %v3480_v8 = vpop.f32.mrb[221].mxu1  ;;  %v3856_v11 = vpop.f32.mrb[1].mxu0 }
 0x41c   : > { %v3619_v54 = vadd.f32 %v3480_v8, %v7911_v50  ;;  %v5991_v61 = vpop.f32.mrb[222].mxu1  ;;  %v6075_v41 = vpop.f32.mrb[2].mxu0 }
 0x41d   : > { %v3483_v12 = vpop.f32.mrb[223].mxu1  ;;  %v3859_v17 = vpop.f32.mrb[3].mxu0 }
 0x41e   : > { %v3620_v58 = vadd.f32 %v3483_v12, %v7914_v18  ;;  %v8034_v59 = vadd.f32 %v3842_v25, %v3619_v54 }
 0x420   : > { %v8036_v39 = vadd.f32 %v3845_v27, %v3620_v58 }
 0x422   : > { %v5994_v2 = vpop.f32.mrb[224].mxu1  ;;  %v6078_v32 = vpop.f32.mrb[4].mxu0 }
 0x423   : > { %v3494_v20 = vpop.f32.mrb[225].mxu1  ;;  %v3870_v44 = vpop.f32.mrb[5].mxu0 }
 0x424   : > { %v3621_v23 = vadd.f32 %v3494_v20, %v7919_v26  ;;  %v5995_v9 = vpop.f32.mrb[226].mxu1  ;;  %v6079_v6 = vpop.f32.mrb[6].mxu0 }
 0x425   : > { %v3497_v46 = vpop.f32.mrb[227].mxu1  ;;  %v3873_v50 = vpop.f32.mrb[7].mxu0 }
 0x426   : > { %v3622_v22 = vadd.f32 %v3497_v46, %v7922_v51  ;;  %v8040_v35 = vadd.f32 %v3856_v11, %v3621_v23 }
 0x428   : > { %v8042_v40 = vadd.f32 %v3859_v17, %v3622_v22 }
 0x42a   : > { %v5998_v18 = vpop.f32.mrb[228].mxu1  ;;  %v6082_v48 = vpop.f32.mrb[8].mxu0 }
 0x42b   : > { %v3508_v13 = vpop.f32.mrb[229].mxu1  ;;  %v3884_v25 = vpop.f32.mrb[9].mxu0 }
 0x42c   : > { %v3623_v38 = vadd.f32 %v3508_v13, %v7927_v42  ;;  %v5999_v15 = vpop.f32.mrb[230].mxu1  ;;  %v6083_v7 = vpop.f32.mrb[10].mxu0 }
 0x42d   : > { %v3511_v34 = vpop.f32.mrb[231].mxu1  ;;  %v3887_v26 = vpop.f32.mrb[11].mxu0 }
 0x42e   : > { %v3624_v27 = vadd.f32 %v3511_v34, %v7930_v14  ;;  %v8046_v24 = vadd.f32 %v3870_v44, %v3623_v38 }
 0x430   : > { %v8048_v52 = vadd.f32 %v3873_v50, %v3624_v27 }
 0x432   : > { %v6002_v51 = vpop.f32.mrb[232].mxu1  ;;  %v6086_v53 = vpop.f32.mrb[12].mxu0 }
 0x433   : > { %v3522_v8 = vpop.f32.mrb[233].mxu1  ;;  %v3898_v11 = vpop.f32.mrb[13].mxu0 }
 0x434   : > { %v3625_v54 = vadd.f32 %v3522_v8, %v7935_v3  ;;  %v6003_v61 = vpop.f32.mrb[234].mxu1  ;;  %v6087_v41 = vpop.f32.mrb[14].mxu0 }
 0x435   : > { %v3525_v12 = vpop.f32.mrb[235].mxu1  ;;  %v3901_v42 = vpop.f32.mrb[15].mxu0 }
 0x436   : > { %v3626_v17 = vadd.f32 %v3525_v12, %v7938_v37  ;;  %v8052_v58 = vadd.f32 %v3884_v25, %v3625_v54 }
 0x438   : > { %v8054_v2 = vadd.f32 %v3887_v26, %v3626_v17 }
 0x43a   : > { %v6006_v14 = vpop.f32.mrb[236].mxu1  ;;  %v6090_v32 = vpop.f32.mrb[16].mxu0 }
 0x43b   : > { %v3536_v20 = vpop.f32.mrb[237].mxu1  ;;  %v3912_v44 = vpop.f32.mrb[17].mxu0 }
 0x43c   : > { %v3627_v23 = vadd.f32 %v3536_v20, %v7943_v45  ;;  %v6007_v9 = vpop.f32.mrb[238].mxu1  ;;  %v6091_v6 = vpop.f32.mrb[18].mxu0 }
 0x43d   : > { %v3539_v46 = vpop.f32.mrb[239].mxu1  ;;  %v3915_v3 = vpop.f32.mrb[19].mxu0 }
 0x43e   : > { %v3628_v50 = vadd.f32 %v3539_v46, %v7946_v0  ;;  %v8058_v22 = vadd.f32 %v3898_v11, %v3627_v23 }
 0x440   : > { %v8060_v18 = vadd.f32 %v3901_v42, %v3628_v50 }
 0x442   : > { %v6010_v37 = vpop.f32.mrb[240].mxu1  ;;  %v6094_v48 = vpop.f32.mrb[20].mxu0 }
 0x443   : > { %v3550_v13 = vpop.f32.mrb[241].mxu1  ;;  %v3926_v25 = vpop.f32.mrb[21].mxu0 }
 0x444   : > { %v3629_v38 = vadd.f32 %v3550_v13, %v7951_v60  ;;  %v6011_v15 = vpop.f32.mrb[242].mxu1  ;;  %v6095_v7 = vpop.f32.mrb[22].mxu0 }
 0x445   : > { %v3553_v34 = vpop.f32.mrb[243].mxu1  ;;  %v3929_v45 = vpop.f32.mrb[23].mxu0 }
 0x446   : > { %v3630_v26 = vadd.f32 %v3553_v34, %v7954_v36  ;;  %v8064_v27 = vadd.f32 %v3912_v44, %v3629_v38 }
 0x448   : > { %v8066_v51 = vadd.f32 %v3915_v3, %v3630_v26 }
 0x44a   : > { %v6014_v0 = vpop.f32.mrb[244].mxu1  ;;  %v6098_v53 = vpop.f32.mrb[24].mxu0 }
 0x44b   : > { %v3564_v8 = vpop.f32.mrb[245].mxu1  ;;  %v3940_v11 = vpop.f32.mrb[25].mxu0 }
 0x44c   : > { %v3631_v54 = vadd.f32 %v3564_v8, %v7959_v49  ;;  %v6015_v61 = vpop.f32.mrb[246].mxu1  ;;  %v6099_v41 = vpop.f32.mrb[26].mxu0 }
 0x44d   : > { %v3567_v12 = vpop.f32.mrb[247].mxu1  ;;  %v3943_v60 = vpop.f32.mrb[27].mxu0 }
 0x44e   : > { %v3632_v42 = vadd.f32 %v3567_v12, %v7962_v56  ;;  %v8070_v17 = vadd.f32 %v3926_v25, %v3631_v54 }
 0x450   : > { %v8072_v14 = vadd.f32 %v3929_v45, %v3632_v42 }
 0x452   : > { %v6018_v36 = vpop.f32.mrb[248].mxu1  ;;  %v6102_v32 = vpop.f32.mrb[28].mxu0 }
 0x453   : > { %v3578_v20 = vpop.f32.mrb[249].mxu1  ;;  %v3954_v44 = vpop.f32.mrb[29].mxu0 }
 0x454   : > { %v3633_v23 = vadd.f32 %v3578_v20, %v7966_v16  ;;  %v6019_v9 = vpop.f32.mrb[250].mxu1  ;;  %v6103_v6 = vpop.f32.mrb[30].mxu0 }
 0x455   : > { %v3581_v46 = vpop.f32.mrb[251].mxu1  ;;  %v3957_v49 = vpop.f32.mrb[31].mxu0 }
 0x456   : > { %v3634_v3 = vadd.f32 %v3581_v46, %v7970_v19  ;;  %v8076_v50 = vadd.f32 %v3940_v11, %v3633_v23  ;;  %v8089_v19 = vld [vmem:[%s8315_s4] ss:$0 sm:$0xff] }
 0x458   : > { %v8078_v37 = vadd.f32 %v3943_v60, %v3634_v3 }
 0x45a   : > { %v6022_v56 = vpop.f32.mrb[252].mxu1 }
 0x45b   : > { %v3592_v48 = vpop.f32.mrb[253].mxu1 }
 0x45c   : > { %v3635_v13 = vadd.f32 %v3592_v48, %v7975_v1  ;;  %v6023_v25 = vpop.f32.mrb[254].mxu1 }
 0x45d   : > { %v3595_v38 = vpop.f32.mrb[255].mxu1 }
 0x45e   : > { %v3636_v15 = vadd.f32 %v3595_v38, %v7979_v28  ;;  %v8082_v7 = vadd.f32 %v3954_v44, %v3635_v13 }
 0x460   : > { %v8084_v16 = vadd.f32 %v3957_v49, %v3636_v15 }
 0x462   : > { %v6122_v34 = vpop.f32.mrb[0].mxu1 }
 0x463   : > { %v4109_v45 = vpop.f32.mrb[1].mxu1 }
 0x464   : > { %v4332_v26 = vadd.f32 %v4109_v45, %v7983_v5  ;;  %v6123_v0 = vpop.f32.mrb[2].mxu1 }
 0x465   : > { %v4112_v53 = vpop.f32.mrb[3].mxu1 }
 0x466   : > { %v4371_v1 = vadd.f32 %v8089_v19, %v4332_v26  ;;  %v4333_v8 = vadd.f32 %v4112_v53, %v7987_v55 }
 0x468   : > { %v4372_v28 = vadd.f32 %v8089_v19, %v4333_v8  ;;  %v4403_v11 = vmax.f32 %v4371_v1, 0.0 }
 0x46a   : > { %v4404_v54 = vmax.f32 %v4372_v28, 0.0  ;;  %v6126_v61 = vpop.f32.mrb[4].mxu1 }
 0x46b   : > { %v4123_v41 = vpop.f32.mrb[5].mxu1 }
 0x46c   : > { %v4334_v12 = vadd.f32 %v4123_v41, %v7991_v10  ;;  %v6127_v60 = vpop.f32.mrb[6].mxu1  ;;  %v4435_v42 = vpack.c.bf16 %v4404_v54, %v4403_v11 }
 0x46d   : > { %v4126_v36 = vpop.f32.mrb[7].mxu1 }
 0x46e   : > { %v4373_v32 = vadd.f32 %v8089_v19, %v4334_v12  ;;  %v4335_v5 = vadd.f32 %v4126_v36, %v7995_v21  ;;  %6200 = vmatprep.mubr.bf16.mxu0 %v4435_v42 }
 0x470   : > { %v4374_v20 = vadd.f32 %v8089_v19, %v4335_v5  ;;  %v4405_v44 = vmax.f32 %v4373_v32, 0.0 }
 0x472   : > { %v4406_v55 = vmax.f32 %v4374_v20, 0.0  ;;  %v6130_v23 = vpop.f32.mrb[8].mxu1 }
 0x473   : > { %v4137_v9 = vpop.f32.mrb[9].mxu1 }
 0x474   : > { %v4436_v6 = vpack.c.bf16 %v4406_v55, %v4405_v44  ;;  %v4336_v46 = vadd.f32 %v4137_v9, %v7999_v62  ;;  %v6131_v49 = vpop.f32.mrb[10].mxu1 }
 0x475   : > { %v4140_v3 = vpop.f32.mrb[11].mxu1 }
 0x476   : > { %v4375_v10 = vadd.f32 %v8089_v19, %v4336_v46  ;;  %v4337_v56 = vadd.f32 %v4140_v3, %v8003_v4  ;;  %6201 = vmatmul.mubr.bf16.vlgmr.msra.gmra.mrb[32].mxu0 %v4436_v6 }
 0x478   : > { %v4376_v48 = vadd.f32 %v8089_v19, %v4337_v56  ;;  %v4407_v21 = vmax.f32 %v4375_v10, 0.0 }
 0x47a   : > { %v4408_v13 = vmax.f32 %v4376_v48, 0.0  ;;  %v6134_v25 = vpop.f32.mrb[12].mxu1 }
 0x47b   : > { %v4151_v38 = vpop.f32.mrb[13].mxu1 }
 0x47c   : > { %v4338_v15 = vadd.f32 %v4151_v38, %v8007_v31  ;;  %v6135_v34 = vpop.f32.mrb[14].mxu1  ;;  %v4437_v45 = vpack.c.bf16 %v4408_v13, %v4407_v21 }
 0x47d   : > { %v4154_v26 = vpop.f32.mrb[15].mxu1 }
 0x47e   : > { %v4377_v62 = vadd.f32 %v8089_v19, %v4338_v15  ;;  %v4339_v0 = vadd.f32 %v4154_v26, %v8011_v57  ;;  %6204 = vmatprep.mubr.bf16.mxu0 %v4437_v45 }
 0x480   : > { %v4378_v53 = vadd.f32 %v8089_v19, %v4339_v0  ;;  %v4409_v4 = vmax.f32 %v4377_v62, 0.0 }
 0x482   : > { %v4410_v1 = vmax.f32 %v4378_v53, 0.0  ;;  %v6138_v8 = vpop.f32.mrb[16].mxu1 }
 0x483   : > { %v4165_v28 = vpop.f32.mrb[17].mxu1 }
 0x484   : > { %v4438_v11 = vpack.c.bf16 %v4410_v1, %v4409_v4  ;;  %v4340_v54 = vadd.f32 %v4165_v28, %v8015_v47  ;;  %v6139_v61 = vpop.f32.mrb[18].mxu1 }
 0x485   : > { %v4168_v41 = vpop.f32.mrb[19].mxu1 }
 0x486   : > { %v4379_v31 = vadd.f32 %v8089_v19, %v4340_v54  ;;  %v4341_v12 = vadd.f32 %v4168_v41, %v8018_v30  ;;  %6205 = vmatmul.mubr.bf16.gmra.mrb[36].mxu0 %v4438_v11 }
 0x488   : > { %v4380_v60 = vadd.f32 %v8089_v19, %v4341_v12  ;;  %v4411_v57 = vmax.f32 %v4379_v31, 0.0 }
 0x48a   : > { %v4412_v42 = vmax.f32 %v4380_v60, 0.0  ;;  %v6142_v36 = vpop.f32.mrb[20].mxu1 }
 0x48b   : > { %v4179_v32 = vpop.f32.mrb[21].mxu1 }
 0x48c   : > { %v4342_v5 = vadd.f32 %v4179_v32, %v8022_v33  ;;  %v6143_v20 = vpop.f32.mrb[22].mxu1  ;;  %v4439_v44 = vpack.c.bf16 %v4412_v42, %v4411_v57 }
 0x48d   : > { %v4182_v55 = vpop.f32.mrb[23].mxu1 }
 0x48e   : > { %v4381_v47 = vadd.f32 %v8089_v19, %v4342_v5  ;;  %v4343_v23 = vadd.f32 %v4182_v55, %v8024_v29  ;;  %6208 = vmatprep.mubr.bf16.mxu0 %v4439_v44 }
 0x490   : > { %v4382_v9 = vadd.f32 %v8089_v19, %v4343_v23  ;;  %v4413_v30 = vmax.f32 %v4381_v47, 0.0 }
 0x492   : > { %v4414_v6 = vmax.f32 %v4382_v9, 0.0  ;;  %v6146_v46 = vpop.f32.mrb[24].mxu1 }
 0x493   : > { %v4193_v49 = vpop.f32.mrb[25].mxu1 }
 0x494   : > { %v4440_v3 = vpack.c.bf16 %v4414_v6, %v4413_v30  ;;  %v4344_v10 = vadd.f32 %v4193_v49, %v8028_v63  ;;  %v6147_v56 = vpop.f32.mrb[26].mxu1 }
 0x495   : > { %v4196_v48 = vpop.f32.mrb[27].mxu1 }
 0x496   : > { %v4383_v33 = vadd.f32 %v8089_v19, %v4344_v10  ;;  %v4345_v21 = vadd.f32 %v4196_v48, %v8030_v43  ;;  %6209 = vmatmul.mubr.bf16.gmra.mrb[40].mxu0 %v4440_v3 }
 0x498   : > { %v4384_v13 = vadd.f32 %v8089_v19, %v4345_v21  ;;  %v4415_v29 = vmax.f32 %v4383_v33, 0.0 }
 0x49a   : > { %v4416_v25 = vmax.f32 %v4384_v13, 0.0  ;;  %v6150_v38 = vpop.f32.mrb[28].mxu1 }
 0x49b   : > { %v4207_v15 = vpop.f32.mrb[29].mxu1 }
 0x49c   : > { %v4346_v34 = vadd.f32 %v4207_v15, %v8034_v59  ;;  %v6151_v45 = vpop.f32.mrb[30].mxu1  ;;  %v4441_v26 = vpack.c.bf16 %v4416_v25, %v4415_v29 }
 0x49d   : > { %v4210_v62 = vpop.f32.mrb[31].mxu1 }
 0x49e   : > { %v4385_v63 = vadd.f32 %v8089_v19, %v4346_v34  ;;  %v4347_v0 = vadd.f32 %v4210_v62, %v8036_v39  ;;  %6212 = vmatprep.mubr.bf16.mxu0 %v4441_v26 }
 0x4a0   : > { %v4386_v53 = vadd.f32 %v8089_v19, %v4347_v0  ;;  %v4417_v43 = vmax.f32 %v4385_v63, 0.0 }
 0x4a2   : > { %v4418_v4 = vmax.f32 %v4386_v53, 0.0  ;;  %v6154_v1 = vpop.f32.mrb[32].mxu1 }
 0x4a3   : > { %v4221_v8 = vpop.f32.mrb[33].mxu1 }
 0x4a4   : > { %v4442_v28 = vpack.c.bf16 %v4418_v4, %v4417_v43  ;;  %v4348_v11 = vadd.f32 %v4221_v8, %v8040_v35  ;;  %v6155_v54 = vpop.f32.mrb[34].mxu1 }
 0x4a5   : > { %v4224_v61 = vpop.f32.mrb[35].mxu1 }
 0x4a6   : > { %v4387_v59 = vadd.f32 %v8089_v19, %v4348_v11  ;;  %v4349_v41 = vadd.f32 %v4224_v61, %v8042_v40  ;;  %6213 = vmatmul.mubr.bf16.gmra.mrb[44].mxu0 %v4442_v28 }
 0x4a8   : > { %v4388_v31 = vadd.f32 %v8089_v19, %v4349_v41  ;;  %v4419_v39 = vmax.f32 %v4387_v59, 0.0 }
 0x4aa   : > { %v4420_v12 = vmax.f32 %v4388_v31, 0.0  ;;  %v6158_v60 = vpop.f32.mrb[36].mxu1 }
 0x4ab   : > { %v4235_v57 = vpop.f32.mrb[37].mxu1 }
 0x4ac   : > { %v4350_v42 = vadd.f32 %v4235_v57, %v8046_v24  ;;  %v6159_v36 = vpop.f32.mrb[38].mxu1  ;;  %v4443_v32 = vpack.c.bf16 %v4420_v12, %v4419_v39 }
 0x4ad   : > { %v4238_v5 = vpop.f32.mrb[39].mxu1 }
 0x4ae   : > { %v4389_v35 = vadd.f32 %v8089_v19, %v4350_v42  ;;  %v4351_v20 = vadd.f32 %v4238_v5, %v8048_v52  ;;  %6216 = vmatprep.mubr.bf16.mxu0 %v4443_v32 }
 0x4b0   : > { %v4390_v44 = vadd.f32 %v8089_v19, %v4351_v20  ;;  %v4421_v40 = vmax.f32 %v4389_v35, 0.0 }
 0x4b2   : > { %v4422_v55 = vmax.f32 %v4390_v44, 0.0  ;;  %v6162_v47 = vpop.f32.mrb[40].mxu1 }
 0x4b3   : > { %v4249_v23 = vpop.f32.mrb[41].mxu1 }
 0x4b4   : > { %v4444_v9 = vpack.c.bf16 %v4422_v55, %v4421_v40  ;;  %v4352_v30 = vadd.f32 %v4249_v23, %v8052_v58  ;;  %v6163_v6 = vpop.f32.mrb[42].mxu1 }
 0x4b5   : > { %v4252_v46 = vpop.f32.mrb[43].mxu1 }
 0x4b6   : > { %v4391_v24 = vadd.f32 %v8089_v19, %v4352_v30  ;;  %v4353_v49 = vadd.f32 %v4252_v46, %v8054_v2  ;;  %6217 = vmatmul.mubr.bf16.gmra.mrb[48].mxu0 %v4444_v9 }
 0x4b8   : > { %v4392_v3 = vadd.f32 %v8089_v19, %v4353_v49  ;;  %v4423_v52 = vmax.f32 %v4391_v24, 0.0 }
 0x4ba   : > { %v4424_v10 = vmax.f32 %v4392_v3, 0.0  ;;  %v6166_v56 = vpop.f32.mrb[44].mxu1 }
 0x4bb   : > { %v4263_v48 = vpop.f32.mrb[45].mxu1 }
 0x4bc   : > { %v4354_v33 = vadd.f32 %v4263_v48, %v8058_v22  ;;  %v6167_v21 = vpop.f32.mrb[46].mxu1  ;;  %v4445_v13 = vpack.c.bf16 %v4424_v10, %v4423_v52 }
 0x4bd   : > { %v4266_v29 = vpop.f32.mrb[47].mxu1 }
 0x4be   : > { %v4393_v58 = vadd.f32 %v8089_v19, %v4354_v33  ;;  %v4355_v25 = vadd.f32 %v4266_v29, %v8060_v18  ;;  %6220 = vmatprep.mubr.bf16.mxu0 %v4445_v13  ;;  %v6405_v33 = vld [vmem:[%s6886_s20] sm:$0xff] }
 0x4c0   : > { %v4394_v38 = vadd.f32 %v8089_v19, %v4355_v25  ;;  %v4425_v2 = vmax.f32 %v4393_v58, 0.0  ;;  %v6406_v58 = vld [vmem:[%s6886_s20 + $0x18] sm:$0xff] }
 0x4c2   : > { %v4426_v15 = vmax.f32 %v4394_v38, 0.0  ;;  %v6170_v34 = vpop.f32.mrb[48].mxu1 }
 0x4c3   : > { %v4277_v45 = vpop.f32.mrb[49].mxu1 }
 0x4c4   : > { %v4446_v26 = vpack.c.bf16 %v4426_v15, %v4425_v2  ;;  %v4356_v62 = vadd.f32 %v4277_v45, %v8064_v27  ;;  %v6171_v63 = vpop.f32.mrb[50].mxu1  ;;  %v6407_v2 = vld [vmem:[%s6886_s20 + $0x8] sm:$0xff] }
 0x4c5   : > { %v4280_v0 = vpop.f32.mrb[51].mxu1 }
 0x4c6   : > { %v4395_v22 = vadd.f32 %v8089_v19, %v4356_v62  ;;  %v4357_v53 = vadd.f32 %v4280_v0, %v8066_v51  ;;  %6221 = vmatmul.mubr.bf16.gmra.mrb[52].mxu0 %v4446_v26 }
 0x4c8   : > { %v4396_v43 = vadd.f32 %v8089_v19, %v4357_v53  ;;  %v4427_v18 = vmax.f32 %v4395_v22, 0.0  ;;  %v6408_v53 = vld [vmem:[%s6886_s20 + $0x30] sm:$0xff] }
 0x4ca   : > { %v4428_v4 = vmax.f32 %v4396_v43, 0.0  ;;  %v6174_v1 = vpop.f32.mrb[52].mxu1 }
 0x4cb   : > { %v4291_v8 = vpop.f32.mrb[53].mxu1  ;;  %v6409_v1 = vld [vmem:[%s6886_s20 + $0x20] sm:$0xff] }
 0x4cc   : > { %v4358_v28 = vadd.f32 %v4291_v8, %v8070_v17  ;;  %v6175_v11 = vpop.f32.mrb[54].mxu1  ;;  %v4447_v54 = vpack.c.bf16 %v4428_v4, %v4427_v18 }
 0x4cd   : > { %v4294_v61 = vpop.f32.mrb[55].mxu1 }
 0x4ce   : > { %v4397_v27 = vadd.f32 %v8089_v19, %v4358_v28  ;;  %v4359_v59 = vadd.f32 %v4294_v61, %v8072_v14  ;;  %6224 = vmatprep.mubr.bf16.mxu0 %v4447_v54  ;;  %v6410_v54 = vld [vmem:[%s6886_s20 + $0x38] sm:$0xff] }
 0x4d0   : > { %v4398_v41 = vadd.f32 %v8089_v19, %v4359_v59  ;;  %v4429_v51 = vmax.f32 %v4397_v27, 0.0  ;;  %v6411_v59 = vld [vmem:[%s6886_s20 + $0x28] sm:$0xff] }
 0x4d2   : > { %v4430_v31 = vmax.f32 %v4398_v41, 0.0  ;;  %v6178_v39 = vpop.f32.mrb[56].mxu1 }
 0x4d3   : > { %v4305_v12 = vpop.f32.mrb[57].mxu1 }
 0x4d4   : > { %v4448_v60 = vpack.c.bf16 %v4430_v31, %v4429_v51  ;;  %v4360_v57 = vadd.f32 %v4305_v12, %v8076_v50  ;;  %v6179_v42 = vpop.f32.mrb[58].mxu1 }
 0x4d5   : > { %v4308_v36 = vpop.f32.mrb[59].mxu1 }
 0x4d6   : > { %v4399_v17 = vadd.f32 %v8089_v19, %v4360_v57  ;;  %v4361_v32 = vadd.f32 %v4308_v36, %v8078_v37  ;;  %6225 = vmatmul.mubr.bf16.gmra.mrb[56].mxu0 %v4448_v60  ;;  %v6412_v36 = vld [vmem:[%s6886_s20 + $0x50] sm:$0xff] }
 0x4d8   : > { %v4400_v5 = vadd.f32 %v8089_v19, %v4361_v32  ;;  %v4431_v14 = vmax.f32 %v4399_v17, 0.0 }
 0x4da   : > { %v4432_v35 = vmax.f32 %v4400_v5, 0.0  ;;  %v6182_v20 = vpop.f32.mrb[60].mxu1 }
 0x4db   : > { %v4319_v44 = vpop.f32.mrb[61].mxu1 }
 0x4dc   : > { %v4362_v40 = vadd.f32 %v4319_v44, %v8082_v7  ;;  %v6183_v55 = vpop.f32.mrb[62].mxu1  ;;  %v4449_v47 = vpack.c.bf16 %v4432_v35, %v4431_v14  ;;  %v8158_v7 = vld [vmem:[%s8317_s6] ss:$0 sm:$0xff] }
 0x4dd   : > { %v4322_v23 = vpop.f32.mrb[63].mxu1  ;;  %v6413_v14 = vld [vmem:[%s6886_s20 + $0x40] sm:$0xff] }
 0x4de   : > { %v4401_v50 = vadd.f32 %v8089_v19, %v4362_v40  ;;  %v4363_v9 = vadd.f32 %v4322_v23, %v8084_v16  ;;  %6228 = vmatprep.mubr.bf16.mxu0 %v4449_v47  ;;  %v6414_v40 = vld [vmem:[%s6886_s20 + $0x58] sm:$0xff]  ;;  %v6415_v23 = vld [vmem:[%s6886_s20 + $0x48] sm:$0xff] }
 0x4e0   : > { %v4402_v37 = vadd.f32 %v8089_v19, %v4363_v9  ;;  %v4433_v30 = vmax.f32 %v4401_v50, 0.0  ;;  %v6404_v19 = vld [vmem:[%s6886_s20 + $0x10] sm:$0xff] }
 0x4e2   : > { %v4434_v6 = vmax.f32 %v4402_v37, 0.0 }
 0x4e4   : > { %v4450_v46 = vpack.c.bf16 %v4434_v6, %v4433_v30 }
 0x4e6   : > { %6229 = vmatmul.mubr.bf16.gmra.mrb[60].mxu0 %v4450_v46 }
 0x549   : > { %v6202_v24 = vpop.f32.mrb[32].mxu0 }
 0x54a   : > { %v4565_v49 = vadd.f32 %v6202_v24, %v8158_v7  ;;  %v4556_v3 = vpop.f32.mrb[33].mxu0 }
 0x54b   : > { %v4557_v16 = vadd.f32 %v8158_v7, %v4556_v3  ;;  %v6203_v52 = vpop.f32.mrb[34].mxu0  ;;  %v6416_v3 = vld [vmem:[%s6886_s20 + $0x70] sm:$0xff] }
 0x54c   : > { %v4685_v10 = vadd.f32 %v6404_v19, %v4565_v49  ;;  %v4568_v56 = vadd.f32 %v6203_v52, %v8158_v7  ;;  %v4559_v48 = vpop.f32.mrb[35].mxu0 }
 0x54d   : > { %v4683_v21 = vadd.f32 %v6405_v33, %v4557_v16  ;;  %v4560_v13 = vadd.f32 %v8158_v7, %v4559_v48 }
 0x54e   : > { %v4717_v29 = vmax.f32 %v4685_v10, 0.0  ;;  %v4686_v25 = vadd.f32 %v6406_v58, %v4568_v56  ;;  %v6417_v10 = vld [vmem:[%s6886_s20 + $0x60] sm:$0xff]  ;;  %v6419_v58 = vld [vmem:[%s6886_s20 + $0x68] sm:$0xff] }
 0x54f   : > { %v4715_v38 = vmax.f32 %v4683_v21, 0.0  ;;  %v4684_v15 = vadd.f32 %v6407_v2, %v4560_v13  ;;  %v6418_v21 = vld [vmem:[%s6886_s20 + $0x78] sm:$0xff] }
 0x550   : > { %4749 = vst [vmem:[%s8170_s15 + $0x10] sm:$0xff] %v4717_v29  ;;  %v4718_v34 = vmax.f32 %v4686_v25, 0.0 }
 0x551   : > { %4747 = vst [vmem:[%s8170_s15] sm:$0xff] %v4715_v38  ;;  %v4716_v45 = vmax.f32 %v4684_v15, 0.0 }
 0x552   : > { %4750 = vst [vmem:[%s8170_s15 + $0x18] sm:$0xff] %v4718_v34 }
 0x553   : > { %4748 = vst [vmem:[%s8170_s15 + $0x8] sm:$0xff] %v4716_v45 }
 0x559   : > { %v6206_v26 = vpop.f32.mrb[36].mxu0 }
 0x55a   : > { %v4581_v62 = vadd.f32 %v6206_v26, %v8158_v7  ;;  %v4572_v63 = vpop.f32.mrb[37].mxu0 }
 0x55b   : > { %v4573_v0 = vadd.f32 %v8158_v7, %v4572_v63  ;;  %v6207_v22 = vpop.f32.mrb[38].mxu0  ;;  %v6420_v63 = vld [vmem:[%s6886_s20 + $0x90] sm:$0xff] }
 0x55c   : > { %v4689_v43 = vadd.f32 %v6408_v53, %v4581_v62  ;;  %v4584_v18 = vadd.f32 %v6207_v22, %v8158_v7  ;;  %v4575_v4 = vpop.f32.mrb[39].mxu0 }
 0x55d   : > { %v4687_v8 = vadd.f32 %v6409_v1, %v4573_v0  ;;  %v4576_v28 = vadd.f32 %v8158_v7, %v4575_v4 }
 0x55e   : > { %v4721_v11 = vmax.f32 %v4689_v43, 0.0  ;;  %v4690_v61 = vadd.f32 %v6410_v54, %v4584_v18  ;;  %v6421_v43 = vld [vmem:[%s6886_s20 + $0x80] sm:$0xff]  ;;  %v6423_v54 = vld [vmem:[%s6886_s20 + $0x88] sm:$0xff] }
 0x55f   : > { %v4719_v27 = vmax.f32 %v4687_v8, 0.0  ;;  %v4688_v41 = vadd.f32 %v6411_v59, %v4576_v28  ;;  %v6422_v8 = vld [vmem:[%s6886_s20 + $0x98] sm:$0xff] }
 0x560   : > { %4753 = vst [vmem:[%s8170_s15 + $0x30] sm:$0xff] %v4721_v11  ;;  %v4722_v51 = vmax.f32 %v4690_v61, 0.0 }
 0x561   : > { %4751 = vst [vmem:[%s8170_s15 + $0x20] sm:$0xff] %v4719_v27  ;;  %v4720_v31 = vmax.f32 %v4688_v41, 0.0 }
 0x562   : > { %4754 = vst [vmem:[%s8170_s15 + $0x38] sm:$0xff] %v4722_v51 }
 0x563   : > { %4752 = vst [vmem:[%s8170_s15 + $0x28] sm:$0xff] %v4720_v31 }
 0x569   : > { %v6210_v39 = vpop.f32.mrb[40].mxu0 }
 0x56a   : > { %v4597_v12 = vadd.f32 %v6210_v39, %v8158_v7  ;;  %v4588_v60 = vpop.f32.mrb[41].mxu0 }
 0x56b   : > { %v4589_v57 = vadd.f32 %v8158_v7, %v4588_v60  ;;  %v6211_v42 = vpop.f32.mrb[42].mxu0  ;;  %v6424_v60 = vld [vmem:[%s6886_s20 + $0xb0] sm:$0xff] }
 0x56c   : > { %v4693_v17 = vadd.f32 %v6412_v36, %v4597_v12  ;;  %v4600_v32 = vadd.f32 %v6211_v42, %v8158_v7  ;;  %v4591_v5 = vpop.f32.mrb[43].mxu0 }
 0x56d   : > { %v4691_v35 = vadd.f32 %v6413_v14, %v4589_v57  ;;  %v4592_v20 = vadd.f32 %v8158_v7, %v4591_v5 }
 0x56e   : > { %v4725_v44 = vmax.f32 %v4693_v17, 0.0  ;;  %v4694_v55 = vadd.f32 %v6414_v40, %v4600_v32  ;;  %v6425_v17 = vld [vmem:[%s6886_s20 + $0xa0] sm:$0xff]  ;;  %v6427_v40 = vld [vmem:[%s6886_s20 + $0xa8] sm:$0xff] }
 0x56f   : > { %v4723_v47 = vmax.f32 %v4691_v35, 0.0  ;;  %v4692_v50 = vadd.f32 %v6415_v23, %v4592_v20  ;;  %v6426_v35 = vld [vmem:[%s6886_s20 + $0xb8] sm:$0xff] }
 0x570   : > { %4757 = vst [vmem:[%s8170_s15 + $0x50] sm:$0xff] %v4725_v44  ;;  %v4726_v9 = vmax.f32 %v4694_v55, 0.0 }
 0x571   : > { %4755 = vst [vmem:[%s8170_s15 + $0x40] sm:$0xff] %v4723_v47  ;;  %v4724_v37 = vmax.f32 %v4692_v50, 0.0 }
 0x572   : > { %4758 = vst [vmem:[%s8170_s15 + $0x58] sm:$0xff] %v4726_v9 }
 0x573   : > { %4756 = vst [vmem:[%s8170_s15 + $0x48] sm:$0xff] %v4724_v37 }
 0x579   : > { %v6214_v30 = vpop.f32.mrb[44].mxu0 }
 0x57a   : > { %v4613_v6 = vadd.f32 %v6214_v30, %v8158_v7  ;;  %v4604_v46 = vpop.f32.mrb[45].mxu0 }
 0x57b   : > { %v4605_v24 = vadd.f32 %v8158_v7, %v4604_v46  ;;  %v6215_v49 = vpop.f32.mrb[46].mxu0  ;;  %v6428_v46 = vld [vmem:[%s6886_s20 + $0xd0] sm:$0xff] }
 0x57c   : > { %v4697_v16 = vadd.f32 %v6416_v3, %v4613_v6  ;;  %v4616_v52 = vadd.f32 %v6215_v49, %v8158_v7  ;;  %v4607_v19 = vpop.f32.mrb[47].mxu0 }
 0x57d   : > { %v4695_v56 = vadd.f32 %v6417_v10, %v4605_v24  ;;  %v4608_v48 = vadd.f32 %v8158_v7, %v4607_v19 }
 0x57e   : > { %v4729_v33 = vmax.f32 %v4697_v16, 0.0  ;;  %v4698_v13 = vadd.f32 %v6418_v21, %v4616_v52  ;;  %v6429_v16 = vld [vmem:[%s6886_s20 + $0xc0] sm:$0xff]  ;;  %v6431_v21 = vld [vmem:[%s6886_s20 + $0xc8] sm:$0xff] }
 0x57f   : > { %v4727_v29 = vmax.f32 %v4695_v56, 0.0  ;;  %v4696_v25 = vadd.f32 %v6419_v58, %v4608_v48  ;;  %v6430_v56 = vld [vmem:[%s6886_s20 + $0xd8] sm:$0xff] }
 0x580   : > { %4761 = vst [vmem:[%s8170_s15 + $0x70] sm:$0xff] %v4729_v33  ;;  %v4730_v38 = vmax.f32 %v4698_v13, 0.0 }
 0x581   : > { %4759 = vst [vmem:[%s8170_s15 + $0x60] sm:$0xff] %v4727_v29  ;;  %v4728_v2 = vmax.f32 %v4696_v25, 0.0 }
 0x582   : > { %4762 = vst [vmem:[%s8170_s15 + $0x78] sm:$0xff] %v4730_v38 }
 0x583   : > { %4760 = vst [vmem:[%s8170_s15 + $0x68] sm:$0xff] %v4728_v2 }
 0x589   : > { %v6218_v15 = vpop.f32.mrb[48].mxu0 }
 0x58a   : > { %v4629_v34 = vadd.f32 %v6218_v15, %v8158_v7  ;;  %v4620_v45 = vpop.f32.mrb[49].mxu0 }
 0x58b   : > { %v4621_v26 = vadd.f32 %v8158_v7, %v4620_v45  ;;  %v6219_v62 = vpop.f32.mrb[50].mxu0  ;;  %v6432_v45 = vld [vmem:[%s6886_s20 + $0xf0] sm:$0xff] }
 0x58c   : > { %v4701_v0 = vadd.f32 %v6420_v63, %v4629_v34  ;;  %v4632_v22 = vadd.f32 %v6219_v62, %v8158_v7  ;;  %v4623_v53 = vpop.f32.mrb[51].mxu0 }
 0x58d   : > { %v4699_v18 = vadd.f32 %v6421_v43, %v4621_v26  ;;  %v4624_v4 = vadd.f32 %v8158_v7, %v4623_v53 }
 0x58e   : > { %v4733_v1 = vmax.f32 %v4701_v0, 0.0  ;;  %v4702_v28 = vadd.f32 %v6422_v8, %v4632_v22  ;;  %v6433_v0 = vld [vmem:[%s6886_s20 + $0xe0] sm:$0xff]  ;;  %v6435_v8 = vld [vmem:[%s6886_s20 + $0xe8] sm:$0xff] }
 0x58f   : > { %v4731_v11 = vmax.f32 %v4699_v18, 0.0  ;;  %v4700_v61 = vadd.f32 %v6423_v54, %v4624_v4  ;;  %v6434_v18 = vld [vmem:[%s6886_s20 + $0xf8] sm:$0xff]  ;;  %s6635_s20 = smov [#allocation11]  }
 0x590   : > { %4765 = vst [vmem:[%s8170_s15 + $0x90] sm:$0xff] %v4733_v1  ;;  %v4734_v27 = vmax.f32 %v4702_v28, 0.0  ;;  %s6554_s30 = sshll.u32 %s6635_s20, 4  ;;  %s6555_s30 = int_to_ptr.vmem [resolvable:$false] %s6554_s30 }
 0x591   : > { %4763 = vst [vmem:[%s8170_s15 + $0x80] sm:$0xff] %v4731_v11  ;;  %v4732_v59 = vmax.f32 %v4700_v61, 0.0  ;;  %s6556_s9 = scalar_lea.vmem %s6555_s30, 8192  ;;  %p6557_p12 = scmp.lt.s32.totalorder %s8264_s12, %s6555_s30 }
 0x592   : > { %4766 = vst [vmem:[%s8170_s15 + $0x98] sm:$0xff] %v4734_v27  ;;  %p6558_p1 = scmp.lt.s32.totalorder %s6556_s9, %s6550_s13 }
 0x593   : > { %4764 = vst [vmem:[%s8170_s15 + $0x88] sm:$0xff] %v4732_v59 }
 0x594   : > { %p6559_p2 = por %p6558_p1, %p6557_p12 }
 0x596   : > { %p6560_p4 = pnand %p6559_p2, %p6553_p7 }
 0x599   : > { %v6222_v41 = vpop.f32.mrb[52].mxu0 }
 0x59a   : > { %v4645_v51 = vadd.f32 %v6222_v41, %v8158_v7  ;;  %v4636_v31 = vpop.f32.mrb[53].mxu0 }
 0x59b   : > { %v4637_v39 = vadd.f32 %v8158_v7, %v4636_v31  ;;  %v6223_v12 = vpop.f32.mrb[54].mxu0 }
 0x59c   : > { %v4705_v57 = vadd.f32 %v6424_v60, %v4645_v51  ;;  %v4648_v42 = vadd.f32 %v6223_v12, %v8158_v7  ;;  %v4639_v36 = vpop.f32.mrb[55].mxu0 }
 0x59d   : > { %v4703_v32 = vadd.f32 %v6425_v17, %v4637_v39  ;;  %v4640_v5 = vadd.f32 %v8158_v7, %v4639_v36 }
 0x59e   : > { %v4737_v14 = vmax.f32 %v4705_v57, 0.0  ;;  %v4706_v20 = vadd.f32 %v6426_v35, %v4648_v42 }
 0x59f   : > { %v4735_v44 = vmax.f32 %v4703_v32, 0.0  ;;  %v4704_v55 = vadd.f32 %v6427_v40, %v4640_v5 }
 0x5a0   : > { %4769 = vst [vmem:[%s8170_s15 + $0xb0] sm:$0xff] %v4737_v14  ;;  %v4738_v47 = vmax.f32 %v4706_v20, 0.0 }
 0x5a1   : > { %4767 = vst [vmem:[%s8170_s15 + $0xa0] sm:$0xff] %v4735_v44  ;;  %v4736_v23 = vmax.f32 %v4704_v55, 0.0 }
 0x5a2   : > { %4770 = vst [vmem:[%s8170_s15 + $0xb8] sm:$0xff] %v4738_v47 }
 0x5a3   : > { %4768 = vst [vmem:[%s8170_s15 + $0xa8] sm:$0xff] %v4736_v23 }
 0x5a9   : > { %v6226_v50 = vpop.f32.mrb[56].mxu0 }
 0x5aa   : > { %v4661_v9 = vadd.f32 %v6226_v50, %v8158_v7  ;;  %v4652_v37 = vpop.f32.mrb[57].mxu0 }
 0x5ab   : > { %v4653_v30 = vadd.f32 %v8158_v7, %v4652_v37  ;;  %v6227_v6 = vpop.f32.mrb[58].mxu0 }
 0x5ac   : > { %v4709_v24 = vadd.f32 %v6428_v46, %v4661_v9  ;;  %v4664_v49 = vadd.f32 %v6227_v6, %v8158_v7  ;;  %v4655_v3 = vpop.f32.mrb[59].mxu0 }
 0x5ad   : > { %v4707_v52 = vadd.f32 %v6429_v16, %v4653_v30  ;;  %v4656_v19 = vadd.f32 %v8158_v7, %v4655_v3 }
 0x5ae   : > { %v4741_v10 = vmax.f32 %v4709_v24, 0.0  ;;  %v4710_v48 = vadd.f32 %v6430_v56, %v4664_v49 }
 0x5af   : > { %v4739_v33 = vmax.f32 %v4707_v52, 0.0  ;;  %v4708_v13 = vadd.f32 %v6431_v21, %v4656_v19 }
 0x5b0   : > { %4773 = vst [vmem:[%s8170_s15 + $0xd0] sm:$0xff] %v4741_v10  ;;  %v4742_v29 = vmax.f32 %v4710_v48, 0.0 }
 0x5b1   : > { %4771 = vst [vmem:[%s8170_s15 + $0xc0] sm:$0xff] %v4739_v33  ;;  %v4740_v58 = vmax.f32 %v4708_v13, 0.0 }
 0x5b2   : > { %4774 = vst [vmem:[%s8170_s15 + $0xd8] sm:$0xff] %v4742_v29 }
 0x5b3   : > { %4772 = vst [vmem:[%s8170_s15 + $0xc8] sm:$0xff] %v4740_v58 }
 0x5b9   : > { %v6230_v25 = vpop.f32.mrb[60].mxu0 }
 0x5ba   : > { %v4677_v38 = vadd.f32 %v6230_v25, %v8158_v7  ;;  %v4668_v2 = vpop.f32.mrb[61].mxu0 }
 0x5bb   : > { %v4669_v15 = vadd.f32 %v8158_v7, %v4668_v2  ;;  %v6231_v34 = vpop.f32.mrb[62].mxu0 }
 0x5bc   : > { %v4713_v26 = vadd.f32 %v6432_v45, %v4677_v38  ;;  %v4680_v62 = vadd.f32 %v6231_v34, %v8158_v7  ;;  %v4671_v63 = vpop.f32.mrb[63].mxu0 }
 0x5bd   : > { %v4711_v22 = vadd.f32 %v6433_v0, %v4669_v15  ;;  %v4672_v53 = vadd.f32 %v8158_v7, %v4671_v63 }
 0x5be   : > { %v4745_v43 = vmax.f32 %v4713_v26, 0.0  ;;  %v4714_v4 = vadd.f32 %v6434_v18, %v4680_v62 }
 0x5bf   : > { %v4743_v1 = vmax.f32 %v4711_v22, 0.0  ;;  %v4712_v28 = vadd.f32 %v6435_v8, %v4672_v53 }
 0x5c0   : > { %4777 = vst [vmem:[%s8170_s15 + $0xf0] sm:$0xff] %v4745_v43  ;;  %v4746_v11 = vmax.f32 %v4714_v4, 0.0 }
 0x5c1   : > { %4775 = vst [vmem:[%s8170_s15 + $0xe0] sm:$0xff] %v4743_v1  ;;  %v4744_v7 = vmax.f32 %v4712_v28, 0.0 }
 0x5c2   : > { %4778 = vst [vmem:[%s8170_s15 + $0xf8] sm:$0xff] %v4746_v11 }
 0x5c3   : > { %4776 = vst [vmem:[%s8170_s15 + $0xe8] sm:$0xff] %v4744_v7 }
 0x5c4   : > { %6563 = shalt.err (!%p6560_p4)
}
 0x5c5   : > { %s6564_s23 = scalar_lea.hbm %s8262_s16, 4096  ;;  %s6568_s14 = scalar_lea.hbm %s8318_s7, 8192 }
 0x5c6   : > { %p6565_p9 = scmp.ne.s32.totalorder %s8262_s16, %s6564_s23  ;;  %p6569_p8 = scmp.lt.u32.totalorder %s8262_s16, %s8318_s7 }
 0x5c7   : > { %p6570_p13 = scmp.lt.u32.totalorder %s6568_s14, %s6564_s23  ;;  %p6572_p10 = scmp.lt.u32.totalorder %s6564_s23, %s8262_s16 }
 0x5c8   : > { %p6566_p0 = pnand %p6565_p9, %p6832_p5 }
 0x5c9   : > { %p6571_p6 = por %p6570_p13, %p6569_p8 }
 0x5ca   : > { %p6567_p11 = pneg %p6566_p0 }
 0x5cb   : > { %p6573_p3 = por %p6572_p10, %p6571_p6 }
 0x5cd   : > { %p6574_p7 = pnand %p6573_p3, %p6567_p11 }
 0x5cf   : > { %6577 = shalt.err (!%p6574_p7)
}
 0x5d0   : > { %s6636_s8 = smov 128   ;;  %s6637_s17 = smov 8  }
 0x5d1   : > { %6246 = dma.vmem_to_hbm [thread:$0]  (%p6832_p5), %s8264_s12, 4096, %s8262_s16, %s4780_s28, %s6636_s8, %s6636_s8, %s6637_s17  }
 0x5d2 PF: > { %s8474_s13 = sld [smem:[#allocation16_spill]]  ;;  %s4808_s20 = sand.u32 1, %s6612_s24  }
 0x5d3   : > { %p8476_p1 = scmp.ge.s32.totalorder %s6624_s27, 2  ;;  %s4809_s30 = scalar_lea.sflag [#allocation5], %s4808_s20 }
 0x5d8   : > { %p8475_p12 = scmp.ne.s32.totalorder %s8474_s13, 0 }
 0x5da   : > { %p6263_p2 = pnand %p8476_p1, %p8475_p12 }
 0x5dc   : > { %6607 = dma.done.wait (!%p6263_p2), %s4809_s30, 4096  }
 0x5dd   : > { %6609 = vsyncadd (!%p6263_p2), %s4809_s30, 4294963200  ;;  %p22_p4 = scmp.ge.s32.totalorder %s6818_s22, 4   ;;  %s8477_s24 = smov %s6616_s25 }
 0x5de   : > { %s8478_s25 = smov %s6620_s26  ;;  %s8479_s26 = smov %s6828_s18 }
 0x5df   : > { %s8480_s27 = smov %s6818_s22  ;;  %24 = sbr.rel (!%p22_p4) target bundleno = 7 (0x7), region = 114 }
 0x5e6   :  { %4814 = vsyncpa [#allocation4], 1 }
 0x5e7   :  { %4816 = vsyncpa [#allocation4 + $0x1], 1 }
 0x5e8   :  { %4817 = vsyncpa [#allocation7], 1 }
 0x5e9   :  { %4818 = vsyncpa [#allocation10], 1 }
 0x5ea   :  { %4819 = vsyncpa [#allocation5], 1 }
 0x5eb   :  { %4821 = vsyncpa [#allocation5 + $0x1], 1 }

</bundles_post_ra>
